<compile_context>
chip_gen: v7x
topology: tpu7x:2x2x1
jax: 0.10.0
libtpu: 0.0.40
codegen_flags: <defaults>
</compile_context>

<pallas_src>
import math

import jax
import jax.numpy as jnp
from jax.experimental import pallas as pl
from jax.experimental.pallas import tpu as pltpu

_LANE = 128


def _round_up(x, m):
    return ((x + m - 1) // m) * m


# ----------------------------------------------------------------------------
# Pallas kernel: one time chunk (Ts steps) of BOTH directions of one GRU layer.
# ----------------------------------------------------------------------------
def _make_bigru_chunk_kernel(Ts, B, Hp, n_in, nc, out_dtype):
    def kernel(*refs):
        xf_refs = refs[0:n_in]                      # (Ts*B, Din_k) fwd chunk c
        xb_refs = refs[n_in:2 * n_in]               # (Ts*B, Din_k) bwd chunk nc-1-c
        wf_refs = refs[2 * n_in:3 * n_in]           # (Din_k, 3Hp) fwd W_ih
        wr_refs = refs[3 * n_in:4 * n_in]           # (Din_k, 3Hp) bwd W_ih
        (whh_f_ref, whh_r_ref, bxf_ref, bxr_ref,
         bhnf_ref, bhnr_ref, len_ref) = refs[4 * n_in:4 * n_in + 7]
        outf_ref, outb_ref, hfin_ref, h_ref = refs[4 * n_in + 7:]

        c = pl.program_id(0)

        @pl.when(c == 0)
        def _():
            h_ref[...] = jnp.zeros_like(h_ref)      # f32 hidden-state carries

        h_f = h_ref[0, :, :]                        # (B, Hp) f32
        h_b = h_ref[1, :, :]

        # Chunk-level batched input projection for both directions (MXU work,
        # f32 accumulation).  For layers >= 1 there are two x inputs (previous
        # layer's fwd/bwd outputs) so the feature concat is never built.
        def proj(x_refs, w_refs, b_ref):
            acc = None
            for xr, wr in zip(x_refs, w_refs):
                t = jnp.dot(xr[...], wr[...],
                            preferred_element_type=jnp.float32)
                acc = t if acc is None else acc + t
            return acc + b_ref[...]

        gxf = proj(xf_refs, wf_refs, bxf_ref)       # (Ts*B, 3Hp) f32
        gxb = proj(xb_refs, wr_refs, bxr_ref)

        whh_f = whh_f_ref[...]                      # (Hp, 3Hp) compute dtype
        whh_r = whh_r_ref[...]
        bhn_f = bhnf_ref[...]                       # (1, Hp) f32
        bhn_r = bhnr_ref[...]
        lens = len_ref[...]                         # (B, 1) int32
        cdt = whh_f.dtype

        # Bounded unrolled window over the chunk's Ts steps (grid = outer loop).
        for j in range(Ts):
            tf = c * Ts + j                          # fwd global time
            jb = Ts - 1 - j                          # bwd local index in chunk
            tb = (nc - 1 - c) * Ts + jb              # bwd global time

            gh_f = jnp.dot(h_f.astype(cdt), whh_f,
                           preferred_element_type=jnp.float32)
            gh_b = jnp.dot(h_b.astype(cdt), whh_r,
                           preferred_element_type=jnp.float32)

            gxf_j = gxf[j * B:(j + 1) * B]           # (B, 3Hp)
            gxb_j = gxb[jb * B:(jb + 1) * B]

            # Gate order r, z, n (lane-aligned Hp-wide slices; r/z biases are
            # pre-folded into gx, the n-gate b_hn stays inside r*(...)).
            r_f = jax.nn.sigmoid(gxf_j[:, 0:Hp] + gh_f[:, 0:Hp])
            z_f = jax.nn.sigmoid(gxf_j[:, Hp:2 * Hp] + gh_f[:, Hp:2 * Hp])
            n_f = jnp.tanh(gxf_j[:, 2 * Hp:3 * Hp]
                           + r_f * (gh_f[:, 2 * Hp:3 * Hp] + bhn_f))
            r_b = jax.nn.sigmoid(gxb_j[:, 0:Hp] + gh_b[:, 0:Hp])
            z_b = jax.nn.sigmoid(gxb_j[:, Hp:2 * Hp] + gh_b[:, Hp:2 * Hp])
            n_b = jnp.tanh(gxb_j[:, 2 * Hp:3 * Hp]
                           + r_b * (gh_b[:, 2 * Hp:3 * Hp] + bhn_r))

            hf_new = (1.0 - z_f) * n_f + z_f * h_f
            hb_new = (1.0 - z_b) * n_b + z_b * h_b

            # pack_padded_sequence semantics: padded steps keep the hidden
            # state and write zero outputs.
            m_f = lens > tf
            m_b = lens > tb
            h_f = jnp.where(m_f, hf_new, h_f)
            h_b = jnp.where(m_b, hb_new, h_b)

            outf_ref[j * B:(j + 1) * B, :] = (
                jnp.where(m_f, hf_new, 0.0).astype(out_dtype))
            outb_ref[jb * B:(jb + 1) * B, :] = (
                jnp.where(m_b, hb_new, 0.0).astype(out_dtype))

        h_ref[0, :, :] = h_f
        h_ref[1, :, :] = h_b

        @pl.when(c == nc - 1)
        def _():
            hfin_ref[...] = h_ref[...]

    return kernel


def _vmem_limit_bytes(x_list, layer_p, Ts, B, Hp, out_dtype):
    def nbytes(shape, dtype):
        return math.prod(shape) * jnp.dtype(dtype).itemsize

    est = 0
    for x in x_list:                                        # 2 dirs, 2 buffers
        est += 2 * 2 * nbytes((Ts * B, x.shape[-1]), x.dtype)
    for w in layer_p["wih_f"] + layer_p["wih_r"]:
        est += nbytes(w.shape, w.dtype)
    for k in ("whh_f", "whh_r", "bx_f", "bx_r", "bhn_f", "bhn_r"):
        est += nbytes(layer_p[k].shape, layer_p[k].dtype)
    est += 2 * 2 * nbytes((Ts * B, Hp), out_dtype)          # 2 dir outs, 2 bufs
    est += 2 * nbytes((2, B, Hp), jnp.float32)              # hfin + h scratch
    est += 2 * nbytes((Ts * B, 3 * Hp), jnp.float32)        # gx temporaries
    return int(min(128 << 20, max(32 << 20, 2 * est + (8 << 20))))


# ----------------------------------------------------------------------------
# Wrapper: one bidirectional GRU layer, streamed over time chunks.
# ----------------------------------------------------------------------------
def bigru_layer(x_list, layer_p, lens2d, *, Sp, B, Ts, last_layer):
    nc = Sp // Ts
    Hp = layer_p["whh_f"].shape[0]
    n_in = len(x_list)
    assert len(layer_p["wih_f"]) == n_in and len(layer_p["wih_r"]) == n_in
    out_dtype = jnp.float32 if last_layer else layer_p["whh_f"].dtype

    kernel = _make_bigru_chunk_kernel(Ts, B, Hp, n_in, nc, out_dtype)

    def full_spec(a):
        nd = a.ndim
        return pl.BlockSpec(a.shape, lambda c, _nd=nd: (0,) * _nd)

    x_specs_f = [pl.BlockSpec((Ts * B, x.shape[-1]), lambda c: (c, 0))
                 for x in x_list]
    x_specs_b = [pl.BlockSpec((Ts * B, x.shape[-1]),
                              lambda c, _n=nc: (_n - 1 - c, 0))
                 for x in x_list]

    in_specs = (x_specs_f + x_specs_b
                + [full_spec(w) for w in layer_p["wih_f"]]
                + [full_spec(w) for w in layer_p["wih_r"]]
                + [full_spec(layer_p["whh_f"]), full_spec(layer_p["whh_r"]),
                   full_spec(layer_p["bx_f"]), full_spec(layer_p["bx_r"]),
                   full_spec(layer_p["bhn_f"]), full_spec(layer_p["bhn_r"]),
                   full_spec(lens2d)])

    out_specs = (pl.BlockSpec((Ts * B, Hp), lambda c: (c, 0)),
                 pl.BlockSpec((Ts * B, Hp), lambda c, _n=nc: (_n - 1 - c, 0)),
                 pl.BlockSpec((2, B, Hp), lambda c: (0, 0, 0)))
    out_shape = (jax.ShapeDtypeStruct((Sp * B, Hp), out_dtype),
                 jax.ShapeDtypeStruct((Sp * B, Hp), out_dtype),
                 jax.ShapeDtypeStruct((2, B, Hp), jnp.float32))

    args = (list(x_list) + list(x_list)
            + list(layer_p["wih_f"]) + list(layer_p["wih_r"])
            + [layer_p["whh_f"], layer_p["whh_r"],
               layer_p["bx_f"], layer_p["bx_r"],
               layer_p["bhn_f"], layer_p["bhn_r"], lens2d])

    out_f, out_b, h_fin = pl.pallas_call(
        kernel,
        grid=(nc,),
        in_specs=in_specs,
        out_specs=out_specs,
        out_shape=out_shape,
        scratch_shapes=[pltpu.VMEM((2, B, Hp), jnp.float32)],
        compiler_params=pltpu.CompilerParams(
            dimension_semantics=("arbitrary",),
            vmem_limit_bytes=_vmem_limit_bytes(x_list, layer_p, Ts, B, Hp,
                                               out_dtype)),
    )(*args)
    return out_f, out_b, h_fin


# ----------------------------------------------------------------------------
# One-time parameter preparation (hoisted out of the forward path).
# ----------------------------------------------------------------------------
def prepare_encoder_params(raw_params, *, hidden_dim,
                           compute_dtype=jnp.bfloat16, lane=_LANE):
    H = hidden_dim
    Hp = _round_up(H, lane)

    emb = raw_params["embedding"]
    V, E = emb.shape
    Ep = _round_up(E, lane)
    emb_p = jnp.zeros((V, Ep), compute_dtype).at[:, :E].set(
        emb.astype(compute_dtype))

    def gate_major_w(w, Kp):
        # w: (3H, K) torch layout -> (Kp, 3Hp) gate-major, zero lane/row padded.
        K = w.shape[1]
        wT = w.T.astype(jnp.float32)                         # (K, 3H)
        out = jnp.zeros((Kp, 3 * Hp), jnp.float32)
        for g in range(3):
            out = out.at[:K, g * Hp:g * Hp + H].set(wT[:, g * H:(g + 1) * H])
        return out.astype(compute_dtype)

    def gate_major_b(b):
        out = jnp.zeros((1, 3 * Hp), jnp.float32)
        for g in range(3):
            out = out.at[0, g * Hp:g * Hp + H].set(b[g * H:(g + 1) * H])
        return out

    layers = []
    zeros_h = jnp.zeros((H,), jnp.float32)
    for l, p in enumerate(raw_params["gru"]):
        if l == 0:
            wih_f = [gate_major_w(p["w_ih_f"], Ep)]
            wih_r = [gate_major_w(p["w_ih_r"], Ep)]
        else:
            # Split the (3H, 2H) input weight into the per-direction-input
            # halves so the previous layer's fwd/bwd concat is never built.
            wih_f = [gate_major_w(p["w_ih_f"][:, :H], Hp),
                     gate_major_w(p["w_ih_f"][:, H:], Hp)]
            wih_r = [gate_major_w(p["w_ih_r"][:, :H], Hp),
                     gate_major_w(p["w_ih_r"][:, H:], Hp)]
        # Pre-fold b_hh into the input-projection bias for r, z gates.
        bx_f = gate_major_b(p["b_ih_f"]
                            + jnp.concatenate([p["b_hh_f"][:2 * H], zeros_h]))
        bx_r = gate_major_b(p["b_ih_r"]
                            + jnp.concatenate([p["b_hh_r"][:2 * H], zeros_h]))
        bhn_f = jnp.zeros((1, Hp), jnp.float32).at[0, :H].set(p["b_hh_f"][2 * H:])
        bhn_r = jnp.zeros((1, Hp), jnp.float32).at[0, :H].set(p["b_hh_r"][2 * H:])
        layers.append({"wih_f": wih_f, "wih_r": wih_r,
                       "whh_f": gate_major_w(p["w_hh_f"], Hp),
                       "whh_r": gate_major_w(p["w_hh_r"], Hp),
                       "bx_f": bx_f, "bx_r": bx_r,
                       "bhn_f": bhn_f, "bhn_r": bhn_r})
    return {"embedding": emb_p, "layers": layers, "hidden_dim": H}


# ----------------------------------------------------------------------------
# EncoderGRU forward (embedding + stacked bidirectional GRU + direction sum).
# ----------------------------------------------------------------------------
def encoder_gru_forward(enc_params, input_seq, input_lengths, *, seq_chunk=8):
    n_layers = len(enc_params["layers"])
    H = enc_params["hidden_dim"]
    S, B = input_seq.shape

    Ts = max(1, int(seq_chunk))
    if (Ts * B) % 8 != 0:
        Ts = S                      # fall back to one full-sequence chunk
    Sp = _round_up(S, Ts)

    # Embedding lookup (XLA gather glue); table is already padded + cast.
    x = jnp.take(enc_params["embedding"], input_seq, axis=0)   # (S, B, Ep)
    x = x.reshape(S * B, x.shape[-1])
    if Sp > S:
        pad = jnp.zeros(((Sp - S) * B, x.shape[-1]), x.dtype)
        x = jnp.concatenate([x, pad], axis=0)
    lens2d = input_lengths.reshape(B, 1).astype(jnp.int32)

    x_list = [x]
    hiddens = []
    out_f = out_b = None
    for l in range(n_layers):
        last = (l == n_layers - 1)
        out_f, out_b, h_fin = bigru_layer(x_list, enc_params["layers"][l],
                                          lens2d, Sp=Sp, B=B, Ts=Ts,
                                          last_layer=last)
        hiddens.append(h_fin)        # (2, B, Hp) = [fwd, bwd]
        x_list = [out_f, out_b]

    Hp = enc_params["layers"][-1]["whh_f"].shape[0]
    outputs = (out_f + out_b).reshape(Sp, B, Hp)[:S, :, :H]
    hidden = jnp.concatenate(hiddens, axis=0)[:, :, :H]
    return outputs, hidden


# ----------------------------------------------------------------------------
# Pure-JAX reference (same masked-GRU semantics) for correctness checks.
# ----------------------------------------------------------------------------
def _gru_dir_ref(x, w_ih, w_hh, b_ih, b_hh, lengths, reverse):
    S, B, _ = x.shape
    H = w_hh.shape[1]
    ts = jnp.arange(S)
    if reverse:
        ts = ts[::-1]

    def step(h, t):
        x_t = x[t]
        gx = x_t @ w_ih.T + b_ih
        gh = h @ w_hh.T + b_hh
        r = jax.nn.sigmoid(gx[:, :H] + gh[:, :H])
        z = jax.nn.sigmoid(gx[:, H:2 * H] + gh[:, H:2 * H])
        n = jnp.tanh(gx[:, 2 * H:] + r * gh[:, 2 * H:])
        hc = (1.0 - z) * n + z * h
        mask = (lengths > t)[:, None]
        return jnp.where(mask, hc, h), (t, jnp.where(mask, hc, 0.0))

    h_fin, (tt, outs) = jax.lax.scan(step, jnp.zeros((B, H), jnp.float32), ts)
    out = jnp.zeros((S, B, H), jnp.float32).at[tt].set(outs)
    return out, h_fin


def _encoder_ref(params, input_seq, input_lengths, *, n_layers):
    x = jnp.take(params["embedding"], input_seq, axis=0).astype(jnp.float32)
    hiddens = []
    out_fwd = out_bwd = None
    for l in range(n_layers):
        p = params["gru"][l]
        out_fwd, h_fwd = _gru_dir_ref(x, p["w_ih_f"], p["w_hh_f"],
                                      p["b_ih_f"], p["b_hh_f"],
                                      input_lengths, False)
        out_bwd, h_bwd = _gru_dir_ref(x, p["w_ih_r"], p["w_hh_r"],
                                      p["b_ih_r"], p["b_hh_r"],
                                      input_lengths, True)
        hiddens.extend([h_fwd, h_bwd])
        x = jnp.concatenate([out_fwd, out_bwd], axis=2)
    return out_fwd + out_bwd, jnp.stack(hiddens, axis=0)


# ----------------------------------------------------------------------------
# Deterministic parameter init (PyTorch-style uniform(-1/sqrt(H), 1/sqrt(H))).
# ----------------------------------------------------------------------------
def init_params(key, vocab_size, emb_dim, hidden_dim, n_layers):
    keys = jax.random.split(key, 1 + 8 * n_layers)
    params = {"embedding": jax.random.normal(keys[0], (vocab_size, emb_dim),
                                             jnp.float32),
              "gru": []}
    bound = 1.0 / jnp.sqrt(jnp.float32(hidden_dim))
    ki = 1
    for l in range(n_layers):
        in_dim = emb_dim if l == 0 else 2 * hidden_dim

        def u(k, shape):
            return jax.random.uniform(k, shape, jnp.float32, -bound, bound)

        layer = {
            "w_ih_f": u(keys[ki + 0], (3 * hidden_dim, in_dim)),
            "w_hh_f": u(keys[ki + 1], (3 * hidden_dim, hidden_dim)),
            "b_ih_f": u(keys[ki + 2], (3 * hidden_dim,)),
            "b_hh_f": u(keys[ki + 3], (3 * hidden_dim,)),
            "w_ih_r": u(keys[ki + 4], (3 * hidden_dim, in_dim)),
            "w_hh_r": u(keys[ki + 5], (3 * hidden_dim, hidden_dim)),
            "b_ih_r": u(keys[ki + 6], (3 * hidden_dim,)),
            "b_hh_r": u(keys[ki + 7], (3 * hidden_dim,)),
        }
        ki += 8
        params["gru"].append(layer)
    return params


if __name__ == "__main__":
    # config = {'encoder_n_layers': 2, 'hidden_dim': 32, 'emb_dim': 16, 'dropout': 0.1}
    S, B = 10, 8
    VOCAB, EMB, HID, N_LAYERS = 20, 16, 32, 2

    key = jax.random.PRNGKey(0)
    k_par, k_seq = jax.random.split(key)
    params = init_params(k_par, VOCAB, EMB, HID, N_LAYERS)

    # Token ids (S, B) and descending valid lengths (pack_padded_sequence order).
    input_seq = jax.random.randint(k_seq, (S, B), 0, VOCAB, dtype=jnp.int32)
    input_lengths = jnp.array([10, 10, 9, 8, 7, 5, 3, 2], dtype=jnp.int32)
    pad_mask = jnp.arange(S)[:, None] < input_lengths[None, :]
    input_seq = jnp.where(pad_mask, input_seq, 0)

    # Pure-JAX reference.
    ref_out, ref_hid = _encoder_ref(params, input_seq, input_lengths,
                                    n_layers=N_LAYERS)

    # ---- f32 compute path: tight correctness check. -------------------------
    enc_f32 = prepare_encoder_params(params, hidden_dim=HID,
                                     compute_dtype=jnp.float32)
    outputs, hidden = encoder_gru_forward(enc_f32, input_seq, input_lengths,
                                          seq_chunk=8)
    outputs = jax.block_until_ready(outputs)
    hidden = jax.block_until_ready(hidden)
    assert outputs.shape == (S, B, HID)
    assert hidden.shape == (2 * N_LAYERS, B, HID)
    assert jnp.allclose(outputs, ref_out, atol=1e-4, rtol=1e-4)
    assert jnp.allclose(hidden, ref_hid, atol=1e-4, rtol=1e-4)

    # ---- bf16 path (default: bf16 MXU matmuls, bf16 inter-layer activations,
    # f32 accumulation / hidden state / gate math): loose check. --------------
    enc_bf16 = prepare_encoder_params(params, hidden_dim=HID,
                                      compute_dtype=jnp.bfloat16)
    outputs_bf, hidden_bf = encoder_gru_forward(enc_bf16, input_seq,
                                                input_lengths, seq_chunk=8)
    outputs_bf = jax.block_until_ready(outputs_bf)
    hidden_bf = jax.block_until_ready(hidden_bf)
    assert jnp.allclose(outputs_bf, ref_out, atol=5e-2, rtol=5e-2)
    assert jnp.allclose(hidden_bf, ref_hid, atol=5e-2, rtol=5e-2)

    print("KERNEL_OK")
</pallas_src>

<mosaic_0001>
module attributes {stable_mosaic.version = 11 : i64} {
  func.func @kernel(%arg0: i32, %arg1: memref<64x128xf32, #tpu.memory_space<vmem>>, %arg2: memref<64x128xf32, #tpu.memory_space<vmem>>, %arg3: memref<128x384xf32, #tpu.memory_space<vmem>>, %arg4: memref<128x384xf32, #tpu.memory_space<vmem>>, %arg5: memref<128x384xf32, #tpu.memory_space<vmem>>, %arg6: memref<128x384xf32, #tpu.memory_space<vmem>>, %arg7: memref<1x384xf32, #tpu.memory_space<vmem>>, %arg8: memref<1x384xf32, #tpu.memory_space<vmem>>, %arg9: memref<1x128xf32, #tpu.memory_space<vmem>>, %arg10: memref<1x128xf32, #tpu.memory_space<vmem>>, %arg11: memref<8x1xi32, #tpu.memory_space<vmem>>, %arg12: memref<64x128xf32, #tpu.memory_space<vmem>>, %arg13: memref<64x128xf32, #tpu.memory_space<vmem>>, %arg14: memref<2x8x128xf32, #tpu.memory_space<vmem>>, %arg15: memref<2x8x128xf32, #tpu.memory_space<vmem>>) attributes {dimension_semantics = [#tpu.dimension_semantics<arbitrary>], iteration_bounds = array<i64: 2>, scalar_prefetch = 0 : i64, scratch_operands = 1 : i64, tpu.core_type = #tpu.core_type<tc>, window_params = [{transform_indices = @transform_0, window_bounds = array<i64: 64, 128>}, {transform_indices = @transform_1, window_bounds = array<i64: 64, 128>}, {pipeline_mode = #tpu.pipeline_mode<synchronous>, transform_indices = @transform_2, window_bounds = array<i64: 128, 384>}, {pipeline_mode = #tpu.pipeline_mode<synchronous>, transform_indices = @transform_3, window_bounds = array<i64: 128, 384>}, {pipeline_mode = #tpu.pipeline_mode<synchronous>, transform_indices = @transform_4, window_bounds = array<i64: 128, 384>}, {pipeline_mode = #tpu.pipeline_mode<synchronous>, transform_indices = @transform_5, window_bounds = array<i64: 128, 384>}, {pipeline_mode = #tpu.pipeline_mode<synchronous>, transform_indices = @transform_6, window_bounds = array<i64: 1, 384>}, {pipeline_mode = #tpu.pipeline_mode<synchronous>, transform_indices = @transform_7, window_bounds = array<i64: 1, 384>}, {pipeline_mode = #tpu.pipeline_mode<synchronous>, transform_indices = @transform_8, window_bounds = array<i64: 1, 128>}, {pipeline_mode = #tpu.pipeline_mode<synchronous>, transform_indices = @transform_9, window_bounds = array<i64: 1, 128>}, {pipeline_mode = #tpu.pipeline_mode<synchronous>, transform_indices = @transform_10, window_bounds = array<i64: 8, 1>}, {transform_indices = @transform_11, window_bounds = array<i64: 64, 128>}, {transform_indices = @transform_12, window_bounds = array<i64: 64, 128>}, {pipeline_mode = #tpu.pipeline_mode<synchronous>, transform_indices = @transform_13, window_bounds = array<i64: 2, 8, 128>}]} {
    %c0_i32 = arith.constant 0 : i32
    %0 = arith.cmpi eq, %arg0, %c0_i32 : i32
    %1 = arith.extui %0 : i1 to i32
    %c0_i32_0 = arith.constant 0 : i32
    %2 = arith.cmpi ne, %1, %c0_i32_0 : i32
    scf.if %2 {
      %cst_173 = arith.constant 0.000000e+00 : f32
      %713 = vector.broadcast %cst_173 : f32 to vector<2x8x128xf32>
      %c0_174 = arith.constant 0 : index
      %c0_175 = arith.constant 0 : index
      %c0_176 = arith.constant 0 : index
      %714 = vector.load %arg15[%c0_174, %c0_175, %c0_176] : memref<2x8x128xf32, #tpu.memory_space<vmem>>, vector<2x8x128xf32>
      tpu.vector_store %arg15[%c0_174, %c0_175, %c0_176], %713 {strides = array<i32>} : memref<2x8x128xf32, #tpu.memory_space<vmem>>, vector<2x8x128xf32>,
    } else {
    }
    %c0 = arith.constant 0 : index
    %c0_1 = arith.constant 0 : index
    %c0_2 = arith.constant 0 : index
    %3 = vector.load %arg15[%c0, %c0_1, %c0_2] : memref<2x8x128xf32, #tpu.memory_space<vmem>>, vector<1x8x128xf32>
    %4 = vector.shape_cast %3 : vector<1x8x128xf32> to vector<8x128xf32>
    %c1 = arith.constant 1 : index
    %c0_3 = arith.constant 0 : index
    %c0_4 = arith.constant 0 : index
    %5 = vector.load %arg15[%c1, %c0_3, %c0_4] : memref<2x8x128xf32, #tpu.memory_space<vmem>>, vector<1x8x128xf32>
    %6 = vector.shape_cast %5 : vector<1x8x128xf32> to vector<8x128xf32>
    %c0_5 = arith.constant 0 : index
    %c0_6 = arith.constant 0 : index
    %7 = vector.load %arg1[%c0_5, %c0_6] : memref<64x128xf32, #tpu.memory_space<vmem>>, vector<64x128xf32>
    %c0_7 = arith.constant 0 : index
    %c0_8 = arith.constant 0 : index
    %8 = vector.load %arg3[%c0_7, %c0_8] : memref<128x384xf32, #tpu.memory_space<vmem>>, vector<128x384xf32>
    %cst = arith.constant dense<0.000000e+00> : vector<64x384xf32>
    %9 = tpu.matmul %7, %8, %cst {dimension_numbers = #tpu.dot_dimension_numbers<[1], [0], [0], [1], [0, 0, 1, 1], [], []>} : vector<64x128xf32>, vector<128x384xf32>, vector<64x384xf32> -> vector<64x384xf32>
    %c0_9 = arith.constant 0 : index
    %c0_10 = arith.constant 0 : index
    %10 = vector.load %arg7[%c0_9, %c0_10] : memref<1x384xf32, #tpu.memory_space<vmem>>, vector<1x384xf32>
    %11 = vector.broadcast %10 : vector<1x384xf32> to vector<64x384xf32>
    %12 = arith.addf %9, %11 : vector<64x384xf32>
    %c0_11 = arith.constant 0 : index
    %c0_12 = arith.constant 0 : index
    %13 = vector.load %arg2[%c0_11, %c0_12] : memref<64x128xf32, #tpu.memory_space<vmem>>, vector<64x128xf32>
    %c0_13 = arith.constant 0 : index
    %c0_14 = arith.constant 0 : index
    %14 = vector.load %arg4[%c0_13, %c0_14] : memref<128x384xf32, #tpu.memory_space<vmem>>, vector<128x384xf32>
    %cst_15 = arith.constant dense<0.000000e+00> : vector<64x384xf32>
    %15 = tpu.matmul %13, %14, %cst_15 {dimension_numbers = #tpu.dot_dimension_numbers<[1], [0], [0], [1], [0, 0, 1, 1], [], []>} : vector<64x128xf32>, vector<128x384xf32>, vector<64x384xf32> -> vector<64x384xf32>
    %c0_16 = arith.constant 0 : index
    %c0_17 = arith.constant 0 : index
    %16 = vector.load %arg8[%c0_16, %c0_17] : memref<1x384xf32, #tpu.memory_space<vmem>>, vector<1x384xf32>
    %17 = vector.broadcast %16 : vector<1x384xf32> to vector<64x384xf32>
    %18 = arith.addf %15, %17 : vector<64x384xf32>
    %c0_18 = arith.constant 0 : index
    %c0_19 = arith.constant 0 : index
    %19 = vector.load %arg5[%c0_18, %c0_19] : memref<128x384xf32, #tpu.memory_space<vmem>>, vector<128x384xf32>
    %c0_20 = arith.constant 0 : index
    %c0_21 = arith.constant 0 : index
    %20 = vector.load %arg6[%c0_20, %c0_21] : memref<128x384xf32, #tpu.memory_space<vmem>>, vector<128x384xf32>
    %c0_22 = arith.constant 0 : index
    %c0_23 = arith.constant 0 : index
    %21 = vector.load %arg9[%c0_22, %c0_23] : memref<1x128xf32, #tpu.memory_space<vmem>>, vector<1x128xf32>
    %c0_24 = arith.constant 0 : index
    %c0_25 = arith.constant 0 : index
    %22 = vector.load %arg10[%c0_24, %c0_25] : memref<1x128xf32, #tpu.memory_space<vmem>>, vector<1x128xf32>
    %c0_26 = arith.constant 0 : index
    %c0_27 = arith.constant 0 : index
    %23 = vector.load %arg11[%c0_26, %c0_27] : memref<8x1xi32, #tpu.memory_space<vmem>>, vector<8x1xi32>
    %c8_i32 = arith.constant 8 : i32
    %24 = arith.muli %arg0, %c8_i32 : i32
    %c0_i32_28 = arith.constant 0 : i32
    %25 = arith.addi %24, %c0_i32_28 : i32
    %c1_i32 = arith.constant 1 : i32
    %26 = arith.subi %c1_i32, %arg0 : i32
    %c8_i32_29 = arith.constant 8 : i32
    %27 = arith.muli %26, %c8_i32_29 : i32
    %c7_i32 = arith.constant 7 : i32
    %28 = arith.addi %27, %c7_i32 : i32
    %cst_30 = arith.constant dense<0.000000e+00> : vector<8x384xf32>
    %29 = tpu.matmul %4, %19, %cst_30 {dimension_numbers = #tpu.dot_dimension_numbers<[1], [0], [0], [1], [0, 0, 1, 1], [], []>} : vector<8x128xf32>, vector<128x384xf32>, vector<8x384xf32> -> vector<8x384xf32>
    %cst_31 = arith.constant dense<0.000000e+00> : vector<8x384xf32>
    %30 = tpu.matmul %6, %20, %cst_31 {dimension_numbers = #tpu.dot_dimension_numbers<[1], [0], [0], [1], [0, 0, 1, 1], [], []>} : vector<8x128xf32>, vector<128x384xf32>, vector<8x384xf32> -> vector<8x384xf32>
    %31 = vector.extract_strided_slice %12 {offsets = [0, 0], sizes = [8, 384], strides = [1, 1]} : vector<64x384xf32> to vector<8x384xf32>
    %32 = vector.extract_strided_slice %18 {offsets = [56, 0], sizes = [8, 384], strides = [1, 1]} : vector<64x384xf32> to vector<8x384xf32>
    %33 = vector.extract_strided_slice %31 {offsets = [0, 0], sizes = [8, 128], strides = [1, 1]} : vector<8x384xf32> to vector<8x128xf32>
    %34 = vector.extract_strided_slice %29 {offsets = [0, 0], sizes = [8, 128], strides = [1, 1]} : vector<8x384xf32> to vector<8x128xf32>
    %35 = arith.addf %33, %34 : vector<8x128xf32>
    %36 = arith.negf %35 : vector<8x128xf32>
    %37 = math.exp %36 : vector<8x128xf32>
    %cst_32 = arith.constant 1.000000e+00 : f32
    %38 = vector.broadcast %cst_32 : f32 to vector<8x128xf32>
    %39 = arith.addf %38, %37 : vector<8x128xf32>
    %40 = arith.divf %38, %39 : vector<8x128xf32>
    %41 = vector.extract_strided_slice %31 {offsets = [0, 128], sizes = [8, 128], strides = [1, 1]} : vector<8x384xf32> to vector<8x128xf32>
    %42 = vector.extract_strided_slice %29 {offsets = [0, 128], sizes = [8, 128], strides = [1, 1]} : vector<8x384xf32> to vector<8x128xf32>
    %43 = arith.addf %41, %42 : vector<8x128xf32>
    %44 = arith.negf %43 : vector<8x128xf32>
    %45 = math.exp %44 : vector<8x128xf32>
    %cst_33 = arith.constant 1.000000e+00 : f32
    %46 = vector.broadcast %cst_33 : f32 to vector<8x128xf32>
    %47 = arith.addf %46, %45 : vector<8x128xf32>
    %48 = arith.divf %46, %47 : vector<8x128xf32>
    %49 = vector.extract_strided_slice %31 {offsets = [0, 256], sizes = [8, 128], strides = [1, 1]} : vector<8x384xf32> to vector<8x128xf32>
    %50 = vector.extract_strided_slice %29 {offsets = [0, 256], sizes = [8, 128], strides = [1, 1]} : vector<8x384xf32> to vector<8x128xf32>
    %51 = vector.broadcast %21 : vector<1x128xf32> to vector<8x128xf32>
    %52 = arith.addf %50, %51 : vector<8x128xf32>
    %53 = arith.mulf %40, %52 : vector<8x128xf32>
    %54 = arith.addf %49, %53 : vector<8x128xf32>
    %55 = math.tanh %54 : vector<8x128xf32>
    %56 = vector.extract_strided_slice %32 {offsets = [0, 0], sizes = [8, 128], strides = [1, 1]} : vector<8x384xf32> to vector<8x128xf32>
    %57 = vector.extract_strided_slice %30 {offsets = [0, 0], sizes = [8, 128], strides = [1, 1]} : vector<8x384xf32> to vector<8x128xf32>
    %58 = arith.addf %56, %57 : vector<8x128xf32>
    %59 = arith.negf %58 : vector<8x128xf32>
    %60 = math.exp %59 : vector<8x128xf32>
    %cst_34 = arith.constant 1.000000e+00 : f32
    %61 = vector.broadcast %cst_34 : f32 to vector<8x128xf32>
    %62 = arith.addf %61, %60 : vector<8x128xf32>
    %63 = arith.divf %61, %62 : vector<8x128xf32>
    %64 = vector.extract_strided_slice %32 {offsets = [0, 128], sizes = [8, 128], strides = [1, 1]} : vector<8x384xf32> to vector<8x128xf32>
    %65 = vector.extract_strided_slice %30 {offsets = [0, 128], sizes = [8, 128], strides = [1, 1]} : vector<8x384xf32> to vector<8x128xf32>
    %66 = arith.addf %64, %65 : vector<8x128xf32>
    %67 = arith.negf %66 : vector<8x128xf32>
    %68 = math.exp %67 : vector<8x128xf32>
    %cst_35 = arith.constant 1.000000e+00 : f32
    %69 = vector.broadcast %cst_35 : f32 to vector<8x128xf32>
    %70 = arith.addf %69, %68 : vector<8x128xf32>
    %71 = arith.divf %69, %70 : vector<8x128xf32>
    %72 = vector.extract_strided_slice %32 {offsets = [0, 256], sizes = [8, 128], strides = [1, 1]} : vector<8x384xf32> to vector<8x128xf32>
    %73 = vector.extract_strided_slice %30 {offsets = [0, 256], sizes = [8, 128], strides = [1, 1]} : vector<8x384xf32> to vector<8x128xf32>
    %74 = vector.broadcast %22 : vector<1x128xf32> to vector<8x128xf32>
    %75 = arith.addf %73, %74 : vector<8x128xf32>
    %76 = arith.mulf %63, %75 : vector<8x128xf32>
    %77 = arith.addf %72, %76 : vector<8x128xf32>
    %78 = math.tanh %77 : vector<8x128xf32>
    %cst_36 = arith.constant 1.000000e+00 : f32
    %79 = vector.broadcast %cst_36 : f32 to vector<8x128xf32>
    %80 = arith.subf %79, %48 : vector<8x128xf32>
    %81 = arith.mulf %80, %55 : vector<8x128xf32>
    %82 = arith.mulf %48, %4 : vector<8x128xf32>
    %83 = arith.addf %81, %82 : vector<8x128xf32>
    %cst_37 = arith.constant 1.000000e+00 : f32
    %84 = vector.broadcast %cst_37 : f32 to vector<8x128xf32>
    %85 = arith.subf %84, %71 : vector<8x128xf32>
    %86 = arith.mulf %85, %78 : vector<8x128xf32>
    %87 = arith.mulf %71, %6 : vector<8x128xf32>
    %88 = arith.addf %86, %87 : vector<8x128xf32>
    %89 = vector.broadcast %25 : i32 to vector<8x1xi32>
    %90 = arith.cmpi sgt, %23, %89 : vector<8x1xi32>
    %91 = vector.broadcast %28 : i32 to vector<8x1xi32>
    %92 = arith.cmpi sgt, %23, %91 : vector<8x1xi32>
    %93 = vector.shape_cast %90 : vector<8x1xi1> to vector<8x1xi1>
    %94 = vector.broadcast %93 : vector<8x1xi1> to vector<8x128xi1>
    %95 = arith.select %94, %83, %4 : vector<8x128xi1>, vector<8x128xf32>
    %96 = vector.shape_cast %92 : vector<8x1xi1> to vector<8x1xi1>
    %97 = vector.broadcast %96 : vector<8x1xi1> to vector<8x128xi1>
    %98 = arith.select %97, %88, %6 : vector<8x128xi1>, vector<8x128xf32>
    %cst_38 = arith.constant 0.000000e+00 : f32
    %99 = vector.shape_cast %90 : vector<8x1xi1> to vector<8x1xi1>
    %100 = vector.broadcast %99 : vector<8x1xi1> to vector<8x128xi1>
    %101 = vector.broadcast %cst_38 : f32 to vector<8x128xf32>
    %102 = arith.select %100, %83, %101 : vector<8x128xi1>, vector<8x128xf32>
    %c0_39 = arith.constant 0 : index
    %c0_40 = arith.constant 0 : index
    %103 = vector.load %arg12[%c0_39, %c0_40] : memref<64x128xf32, #tpu.memory_space<vmem>>, vector<8x128xf32>
    tpu.vector_store %arg12[%c0_39, %c0_40], %102 {strides = array<i32>} : memref<64x128xf32, #tpu.memory_space<vmem>>, vector<8x128xf32>,
    %cst_41 = arith.constant 0.000000e+00 : f32
    %104 = vector.shape_cast %92 : vector<8x1xi1> to vector<8x1xi1>
    %105 = vector.broadcast %104 : vector<8x1xi1> to vector<8x128xi1>
    %106 = vector.broadcast %cst_41 : f32 to vector<8x128xf32>
    %107 = arith.select %105, %88, %106 : vector<8x128xi1>, vector<8x128xf32>
    %c56 = arith.constant 56 : index
    %c0_42 = arith.constant 0 : index
    %108 = vector.load %arg13[%c56, %c0_42] : memref<64x128xf32, #tpu.memory_space<vmem>>, vector<8x128xf32>
    tpu.vector_store %arg13[%c56, %c0_42], %107 {strides = array<i32>} : memref<64x128xf32, #tpu.memory_space<vmem>>, vector<8x128xf32>,
    %c8_i32_43 = arith.constant 8 : i32
    %109 = arith.muli %arg0, %c8_i32_43 : i32
    %c1_i32_44 = arith.constant 1 : i32
    %110 = arith.addi %109, %c1_i32_44 : i32
    %c1_i32_45 = arith.constant 1 : i32
    %111 = arith.subi %c1_i32_45, %arg0 : i32
    %c8_i32_46 = arith.constant 8 : i32
    %112 = arith.muli %111, %c8_i32_46 : i32
    %c6_i32 = arith.constant 6 : i32
    %113 = arith.addi %112, %c6_i32 : i32
    %cst_47 = arith.constant dense<0.000000e+00> : vector<8x384xf32>
    %114 = tpu.matmul %95, %19, %cst_47 {dimension_numbers = #tpu.dot_dimension_numbers<[1], [0], [0], [1], [0, 0, 1, 1], [], []>} : vector<8x128xf32>, vector<128x384xf32>, vector<8x384xf32> -> vector<8x384xf32>
    %cst_48 = arith.constant dense<0.000000e+00> : vector<8x384xf32>
    %115 = tpu.matmul %98, %20, %cst_48 {dimension_numbers = #tpu.dot_dimension_numbers<[1], [0], [0], [1], [0, 0, 1, 1], [], []>} : vector<8x128xf32>, vector<128x384xf32>, vector<8x384xf32> -> vector<8x384xf32>
    %116 = vector.extract_strided_slice %12 {offsets = [8, 0], sizes = [8, 384], strides = [1, 1]} : vector<64x384xf32> to vector<8x384xf32>
    %117 = vector.extract_strided_slice %18 {offsets = [48, 0], sizes = [8, 384], strides = [1, 1]} : vector<64x384xf32> to vector<8x384xf32>
    %118 = vector.extract_strided_slice %116 {offsets = [0, 0], sizes = [8, 128], strides = [1, 1]} : vector<8x384xf32> to vector<8x128xf32>
    %119 = vector.extract_strided_slice %114 {offsets = [0, 0], sizes = [8, 128], strides = [1, 1]} : vector<8x384xf32> to vector<8x128xf32>
    %120 = arith.addf %118, %119 : vector<8x128xf32>
    %121 = arith.negf %120 : vector<8x128xf32>
    %122 = math.exp %121 : vector<8x128xf32>
    %cst_49 = arith.constant 1.000000e+00 : f32
    %123 = vector.broadcast %cst_49 : f32 to vector<8x128xf32>
    %124 = arith.addf %123, %122 : vector<8x128xf32>
    %125 = arith.divf %123, %124 : vector<8x128xf32>
    %126 = vector.extract_strided_slice %116 {offsets = [0, 128], sizes = [8, 128], strides = [1, 1]} : vector<8x384xf32> to vector<8x128xf32>
    %127 = vector.extract_strided_slice %114 {offsets = [0, 128], sizes = [8, 128], strides = [1, 1]} : vector<8x384xf32> to vector<8x128xf32>
    %128 = arith.addf %126, %127 : vector<8x128xf32>
    %129 = arith.negf %128 : vector<8x128xf32>
    %130 = math.exp %129 : vector<8x128xf32>
    %cst_50 = arith.constant 1.000000e+00 : f32
    %131 = vector.broadcast %cst_50 : f32 to vector<8x128xf32>
    %132 = arith.addf %131, %130 : vector<8x128xf32>
    %133 = arith.divf %131, %132 : vector<8x128xf32>
    %134 = vector.extract_strided_slice %116 {offsets = [0, 256], sizes = [8, 128], strides = [1, 1]} : vector<8x384xf32> to vector<8x128xf32>
    %135 = vector.extract_strided_slice %114 {offsets = [0, 256], sizes = [8, 128], strides = [1, 1]} : vector<8x384xf32> to vector<8x128xf32>
    %136 = vector.broadcast %21 : vector<1x128xf32> to vector<8x128xf32>
    %137 = arith.addf %135, %136 : vector<8x128xf32>
    %138 = arith.mulf %125, %137 : vector<8x128xf32>
    %139 = arith.addf %134, %138 : vector<8x128xf32>
    %140 = math.tanh %139 : vector<8x128xf32>
    %141 = vector.extract_strided_slice %117 {offsets = [0, 0], sizes = [8, 128], strides = [1, 1]} : vector<8x384xf32> to vector<8x128xf32>
    %142 = vector.extract_strided_slice %115 {offsets = [0, 0], sizes = [8, 128], strides = [1, 1]} : vector<8x384xf32> to vector<8x128xf32>
    %143 = arith.addf %141, %142 : vector<8x128xf32>
    %144 = arith.negf %143 : vector<8x128xf32>
    %145 = math.exp %144 : vector<8x128xf32>
    %cst_51 = arith.constant 1.000000e+00 : f32
    %146 = vector.broadcast %cst_51 : f32 to vector<8x128xf32>
    %147 = arith.addf %146, %145 : vector<8x128xf32>
    %148 = arith.divf %146, %147 : vector<8x128xf32>
    %149 = vector.extract_strided_slice %117 {offsets = [0, 128], sizes = [8, 128], strides = [1, 1]} : vector<8x384xf32> to vector<8x128xf32>
    %150 = vector.extract_strided_slice %115 {offsets = [0, 128], sizes = [8, 128], strides = [1, 1]} : vector<8x384xf32> to vector<8x128xf32>
    %151 = arith.addf %149, %150 : vector<8x128xf32>
    %152 = arith.negf %151 : vector<8x128xf32>
    %153 = math.exp %152 : vector<8x128xf32>
    %cst_52 = arith.constant 1.000000e+00 : f32
    %154 = vector.broadcast %cst_52 : f32 to vector<8x128xf32>
    %155 = arith.addf %154, %153 : vector<8x128xf32>
    %156 = arith.divf %154, %155 : vector<8x128xf32>
    %157 = vector.extract_strided_slice %117 {offsets = [0, 256], sizes = [8, 128], strides = [1, 1]} : vector<8x384xf32> to vector<8x128xf32>
    %158 = vector.extract_strided_slice %115 {offsets = [0, 256], sizes = [8, 128], strides = [1, 1]} : vector<8x384xf32> to vector<8x128xf32>
    %159 = vector.broadcast %22 : vector<1x128xf32> to vector<8x128xf32>
    %160 = arith.addf %158, %159 : vector<8x128xf32>
    %161 = arith.mulf %148, %160 : vector<8x128xf32>
    %162 = arith.addf %157, %161 : vector<8x128xf32>
    %163 = math.tanh %162 : vector<8x128xf32>
    %cst_53 = arith.constant 1.000000e+00 : f32
    %164 = vector.broadcast %cst_53 : f32 to vector<8x128xf32>
    %165 = arith.subf %164, %133 : vector<8x128xf32>
    %166 = arith.mulf %165, %140 : vector<8x128xf32>
    %167 = arith.mulf %133, %95 : vector<8x128xf32>
    %168 = arith.addf %166, %167 : vector<8x128xf32>
    %cst_54 = arith.constant 1.000000e+00 : f32
    %169 = vector.broadcast %cst_54 : f32 to vector<8x128xf32>
    %170 = arith.subf %169, %156 : vector<8x128xf32>
    %171 = arith.mulf %170, %163 : vector<8x128xf32>
    %172 = arith.mulf %156, %98 : vector<8x128xf32>
    %173 = arith.addf %171, %172 : vector<8x128xf32>
    %174 = vector.broadcast %110 : i32 to vector<8x1xi32>
    %175 = arith.cmpi sgt, %23, %174 : vector<8x1xi32>
    %176 = vector.broadcast %113 : i32 to vector<8x1xi32>
    %177 = arith.cmpi sgt, %23, %176 : vector<8x1xi32>
    %178 = vector.shape_cast %175 : vector<8x1xi1> to vector<8x1xi1>
    %179 = vector.broadcast %178 : vector<8x1xi1> to vector<8x128xi1>
    %180 = arith.select %179, %168, %95 : vector<8x128xi1>, vector<8x128xf32>
    %181 = vector.shape_cast %177 : vector<8x1xi1> to vector<8x1xi1>
    %182 = vector.broadcast %181 : vector<8x1xi1> to vector<8x128xi1>
    %183 = arith.select %182, %173, %98 : vector<8x128xi1>, vector<8x128xf32>
    %cst_55 = arith.constant 0.000000e+00 : f32
    %184 = vector.shape_cast %175 : vector<8x1xi1> to vector<8x1xi1>
    %185 = vector.broadcast %184 : vector<8x1xi1> to vector<8x128xi1>
    %186 = vector.broadcast %cst_55 : f32 to vector<8x128xf32>
    %187 = arith.select %185, %168, %186 : vector<8x128xi1>, vector<8x128xf32>
    %c8 = arith.constant 8 : index
    %c0_56 = arith.constant 0 : index
    %188 = vector.load %arg12[%c8, %c0_56] : memref<64x128xf32, #tpu.memory_space<vmem>>, vector<8x128xf32>
    tpu.vector_store %arg12[%c8, %c0_56], %187 {strides = array<i32>} : memref<64x128xf32, #tpu.memory_space<vmem>>, vector<8x128xf32>,
    %cst_57 = arith.constant 0.000000e+00 : f32
    %189 = vector.shape_cast %177 : vector<8x1xi1> to vector<8x1xi1>
    %190 = vector.broadcast %189 : vector<8x1xi1> to vector<8x128xi1>
    %191 = vector.broadcast %cst_57 : f32 to vector<8x128xf32>
    %192 = arith.select %190, %173, %191 : vector<8x128xi1>, vector<8x128xf32>
    %c48 = arith.constant 48 : index
    %c0_58 = arith.constant 0 : index
    %193 = vector.load %arg13[%c48, %c0_58] : memref<64x128xf32, #tpu.memory_space<vmem>>, vector<8x128xf32>
    tpu.vector_store %arg13[%c48, %c0_58], %192 {strides = array<i32>} : memref<64x128xf32, #tpu.memory_space<vmem>>, vector<8x128xf32>,
    %c8_i32_59 = arith.constant 8 : i32
    %194 = arith.muli %arg0, %c8_i32_59 : i32
    %c2_i32 = arith.constant 2 : i32
    %195 = arith.addi %194, %c2_i32 : i32
    %c1_i32_60 = arith.constant 1 : i32
    %196 = arith.subi %c1_i32_60, %arg0 : i32
    %c8_i32_61 = arith.constant 8 : i32
    %197 = arith.muli %196, %c8_i32_61 : i32
    %c5_i32 = arith.constant 5 : i32
    %198 = arith.addi %197, %c5_i32 : i32
    %cst_62 = arith.constant dense<0.000000e+00> : vector<8x384xf32>
    %199 = tpu.matmul %180, %19, %cst_62 {dimension_numbers = #tpu.dot_dimension_numbers<[1], [0], [0], [1], [0, 0, 1, 1], [], []>} : vector<8x128xf32>, vector<128x384xf32>, vector<8x384xf32> -> vector<8x384xf32>
    %cst_63 = arith.constant dense<0.000000e+00> : vector<8x384xf32>
    %200 = tpu.matmul %183, %20, %cst_63 {dimension_numbers = #tpu.dot_dimension_numbers<[1], [0], [0], [1], [0, 0, 1, 1], [], []>} : vector<8x128xf32>, vector<128x384xf32>, vector<8x384xf32> -> vector<8x384xf32>
    %201 = vector.extract_strided_slice %12 {offsets = [16, 0], sizes = [8, 384], strides = [1, 1]} : vector<64x384xf32> to vector<8x384xf32>
    %202 = vector.extract_strided_slice %18 {offsets = [40, 0], sizes = [8, 384], strides = [1, 1]} : vector<64x384xf32> to vector<8x384xf32>
    %203 = vector.extract_strided_slice %201 {offsets = [0, 0], sizes = [8, 128], strides = [1, 1]} : vector<8x384xf32> to vector<8x128xf32>
    %204 = vector.extract_strided_slice %199 {offsets = [0, 0], sizes = [8, 128], strides = [1, 1]} : vector<8x384xf32> to vector<8x128xf32>
    %205 = arith.addf %203, %204 : vector<8x128xf32>
    %206 = arith.negf %205 : vector<8x128xf32>
    %207 = math.exp %206 : vector<8x128xf32>
    %cst_64 = arith.constant 1.000000e+00 : f32
    %208 = vector.broadcast %cst_64 : f32 to vector<8x128xf32>
    %209 = arith.addf %208, %207 : vector<8x128xf32>
    %210 = arith.divf %208, %209 : vector<8x128xf32>
    %211 = vector.extract_strided_slice %201 {offsets = [0, 128], sizes = [8, 128], strides = [1, 1]} : vector<8x384xf32> to vector<8x128xf32>
    %212 = vector.extract_strided_slice %199 {offsets = [0, 128], sizes = [8, 128], strides = [1, 1]} : vector<8x384xf32> to vector<8x128xf32>
    %213 = arith.addf %211, %212 : vector<8x128xf32>
    %214 = arith.negf %213 : vector<8x128xf32>
    %215 = math.exp %214 : vector<8x128xf32>
    %cst_65 = arith.constant 1.000000e+00 : f32
    %216 = vector.broadcast %cst_65 : f32 to vector<8x128xf32>
    %217 = arith.addf %216, %215 : vector<8x128xf32>
    %218 = arith.divf %216, %217 : vector<8x128xf32>
    %219 = vector.extract_strided_slice %201 {offsets = [0, 256], sizes = [8, 128], strides = [1, 1]} : vector<8x384xf32> to vector<8x128xf32>
    %220 = vector.extract_strided_slice %199 {offsets = [0, 256], sizes = [8, 128], strides = [1, 1]} : vector<8x384xf32> to vector<8x128xf32>
    %221 = vector.broadcast %21 : vector<1x128xf32> to vector<8x128xf32>
    %222 = arith.addf %220, %221 : vector<8x128xf32>
    %223 = arith.mulf %210, %222 : vector<8x128xf32>
    %224 = arith.addf %219, %223 : vector<8x128xf32>
    %225 = math.tanh %224 : vector<8x128xf32>
    %226 = vector.extract_strided_slice %202 {offsets = [0, 0], sizes = [8, 128], strides = [1, 1]} : vector<8x384xf32> to vector<8x128xf32>
    %227 = vector.extract_strided_slice %200 {offsets = [0, 0], sizes = [8, 128], strides = [1, 1]} : vector<8x384xf32> to vector<8x128xf32>
    %228 = arith.addf %226, %227 : vector<8x128xf32>
    %229 = arith.negf %228 : vector<8x128xf32>
    %230 = math.exp %229 : vector<8x128xf32>
    %cst_66 = arith.constant 1.000000e+00 : f32
    %231 = vector.broadcast %cst_66 : f32 to vector<8x128xf32>
    %232 = arith.addf %231, %230 : vector<8x128xf32>
    %233 = arith.divf %231, %232 : vector<8x128xf32>
    %234 = vector.extract_strided_slice %202 {offsets = [0, 128], sizes = [8, 128], strides = [1, 1]} : vector<8x384xf32> to vector<8x128xf32>
    %235 = vector.extract_strided_slice %200 {offsets = [0, 128], sizes = [8, 128], strides = [1, 1]} : vector<8x384xf32> to vector<8x128xf32>
    %236 = arith.addf %234, %235 : vector<8x128xf32>
    %237 = arith.negf %236 : vector<8x128xf32>
    %238 = math.exp %237 : vector<8x128xf32>
    %cst_67 = arith.constant 1.000000e+00 : f32
    %239 = vector.broadcast %cst_67 : f32 to vector<8x128xf32>
    %240 = arith.addf %239, %238 : vector<8x128xf32>
    %241 = arith.divf %239, %240 : vector<8x128xf32>
    %242 = vector.extract_strided_slice %202 {offsets = [0, 256], sizes = [8, 128], strides = [1, 1]} : vector<8x384xf32> to vector<8x128xf32>
    %243 = vector.extract_strided_slice %200 {offsets = [0, 256], sizes = [8, 128], strides = [1, 1]} : vector<8x384xf32> to vector<8x128xf32>
    %244 = vector.broadcast %22 : vector<1x128xf32> to vector<8x128xf32>
    %245 = arith.addf %243, %244 : vector<8x128xf32>
    %246 = arith.mulf %233, %245 : vector<8x128xf32>
    %247 = arith.addf %242, %246 : vector<8x128xf32>
    %248 = math.tanh %247 : vector<8x128xf32>
    %cst_68 = arith.constant 1.000000e+00 : f32
    %249 = vector.broadcast %cst_68 : f32 to vector<8x128xf32>
    %250 = arith.subf %249, %218 : vector<8x128xf32>
    %251 = arith.mulf %250, %225 : vector<8x128xf32>
    %252 = arith.mulf %218, %180 : vector<8x128xf32>
    %253 = arith.addf %251, %252 : vector<8x128xf32>
    %cst_69 = arith.constant 1.000000e+00 : f32
    %254 = vector.broadcast %cst_69 : f32 to vector<8x128xf32>
    %255 = arith.subf %254, %241 : vector<8x128xf32>
    %256 = arith.mulf %255, %248 : vector<8x128xf32>
    %257 = arith.mulf %241, %183 : vector<8x128xf32>
    %258 = arith.addf %256, %257 : vector<8x128xf32>
    %259 = vector.broadcast %195 : i32 to vector<8x1xi32>
    %260 = arith.cmpi sgt, %23, %259 : vector<8x1xi32>
    %261 = vector.broadcast %198 : i32 to vector<8x1xi32>
    %262 = arith.cmpi sgt, %23, %261 : vector<8x1xi32>
    %263 = vector.shape_cast %260 : vector<8x1xi1> to vector<8x1xi1>
    %264 = vector.broadcast %263 : vector<8x1xi1> to vector<8x128xi1>
    %265 = arith.select %264, %253, %180 : vector<8x128xi1>, vector<8x128xf32>
    %266 = vector.shape_cast %262 : vector<8x1xi1> to vector<8x1xi1>
    %267 = vector.broadcast %266 : vector<8x1xi1> to vector<8x128xi1>
    %268 = arith.select %267, %258, %183 : vector<8x128xi1>, vector<8x128xf32>
    %cst_70 = arith.constant 0.000000e+00 : f32
    %269 = vector.shape_cast %260 : vector<8x1xi1> to vector<8x1xi1>
    %270 = vector.broadcast %269 : vector<8x1xi1> to vector<8x128xi1>
    %271 = vector.broadcast %cst_70 : f32 to vector<8x128xf32>
    %272 = arith.select %270, %253, %271 : vector<8x128xi1>, vector<8x128xf32>
    %c16 = arith.constant 16 : index
    %c0_71 = arith.constant 0 : index
    %273 = vector.load %arg12[%c16, %c0_71] : memref<64x128xf32, #tpu.memory_space<vmem>>, vector<8x128xf32>
    tpu.vector_store %arg12[%c16, %c0_71], %272 {strides = array<i32>} : memref<64x128xf32, #tpu.memory_space<vmem>>, vector<8x128xf32>,
    %cst_72 = arith.constant 0.000000e+00 : f32
    %274 = vector.shape_cast %262 : vector<8x1xi1> to vector<8x1xi1>
    %275 = vector.broadcast %274 : vector<8x1xi1> to vector<8x128xi1>
    %276 = vector.broadcast %cst_72 : f32 to vector<8x128xf32>
    %277 = arith.select %275, %258, %276 : vector<8x128xi1>, vector<8x128xf32>
    %c40 = arith.constant 40 : index
    %c0_73 = arith.constant 0 : index
    %278 = vector.load %arg13[%c40, %c0_73] : memref<64x128xf32, #tpu.memory_space<vmem>>, vector<8x128xf32>
    tpu.vector_store %arg13[%c40, %c0_73], %277 {strides = array<i32>} : memref<64x128xf32, #tpu.memory_space<vmem>>, vector<8x128xf32>,
    %c8_i32_74 = arith.constant 8 : i32
    %279 = arith.muli %arg0, %c8_i32_74 : i32
    %c3_i32 = arith.constant 3 : i32
    %280 = arith.addi %279, %c3_i32 : i32
    %c1_i32_75 = arith.constant 1 : i32
    %281 = arith.subi %c1_i32_75, %arg0 : i32
    %c8_i32_76 = arith.constant 8 : i32
    %282 = arith.muli %281, %c8_i32_76 : i32
    %c4_i32 = arith.constant 4 : i32
    %283 = arith.addi %282, %c4_i32 : i32
    %cst_77 = arith.constant dense<0.000000e+00> : vector<8x384xf32>
    %284 = tpu.matmul %265, %19, %cst_77 {dimension_numbers = #tpu.dot_dimension_numbers<[1], [0], [0], [1], [0, 0, 1, 1], [], []>} : vector<8x128xf32>, vector<128x384xf32>, vector<8x384xf32> -> vector<8x384xf32>
    %cst_78 = arith.constant dense<0.000000e+00> : vector<8x384xf32>
    %285 = tpu.matmul %268, %20, %cst_78 {dimension_numbers = #tpu.dot_dimension_numbers<[1], [0], [0], [1], [0, 0, 1, 1], [], []>} : vector<8x128xf32>, vector<128x384xf32>, vector<8x384xf32> -> vector<8x384xf32>
    %286 = vector.extract_strided_slice %12 {offsets = [24, 0], sizes = [8, 384], strides = [1, 1]} : vector<64x384xf32> to vector<8x384xf32>
    %287 = vector.extract_strided_slice %18 {offsets = [32, 0], sizes = [8, 384], strides = [1, 1]} : vector<64x384xf32> to vector<8x384xf32>
    %288 = vector.extract_strided_slice %286 {offsets = [0, 0], sizes = [8, 128], strides = [1, 1]} : vector<8x384xf32> to vector<8x128xf32>
    %289 = vector.extract_strided_slice %284 {offsets = [0, 0], sizes = [8, 128], strides = [1, 1]} : vector<8x384xf32> to vector<8x128xf32>
    %290 = arith.addf %288, %289 : vector<8x128xf32>
    %291 = arith.negf %290 : vector<8x128xf32>
    %292 = math.exp %291 : vector<8x128xf32>
    %cst_79 = arith.constant 1.000000e+00 : f32
    %293 = vector.broadcast %cst_79 : f32 to vector<8x128xf32>
    %294 = arith.addf %293, %292 : vector<8x128xf32>
    %295 = arith.divf %293, %294 : vector<8x128xf32>
    %296 = vector.extract_strided_slice %286 {offsets = [0, 128], sizes = [8, 128], strides = [1, 1]} : vector<8x384xf32> to vector<8x128xf32>
    %297 = vector.extract_strided_slice %284 {offsets = [0, 128], sizes = [8, 128], strides = [1, 1]} : vector<8x384xf32> to vector<8x128xf32>
    %298 = arith.addf %296, %297 : vector<8x128xf32>
    %299 = arith.negf %298 : vector<8x128xf32>
    %300 = math.exp %299 : vector<8x128xf32>
    %cst_80 = arith.constant 1.000000e+00 : f32
    %301 = vector.broadcast %cst_80 : f32 to vector<8x128xf32>
    %302 = arith.addf %301, %300 : vector<8x128xf32>
    %303 = arith.divf %301, %302 : vector<8x128xf32>
    %304 = vector.extract_strided_slice %286 {offsets = [0, 256], sizes = [8, 128], strides = [1, 1]} : vector<8x384xf32> to vector<8x128xf32>
    %305 = vector.extract_strided_slice %284 {offsets = [0, 256], sizes = [8, 128], strides = [1, 1]} : vector<8x384xf32> to vector<8x128xf32>
    %306 = vector.broadcast %21 : vector<1x128xf32> to vector<8x128xf32>
    %307 = arith.addf %305, %306 : vector<8x128xf32>
    %308 = arith.mulf %295, %307 : vector<8x128xf32>
    %309 = arith.addf %304, %308 : vector<8x128xf32>
    %310 = math.tanh %309 : vector<8x128xf32>
    %311 = vector.extract_strided_slice %287 {offsets = [0, 0], sizes = [8, 128], strides = [1, 1]} : vector<8x384xf32> to vector<8x128xf32>
    %312 = vector.extract_strided_slice %285 {offsets = [0, 0], sizes = [8, 128], strides = [1, 1]} : vector<8x384xf32> to vector<8x128xf32>
    %313 = arith.addf %311, %312 : vector<8x128xf32>
    %314 = arith.negf %313 : vector<8x128xf32>
    %315 = math.exp %314 : vector<8x128xf32>
    %cst_81 = arith.constant 1.000000e+00 : f32
    %316 = vector.broadcast %cst_81 : f32 to vector<8x128xf32>
    %317 = arith.addf %316, %315 : vector<8x128xf32>
    %318 = arith.divf %316, %317 : vector<8x128xf32>
    %319 = vector.extract_strided_slice %287 {offsets = [0, 128], sizes = [8, 128], strides = [1, 1]} : vector<8x384xf32> to vector<8x128xf32>
    %320 = vector.extract_strided_slice %285 {offsets = [0, 128], sizes = [8, 128], strides = [1, 1]} : vector<8x384xf32> to vector<8x128xf32>
    %321 = arith.addf %319, %320 : vector<8x128xf32>
    %322 = arith.negf %321 : vector<8x128xf32>
    %323 = math.exp %322 : vector<8x128xf32>
    %cst_82 = arith.constant 1.000000e+00 : f32
    %324 = vector.broadcast %cst_82 : f32 to vector<8x128xf32>
    %325 = arith.addf %324, %323 : vector<8x128xf32>
    %326 = arith.divf %324, %325 : vector<8x128xf32>
    %327 = vector.extract_strided_slice %287 {offsets = [0, 256], sizes = [8, 128], strides = [1, 1]} : vector<8x384xf32> to vector<8x128xf32>
    %328 = vector.extract_strided_slice %285 {offsets = [0, 256], sizes = [8, 128], strides = [1, 1]} : vector<8x384xf32> to vector<8x128xf32>
    %329 = vector.broadcast %22 : vector<1x128xf32> to vector<8x128xf32>
    %330 = arith.addf %328, %329 : vector<8x128xf32>
    %331 = arith.mulf %318, %330 : vector<8x128xf32>
    %332 = arith.addf %327, %331 : vector<8x128xf32>
    %333 = math.tanh %332 : vector<8x128xf32>
    %cst_83 = arith.constant 1.000000e+00 : f32
    %334 = vector.broadcast %cst_83 : f32 to vector<8x128xf32>
    %335 = arith.subf %334, %303 : vector<8x128xf32>
    %336 = arith.mulf %335, %310 : vector<8x128xf32>
    %337 = arith.mulf %303, %265 : vector<8x128xf32>
    %338 = arith.addf %336, %337 : vector<8x128xf32>
    %cst_84 = arith.constant 1.000000e+00 : f32
    %339 = vector.broadcast %cst_84 : f32 to vector<8x128xf32>
    %340 = arith.subf %339, %326 : vector<8x128xf32>
    %341 = arith.mulf %340, %333 : vector<8x128xf32>
    %342 = arith.mulf %326, %268 : vector<8x128xf32>
    %343 = arith.addf %341, %342 : vector<8x128xf32>
    %344 = vector.broadcast %280 : i32 to vector<8x1xi32>
    %345 = arith.cmpi sgt, %23, %344 : vector<8x1xi32>
    %346 = vector.broadcast %283 : i32 to vector<8x1xi32>
    %347 = arith.cmpi sgt, %23, %346 : vector<8x1xi32>
    %348 = vector.shape_cast %345 : vector<8x1xi1> to vector<8x1xi1>
    %349 = vector.broadcast %348 : vector<8x1xi1> to vector<8x128xi1>
    %350 = arith.select %349, %338, %265 : vector<8x128xi1>, vector<8x128xf32>
    %351 = vector.shape_cast %347 : vector<8x1xi1> to vector<8x1xi1>
    %352 = vector.broadcast %351 : vector<8x1xi1> to vector<8x128xi1>
    %353 = arith.select %352, %343, %268 : vector<8x128xi1>, vector<8x128xf32>
    %cst_85 = arith.constant 0.000000e+00 : f32
    %354 = vector.shape_cast %345 : vector<8x1xi1> to vector<8x1xi1>
    %355 = vector.broadcast %354 : vector<8x1xi1> to vector<8x128xi1>
    %356 = vector.broadcast %cst_85 : f32 to vector<8x128xf32>
    %357 = arith.select %355, %338, %356 : vector<8x128xi1>, vector<8x128xf32>
    %c24 = arith.constant 24 : index
    %c0_86 = arith.constant 0 : index
    %358 = vector.load %arg12[%c24, %c0_86] : memref<64x128xf32, #tpu.memory_space<vmem>>, vector<8x128xf32>
    tpu.vector_store %arg12[%c24, %c0_86], %357 {strides = array<i32>} : memref<64x128xf32, #tpu.memory_space<vmem>>, vector<8x128xf32>,
    %cst_87 = arith.constant 0.000000e+00 : f32
    %359 = vector.shape_cast %347 : vector<8x1xi1> to vector<8x1xi1>
    %360 = vector.broadcast %359 : vector<8x1xi1> to vector<8x128xi1>
    %361 = vector.broadcast %cst_87 : f32 to vector<8x128xf32>
    %362 = arith.select %360, %343, %361 : vector<8x128xi1>, vector<8x128xf32>
    %c32 = arith.constant 32 : index
    %c0_88 = arith.constant 0 : index
    %363 = vector.load %arg13[%c32, %c0_88] : memref<64x128xf32, #tpu.memory_space<vmem>>, vector<8x128xf32>
    tpu.vector_store %arg13[%c32, %c0_88], %362 {strides = array<i32>} : memref<64x128xf32, #tpu.memory_space<vmem>>, vector<8x128xf32>,
    %c8_i32_89 = arith.constant 8 : i32
    %364 = arith.muli %arg0, %c8_i32_89 : i32
    %c4_i32_90 = arith.constant 4 : i32
    %365 = arith.addi %364, %c4_i32_90 : i32
    %c1_i32_91 = arith.constant 1 : i32
    %366 = arith.subi %c1_i32_91, %arg0 : i32
    %c8_i32_92 = arith.constant 8 : i32
    %367 = arith.muli %366, %c8_i32_92 : i32
    %c3_i32_93 = arith.constant 3 : i32
    %368 = arith.addi %367, %c3_i32_93 : i32
    %cst_94 = arith.constant dense<0.000000e+00> : vector<8x384xf32>
    %369 = tpu.matmul %350, %19, %cst_94 {dimension_numbers = #tpu.dot_dimension_numbers<[1], [0], [0], [1], [0, 0, 1, 1], [], []>} : vector<8x128xf32>, vector<128x384xf32>, vector<8x384xf32> -> vector<8x384xf32>
    %cst_95 = arith.constant dense<0.000000e+00> : vector<8x384xf32>
    %370 = tpu.matmul %353, %20, %cst_95 {dimension_numbers = #tpu.dot_dimension_numbers<[1], [0], [0], [1], [0, 0, 1, 1], [], []>} : vector<8x128xf32>, vector<128x384xf32>, vector<8x384xf32> -> vector<8x384xf32>
    %371 = vector.extract_strided_slice %12 {offsets = [32, 0], sizes = [8, 384], strides = [1, 1]} : vector<64x384xf32> to vector<8x384xf32>
    %372 = vector.extract_strided_slice %18 {offsets = [24, 0], sizes = [8, 384], strides = [1, 1]} : vector<64x384xf32> to vector<8x384xf32>
    %373 = vector.extract_strided_slice %371 {offsets = [0, 0], sizes = [8, 128], strides = [1, 1]} : vector<8x384xf32> to vector<8x128xf32>
    %374 = vector.extract_strided_slice %369 {offsets = [0, 0], sizes = [8, 128], strides = [1, 1]} : vector<8x384xf32> to vector<8x128xf32>
    %375 = arith.addf %373, %374 : vector<8x128xf32>
    %376 = arith.negf %375 : vector<8x128xf32>
    %377 = math.exp %376 : vector<8x128xf32>
    %cst_96 = arith.constant 1.000000e+00 : f32
    %378 = vector.broadcast %cst_96 : f32 to vector<8x128xf32>
    %379 = arith.addf %378, %377 : vector<8x128xf32>
    %380 = arith.divf %378, %379 : vector<8x128xf32>
    %381 = vector.extract_strided_slice %371 {offsets = [0, 128], sizes = [8, 128], strides = [1, 1]} : vector<8x384xf32> to vector<8x128xf32>
    %382 = vector.extract_strided_slice %369 {offsets = [0, 128], sizes = [8, 128], strides = [1, 1]} : vector<8x384xf32> to vector<8x128xf32>
    %383 = arith.addf %381, %382 : vector<8x128xf32>
    %384 = arith.negf %383 : vector<8x128xf32>
    %385 = math.exp %384 : vector<8x128xf32>
    %cst_97 = arith.constant 1.000000e+00 : f32
    %386 = vector.broadcast %cst_97 : f32 to vector<8x128xf32>
    %387 = arith.addf %386, %385 : vector<8x128xf32>
    %388 = arith.divf %386, %387 : vector<8x128xf32>
    %389 = vector.extract_strided_slice %371 {offsets = [0, 256], sizes = [8, 128], strides = [1, 1]} : vector<8x384xf32> to vector<8x128xf32>
    %390 = vector.extract_strided_slice %369 {offsets = [0, 256], sizes = [8, 128], strides = [1, 1]} : vector<8x384xf32> to vector<8x128xf32>
    %391 = vector.broadcast %21 : vector<1x128xf32> to vector<8x128xf32>
    %392 = arith.addf %390, %391 : vector<8x128xf32>
    %393 = arith.mulf %380, %392 : vector<8x128xf32>
    %394 = arith.addf %389, %393 : vector<8x128xf32>
    %395 = math.tanh %394 : vector<8x128xf32>
    %396 = vector.extract_strided_slice %372 {offsets = [0, 0], sizes = [8, 128], strides = [1, 1]} : vector<8x384xf32> to vector<8x128xf32>
    %397 = vector.extract_strided_slice %370 {offsets = [0, 0], sizes = [8, 128], strides = [1, 1]} : vector<8x384xf32> to vector<8x128xf32>
    %398 = arith.addf %396, %397 : vector<8x128xf32>
    %399 = arith.negf %398 : vector<8x128xf32>
    %400 = math.exp %399 : vector<8x128xf32>
    %cst_98 = arith.constant 1.000000e+00 : f32
    %401 = vector.broadcast %cst_98 : f32 to vector<8x128xf32>
    %402 = arith.addf %401, %400 : vector<8x128xf32>
    %403 = arith.divf %401, %402 : vector<8x128xf32>
    %404 = vector.extract_strided_slice %372 {offsets = [0, 128], sizes = [8, 128], strides = [1, 1]} : vector<8x384xf32> to vector<8x128xf32>
    %405 = vector.extract_strided_slice %370 {offsets = [0, 128], sizes = [8, 128], strides = [1, 1]} : vector<8x384xf32> to vector<8x128xf32>
    %406 = arith.addf %404, %405 : vector<8x128xf32>
    %407 = arith.negf %406 : vector<8x128xf32>
    %408 = math.exp %407 : vector<8x128xf32>
    %cst_99 = arith.constant 1.000000e+00 : f32
    %409 = vector.broadcast %cst_99 : f32 to vector<8x128xf32>
    %410 = arith.addf %409, %408 : vector<8x128xf32>
    %411 = arith.divf %409, %410 : vector<8x128xf32>
    %412 = vector.extract_strided_slice %372 {offsets = [0, 256], sizes = [8, 128], strides = [1, 1]} : vector<8x384xf32> to vector<8x128xf32>
    %413 = vector.extract_strided_slice %370 {offsets = [0, 256], sizes = [8, 128], strides = [1, 1]} : vector<8x384xf32> to vector<8x128xf32>
    %414 = vector.broadcast %22 : vector<1x128xf32> to vector<8x128xf32>
    %415 = arith.addf %413, %414 : vector<8x128xf32>
    %416 = arith.mulf %403, %415 : vector<8x128xf32>
    %417 = arith.addf %412, %416 : vector<8x128xf32>
    %418 = math.tanh %417 : vector<8x128xf32>
    %cst_100 = arith.constant 1.000000e+00 : f32
    %419 = vector.broadcast %cst_100 : f32 to vector<8x128xf32>
    %420 = arith.subf %419, %388 : vector<8x128xf32>
    %421 = arith.mulf %420, %395 : vector<8x128xf32>
    %422 = arith.mulf %388, %350 : vector<8x128xf32>
    %423 = arith.addf %421, %422 : vector<8x128xf32>
    %cst_101 = arith.constant 1.000000e+00 : f32
    %424 = vector.broadcast %cst_101 : f32 to vector<8x128xf32>
    %425 = arith.subf %424, %411 : vector<8x128xf32>
    %426 = arith.mulf %425, %418 : vector<8x128xf32>
    %427 = arith.mulf %411, %353 : vector<8x128xf32>
    %428 = arith.addf %426, %427 : vector<8x128xf32>
    %429 = vector.broadcast %365 : i32 to vector<8x1xi32>
    %430 = arith.cmpi sgt, %23, %429 : vector<8x1xi32>
    %431 = vector.broadcast %368 : i32 to vector<8x1xi32>
    %432 = arith.cmpi sgt, %23, %431 : vector<8x1xi32>
    %433 = vector.shape_cast %430 : vector<8x1xi1> to vector<8x1xi1>
    %434 = vector.broadcast %433 : vector<8x1xi1> to vector<8x128xi1>
    %435 = arith.select %434, %423, %350 : vector<8x128xi1>, vector<8x128xf32>
    %436 = vector.shape_cast %432 : vector<8x1xi1> to vector<8x1xi1>
    %437 = vector.broadcast %436 : vector<8x1xi1> to vector<8x128xi1>
    %438 = arith.select %437, %428, %353 : vector<8x128xi1>, vector<8x128xf32>
    %cst_102 = arith.constant 0.000000e+00 : f32
    %439 = vector.shape_cast %430 : vector<8x1xi1> to vector<8x1xi1>
    %440 = vector.broadcast %439 : vector<8x1xi1> to vector<8x128xi1>
    %441 = vector.broadcast %cst_102 : f32 to vector<8x128xf32>
    %442 = arith.select %440, %423, %441 : vector<8x128xi1>, vector<8x128xf32>
    %c32_103 = arith.constant 32 : index
    %c0_104 = arith.constant 0 : index
    %443 = vector.load %arg12[%c32_103, %c0_104] : memref<64x128xf32, #tpu.memory_space<vmem>>, vector<8x128xf32>
    tpu.vector_store %arg12[%c32_103, %c0_104], %442 {strides = array<i32>} : memref<64x128xf32, #tpu.memory_space<vmem>>, vector<8x128xf32>,
    %cst_105 = arith.constant 0.000000e+00 : f32
    %444 = vector.shape_cast %432 : vector<8x1xi1> to vector<8x1xi1>
    %445 = vector.broadcast %444 : vector<8x1xi1> to vector<8x128xi1>
    %446 = vector.broadcast %cst_105 : f32 to vector<8x128xf32>
    %447 = arith.select %445, %428, %446 : vector<8x128xi1>, vector<8x128xf32>
    %c24_106 = arith.constant 24 : index
    %c0_107 = arith.constant 0 : index
    %448 = vector.load %arg13[%c24_106, %c0_107] : memref<64x128xf32, #tpu.memory_space<vmem>>, vector<8x128xf32>
    tpu.vector_store %arg13[%c24_106, %c0_107], %447 {strides = array<i32>} : memref<64x128xf32, #tpu.memory_space<vmem>>, vector<8x128xf32>,
    %c8_i32_108 = arith.constant 8 : i32
    %449 = arith.muli %arg0, %c8_i32_108 : i32
    %c5_i32_109 = arith.constant 5 : i32
    %450 = arith.addi %449, %c5_i32_109 : i32
    %c1_i32_110 = arith.constant 1 : i32
    %451 = arith.subi %c1_i32_110, %arg0 : i32
    %c8_i32_111 = arith.constant 8 : i32
    %452 = arith.muli %451, %c8_i32_111 : i32
    %c2_i32_112 = arith.constant 2 : i32
    %453 = arith.addi %452, %c2_i32_112 : i32
    %cst_113 = arith.constant dense<0.000000e+00> : vector<8x384xf32>
    %454 = tpu.matmul %435, %19, %cst_113 {dimension_numbers = #tpu.dot_dimension_numbers<[1], [0], [0], [1], [0, 0, 1, 1], [], []>} : vector<8x128xf32>, vector<128x384xf32>, vector<8x384xf32> -> vector<8x384xf32>
    %cst_114 = arith.constant dense<0.000000e+00> : vector<8x384xf32>
    %455 = tpu.matmul %438, %20, %cst_114 {dimension_numbers = #tpu.dot_dimension_numbers<[1], [0], [0], [1], [0, 0, 1, 1], [], []>} : vector<8x128xf32>, vector<128x384xf32>, vector<8x384xf32> -> vector<8x384xf32>
    %456 = vector.extract_strided_slice %12 {offsets = [40, 0], sizes = [8, 384], strides = [1, 1]} : vector<64x384xf32> to vector<8x384xf32>
    %457 = vector.extract_strided_slice %18 {offsets = [16, 0], sizes = [8, 384], strides = [1, 1]} : vector<64x384xf32> to vector<8x384xf32>
    %458 = vector.extract_strided_slice %456 {offsets = [0, 0], sizes = [8, 128], strides = [1, 1]} : vector<8x384xf32> to vector<8x128xf32>
    %459 = vector.extract_strided_slice %454 {offsets = [0, 0], sizes = [8, 128], strides = [1, 1]} : vector<8x384xf32> to vector<8x128xf32>
    %460 = arith.addf %458, %459 : vector<8x128xf32>
    %461 = arith.negf %460 : vector<8x128xf32>
    %462 = math.exp %461 : vector<8x128xf32>
    %cst_115 = arith.constant 1.000000e+00 : f32
    %463 = vector.broadcast %cst_115 : f32 to vector<8x128xf32>
    %464 = arith.addf %463, %462 : vector<8x128xf32>
    %465 = arith.divf %463, %464 : vector<8x128xf32>
    %466 = vector.extract_strided_slice %456 {offsets = [0, 128], sizes = [8, 128], strides = [1, 1]} : vector<8x384xf32> to vector<8x128xf32>
    %467 = vector.extract_strided_slice %454 {offsets = [0, 128], sizes = [8, 128], strides = [1, 1]} : vector<8x384xf32> to vector<8x128xf32>
    %468 = arith.addf %466, %467 : vector<8x128xf32>
    %469 = arith.negf %468 : vector<8x128xf32>
    %470 = math.exp %469 : vector<8x128xf32>
    %cst_116 = arith.constant 1.000000e+00 : f32
    %471 = vector.broadcast %cst_116 : f32 to vector<8x128xf32>
    %472 = arith.addf %471, %470 : vector<8x128xf32>
    %473 = arith.divf %471, %472 : vector<8x128xf32>
    %474 = vector.extract_strided_slice %456 {offsets = [0, 256], sizes = [8, 128], strides = [1, 1]} : vector<8x384xf32> to vector<8x128xf32>
    %475 = vector.extract_strided_slice %454 {offsets = [0, 256], sizes = [8, 128], strides = [1, 1]} : vector<8x384xf32> to vector<8x128xf32>
    %476 = vector.broadcast %21 : vector<1x128xf32> to vector<8x128xf32>
    %477 = arith.addf %475, %476 : vector<8x128xf32>
    %478 = arith.mulf %465, %477 : vector<8x128xf32>
    %479 = arith.addf %474, %478 : vector<8x128xf32>
    %480 = math.tanh %479 : vector<8x128xf32>
    %481 = vector.extract_strided_slice %457 {offsets = [0, 0], sizes = [8, 128], strides = [1, 1]} : vector<8x384xf32> to vector<8x128xf32>
    %482 = vector.extract_strided_slice %455 {offsets = [0, 0], sizes = [8, 128], strides = [1, 1]} : vector<8x384xf32> to vector<8x128xf32>
    %483 = arith.addf %481, %482 : vector<8x128xf32>
    %484 = arith.negf %483 : vector<8x128xf32>
    %485 = math.exp %484 : vector<8x128xf32>
    %cst_117 = arith.constant 1.000000e+00 : f32
    %486 = vector.broadcast %cst_117 : f32 to vector<8x128xf32>
    %487 = arith.addf %486, %485 : vector<8x128xf32>
    %488 = arith.divf %486, %487 : vector<8x128xf32>
    %489 = vector.extract_strided_slice %457 {offsets = [0, 128], sizes = [8, 128], strides = [1, 1]} : vector<8x384xf32> to vector<8x128xf32>
    %490 = vector.extract_strided_slice %455 {offsets = [0, 128], sizes = [8, 128], strides = [1, 1]} : vector<8x384xf32> to vector<8x128xf32>
    %491 = arith.addf %489, %490 : vector<8x128xf32>
    %492 = arith.negf %491 : vector<8x128xf32>
    %493 = math.exp %492 : vector<8x128xf32>
    %cst_118 = arith.constant 1.000000e+00 : f32
    %494 = vector.broadcast %cst_118 : f32 to vector<8x128xf32>
    %495 = arith.addf %494, %493 : vector<8x128xf32>
    %496 = arith.divf %494, %495 : vector<8x128xf32>
    %497 = vector.extract_strided_slice %457 {offsets = [0, 256], sizes = [8, 128], strides = [1, 1]} : vector<8x384xf32> to vector<8x128xf32>
    %498 = vector.extract_strided_slice %455 {offsets = [0, 256], sizes = [8, 128], strides = [1, 1]} : vector<8x384xf32> to vector<8x128xf32>
    %499 = vector.broadcast %22 : vector<1x128xf32> to vector<8x128xf32>
    %500 = arith.addf %498, %499 : vector<8x128xf32>
    %501 = arith.mulf %488, %500 : vector<8x128xf32>
    %502 = arith.addf %497, %501 : vector<8x128xf32>
    %503 = math.tanh %502 : vector<8x128xf32>
    %cst_119 = arith.constant 1.000000e+00 : f32
    %504 = vector.broadcast %cst_119 : f32 to vector<8x128xf32>
    %505 = arith.subf %504, %473 : vector<8x128xf32>
    %506 = arith.mulf %505, %480 : vector<8x128xf32>
    %507 = arith.mulf %473, %435 : vector<8x128xf32>
    %508 = arith.addf %506, %507 : vector<8x128xf32>
    %cst_120 = arith.constant 1.000000e+00 : f32
    %509 = vector.broadcast %cst_120 : f32 to vector<8x128xf32>
    %510 = arith.subf %509, %496 : vector<8x128xf32>
    %511 = arith.mulf %510, %503 : vector<8x128xf32>
    %512 = arith.mulf %496, %438 : vector<8x128xf32>
    %513 = arith.addf %511, %512 : vector<8x128xf32>
    %514 = vector.broadcast %450 : i32 to vector<8x1xi32>
    %515 = arith.cmpi sgt, %23, %514 : vector<8x1xi32>
    %516 = vector.broadcast %453 : i32 to vector<8x1xi32>
    %517 = arith.cmpi sgt, %23, %516 : vector<8x1xi32>
    %518 = vector.shape_cast %515 : vector<8x1xi1> to vector<8x1xi1>
    %519 = vector.broadcast %518 : vector<8x1xi1> to vector<8x128xi1>
    %520 = arith.select %519, %508, %435 : vector<8x128xi1>, vector<8x128xf32>
    %521 = vector.shape_cast %517 : vector<8x1xi1> to vector<8x1xi1>
    %522 = vector.broadcast %521 : vector<8x1xi1> to vector<8x128xi1>
    %523 = arith.select %522, %513, %438 : vector<8x128xi1>, vector<8x128xf32>
    %cst_121 = arith.constant 0.000000e+00 : f32
    %524 = vector.shape_cast %515 : vector<8x1xi1> to vector<8x1xi1>
    %525 = vector.broadcast %524 : vector<8x1xi1> to vector<8x128xi1>
    %526 = vector.broadcast %cst_121 : f32 to vector<8x128xf32>
    %527 = arith.select %525, %508, %526 : vector<8x128xi1>, vector<8x128xf32>
    %c40_122 = arith.constant 40 : index
    %c0_123 = arith.constant 0 : index
    %528 = vector.load %arg12[%c40_122, %c0_123] : memref<64x128xf32, #tpu.memory_space<vmem>>, vector<8x128xf32>
    tpu.vector_store %arg12[%c40_122, %c0_123], %527 {strides = array<i32>} : memref<64x128xf32, #tpu.memory_space<vmem>>, vector<8x128xf32>,
    %cst_124 = arith.constant 0.000000e+00 : f32
    %529 = vector.shape_cast %517 : vector<8x1xi1> to vector<8x1xi1>
    %530 = vector.broadcast %529 : vector<8x1xi1> to vector<8x128xi1>
    %531 = vector.broadcast %cst_124 : f32 to vector<8x128xf32>
    %532 = arith.select %530, %513, %531 : vector<8x128xi1>, vector<8x128xf32>
    %c16_125 = arith.constant 16 : index
    %c0_126 = arith.constant 0 : index
    %533 = vector.load %arg13[%c16_125, %c0_126] : memref<64x128xf32, #tpu.memory_space<vmem>>, vector<8x128xf32>
    tpu.vector_store %arg13[%c16_125, %c0_126], %532 {strides = array<i32>} : memref<64x128xf32, #tpu.memory_space<vmem>>, vector<8x128xf32>,
    %c8_i32_127 = arith.constant 8 : i32
    %534 = arith.muli %arg0, %c8_i32_127 : i32
    %c6_i32_128 = arith.constant 6 : i32
    %535 = arith.addi %534, %c6_i32_128 : i32
    %c1_i32_129 = arith.constant 1 : i32
    %536 = arith.subi %c1_i32_129, %arg0 : i32
    %c8_i32_130 = arith.constant 8 : i32
    %537 = arith.muli %536, %c8_i32_130 : i32
    %c1_i32_131 = arith.constant 1 : i32
    %538 = arith.addi %537, %c1_i32_131 : i32
    %cst_132 = arith.constant dense<0.000000e+00> : vector<8x384xf32>
    %539 = tpu.matmul %520, %19, %cst_132 {dimension_numbers = #tpu.dot_dimension_numbers<[1], [0], [0], [1], [0, 0, 1, 1], [], []>} : vector<8x128xf32>, vector<128x384xf32>, vector<8x384xf32> -> vector<8x384xf32>
    %cst_133 = arith.constant dense<0.000000e+00> : vector<8x384xf32>
    %540 = tpu.matmul %523, %20, %cst_133 {dimension_numbers = #tpu.dot_dimension_numbers<[1], [0], [0], [1], [0, 0, 1, 1], [], []>} : vector<8x128xf32>, vector<128x384xf32>, vector<8x384xf32> -> vector<8x384xf32>
    %541 = vector.extract_strided_slice %12 {offsets = [48, 0], sizes = [8, 384], strides = [1, 1]} : vector<64x384xf32> to vector<8x384xf32>
    %542 = vector.extract_strided_slice %18 {offsets = [8, 0], sizes = [8, 384], strides = [1, 1]} : vector<64x384xf32> to vector<8x384xf32>
    %543 = vector.extract_strided_slice %541 {offsets = [0, 0], sizes = [8, 128], strides = [1, 1]} : vector<8x384xf32> to vector<8x128xf32>
    %544 = vector.extract_strided_slice %539 {offsets = [0, 0], sizes = [8, 128], strides = [1, 1]} : vector<8x384xf32> to vector<8x128xf32>
    %545 = arith.addf %543, %544 : vector<8x128xf32>
    %546 = arith.negf %545 : vector<8x128xf32>
    %547 = math.exp %546 : vector<8x128xf32>
    %cst_134 = arith.constant 1.000000e+00 : f32
    %548 = vector.broadcast %cst_134 : f32 to vector<8x128xf32>
    %549 = arith.addf %548, %547 : vector<8x128xf32>
    %550 = arith.divf %548, %549 : vector<8x128xf32>
    %551 = vector.extract_strided_slice %541 {offsets = [0, 128], sizes = [8, 128], strides = [1, 1]} : vector<8x384xf32> to vector<8x128xf32>
    %552 = vector.extract_strided_slice %539 {offsets = [0, 128], sizes = [8, 128], strides = [1, 1]} : vector<8x384xf32> to vector<8x128xf32>
    %553 = arith.addf %551, %552 : vector<8x128xf32>
    %554 = arith.negf %553 : vector<8x128xf32>
    %555 = math.exp %554 : vector<8x128xf32>
    %cst_135 = arith.constant 1.000000e+00 : f32
    %556 = vector.broadcast %cst_135 : f32 to vector<8x128xf32>
    %557 = arith.addf %556, %555 : vector<8x128xf32>
    %558 = arith.divf %556, %557 : vector<8x128xf32>
    %559 = vector.extract_strided_slice %541 {offsets = [0, 256], sizes = [8, 128], strides = [1, 1]} : vector<8x384xf32> to vector<8x128xf32>
    %560 = vector.extract_strided_slice %539 {offsets = [0, 256], sizes = [8, 128], strides = [1, 1]} : vector<8x384xf32> to vector<8x128xf32>
    %561 = vector.broadcast %21 : vector<1x128xf32> to vector<8x128xf32>
    %562 = arith.addf %560, %561 : vector<8x128xf32>
    %563 = arith.mulf %550, %562 : vector<8x128xf32>
    %564 = arith.addf %559, %563 : vector<8x128xf32>
    %565 = math.tanh %564 : vector<8x128xf32>
    %566 = vector.extract_strided_slice %542 {offsets = [0, 0], sizes = [8, 128], strides = [1, 1]} : vector<8x384xf32> to vector<8x128xf32>
    %567 = vector.extract_strided_slice %540 {offsets = [0, 0], sizes = [8, 128], strides = [1, 1]} : vector<8x384xf32> to vector<8x128xf32>
    %568 = arith.addf %566, %567 : vector<8x128xf32>
    %569 = arith.negf %568 : vector<8x128xf32>
    %570 = math.exp %569 : vector<8x128xf32>
    %cst_136 = arith.constant 1.000000e+00 : f32
    %571 = vector.broadcast %cst_136 : f32 to vector<8x128xf32>
    %572 = arith.addf %571, %570 : vector<8x128xf32>
    %573 = arith.divf %571, %572 : vector<8x128xf32>
    %574 = vector.extract_strided_slice %542 {offsets = [0, 128], sizes = [8, 128], strides = [1, 1]} : vector<8x384xf32> to vector<8x128xf32>
    %575 = vector.extract_strided_slice %540 {offsets = [0, 128], sizes = [8, 128], strides = [1, 1]} : vector<8x384xf32> to vector<8x128xf32>
    %576 = arith.addf %574, %575 : vector<8x128xf32>
    %577 = arith.negf %576 : vector<8x128xf32>
    %578 = math.exp %577 : vector<8x128xf32>
    %cst_137 = arith.constant 1.000000e+00 : f32
    %579 = vector.broadcast %cst_137 : f32 to vector<8x128xf32>
    %580 = arith.addf %579, %578 : vector<8x128xf32>
    %581 = arith.divf %579, %580 : vector<8x128xf32>
    %582 = vector.extract_strided_slice %542 {offsets = [0, 256], sizes = [8, 128], strides = [1, 1]} : vector<8x384xf32> to vector<8x128xf32>
    %583 = vector.extract_strided_slice %540 {offsets = [0, 256], sizes = [8, 128], strides = [1, 1]} : vector<8x384xf32> to vector<8x128xf32>
    %584 = vector.broadcast %22 : vector<1x128xf32> to vector<8x128xf32>
    %585 = arith.addf %583, %584 : vector<8x128xf32>
    %586 = arith.mulf %573, %585 : vector<8x128xf32>
    %587 = arith.addf %582, %586 : vector<8x128xf32>
    %588 = math.tanh %587 : vector<8x128xf32>
    %cst_138 = arith.constant 1.000000e+00 : f32
    %589 = vector.broadcast %cst_138 : f32 to vector<8x128xf32>
    %590 = arith.subf %589, %558 : vector<8x128xf32>
    %591 = arith.mulf %590, %565 : vector<8x128xf32>
    %592 = arith.mulf %558, %520 : vector<8x128xf32>
    %593 = arith.addf %591, %592 : vector<8x128xf32>
    %cst_139 = arith.constant 1.000000e+00 : f32
    %594 = vector.broadcast %cst_139 : f32 to vector<8x128xf32>
    %595 = arith.subf %594, %581 : vector<8x128xf32>
    %596 = arith.mulf %595, %588 : vector<8x128xf32>
    %597 = arith.mulf %581, %523 : vector<8x128xf32>
    %598 = arith.addf %596, %597 : vector<8x128xf32>
    %599 = vector.broadcast %535 : i32 to vector<8x1xi32>
    %600 = arith.cmpi sgt, %23, %599 : vector<8x1xi32>
    %601 = vector.broadcast %538 : i32 to vector<8x1xi32>
    %602 = arith.cmpi sgt, %23, %601 : vector<8x1xi32>
    %603 = vector.shape_cast %600 : vector<8x1xi1> to vector<8x1xi1>
    %604 = vector.broadcast %603 : vector<8x1xi1> to vector<8x128xi1>
    %605 = arith.select %604, %593, %520 : vector<8x128xi1>, vector<8x128xf32>
    %606 = vector.shape_cast %602 : vector<8x1xi1> to vector<8x1xi1>
    %607 = vector.broadcast %606 : vector<8x1xi1> to vector<8x128xi1>
    %608 = arith.select %607, %598, %523 : vector<8x128xi1>, vector<8x128xf32>
    %cst_140 = arith.constant 0.000000e+00 : f32
    %609 = vector.shape_cast %600 : vector<8x1xi1> to vector<8x1xi1>
    %610 = vector.broadcast %609 : vector<8x1xi1> to vector<8x128xi1>
    %611 = vector.broadcast %cst_140 : f32 to vector<8x128xf32>
    %612 = arith.select %610, %593, %611 : vector<8x128xi1>, vector<8x128xf32>
    %c48_141 = arith.constant 48 : index
    %c0_142 = arith.constant 0 : index
    %613 = vector.load %arg12[%c48_141, %c0_142] : memref<64x128xf32, #tpu.memory_space<vmem>>, vector<8x128xf32>
    tpu.vector_store %arg12[%c48_141, %c0_142], %612 {strides = array<i32>} : memref<64x128xf32, #tpu.memory_space<vmem>>, vector<8x128xf32>,
    %cst_143 = arith.constant 0.000000e+00 : f32
    %614 = vector.shape_cast %602 : vector<8x1xi1> to vector<8x1xi1>
    %615 = vector.broadcast %614 : vector<8x1xi1> to vector<8x128xi1>
    %616 = vector.broadcast %cst_143 : f32 to vector<8x128xf32>
    %617 = arith.select %615, %598, %616 : vector<8x128xi1>, vector<8x128xf32>
    %c8_144 = arith.constant 8 : index
    %c0_145 = arith.constant 0 : index
    %618 = vector.load %arg13[%c8_144, %c0_145] : memref<64x128xf32, #tpu.memory_space<vmem>>, vector<8x128xf32>
    tpu.vector_store %arg13[%c8_144, %c0_145], %617 {strides = array<i32>} : memref<64x128xf32, #tpu.memory_space<vmem>>, vector<8x128xf32>,
    %c8_i32_146 = arith.constant 8 : i32
    %619 = arith.muli %arg0, %c8_i32_146 : i32
    %c7_i32_147 = arith.constant 7 : i32
    %620 = arith.addi %619, %c7_i32_147 : i32
    %c1_i32_148 = arith.constant 1 : i32
    %621 = arith.subi %c1_i32_148, %arg0 : i32
    %c8_i32_149 = arith.constant 8 : i32
    %622 = arith.muli %621, %c8_i32_149 : i32
    %c0_i32_150 = arith.constant 0 : i32
    %623 = arith.addi %622, %c0_i32_150 : i32
    %cst_151 = arith.constant dense<0.000000e+00> : vector<8x384xf32>
    %624 = tpu.matmul %605, %19, %cst_151 {dimension_numbers = #tpu.dot_dimension_numbers<[1], [0], [0], [1], [0, 0, 1, 1], [], []>} : vector<8x128xf32>, vector<128x384xf32>, vector<8x384xf32> -> vector<8x384xf32>
    %cst_152 = arith.constant dense<0.000000e+00> : vector<8x384xf32>
    %625 = tpu.matmul %608, %20, %cst_152 {dimension_numbers = #tpu.dot_dimension_numbers<[1], [0], [0], [1], [0, 0, 1, 1], [], []>} : vector<8x128xf32>, vector<128x384xf32>, vector<8x384xf32> -> vector<8x384xf32>
    %626 = vector.extract_strided_slice %12 {offsets = [56, 0], sizes = [8, 384], strides = [1, 1]} : vector<64x384xf32> to vector<8x384xf32>
    %627 = vector.extract_strided_slice %18 {offsets = [0, 0], sizes = [8, 384], strides = [1, 1]} : vector<64x384xf32> to vector<8x384xf32>
    %628 = vector.extract_strided_slice %626 {offsets = [0, 0], sizes = [8, 128], strides = [1, 1]} : vector<8x384xf32> to vector<8x128xf32>
    %629 = vector.extract_strided_slice %624 {offsets = [0, 0], sizes = [8, 128], strides = [1, 1]} : vector<8x384xf32> to vector<8x128xf32>
    %630 = arith.addf %628, %629 : vector<8x128xf32>
    %631 = arith.negf %630 : vector<8x128xf32>
    %632 = math.exp %631 : vector<8x128xf32>
    %cst_153 = arith.constant 1.000000e+00 : f32
    %633 = vector.broadcast %cst_153 : f32 to vector<8x128xf32>
    %634 = arith.addf %633, %632 : vector<8x128xf32>
    %635 = arith.divf %633, %634 : vector<8x128xf32>
    %636 = vector.extract_strided_slice %626 {offsets = [0, 128], sizes = [8, 128], strides = [1, 1]} : vector<8x384xf32> to vector<8x128xf32>
    %637 = vector.extract_strided_slice %624 {offsets = [0, 128], sizes = [8, 128], strides = [1, 1]} : vector<8x384xf32> to vector<8x128xf32>
    %638 = arith.addf %636, %637 : vector<8x128xf32>
    %639 = arith.negf %638 : vector<8x128xf32>
    %640 = math.exp %639 : vector<8x128xf32>
    %cst_154 = arith.constant 1.000000e+00 : f32
    %641 = vector.broadcast %cst_154 : f32 to vector<8x128xf32>
    %642 = arith.addf %641, %640 : vector<8x128xf32>
    %643 = arith.divf %641, %642 : vector<8x128xf32>
    %644 = vector.extract_strided_slice %626 {offsets = [0, 256], sizes = [8, 128], strides = [1, 1]} : vector<8x384xf32> to vector<8x128xf32>
    %645 = vector.extract_strided_slice %624 {offsets = [0, 256], sizes = [8, 128], strides = [1, 1]} : vector<8x384xf32> to vector<8x128xf32>
    %646 = vector.broadcast %21 : vector<1x128xf32> to vector<8x128xf32>
    %647 = arith.addf %645, %646 : vector<8x128xf32>
    %648 = arith.mulf %635, %647 : vector<8x128xf32>
    %649 = arith.addf %644, %648 : vector<8x128xf32>
    %650 = math.tanh %649 : vector<8x128xf32>
    %651 = vector.extract_strided_slice %627 {offsets = [0, 0], sizes = [8, 128], strides = [1, 1]} : vector<8x384xf32> to vector<8x128xf32>
    %652 = vector.extract_strided_slice %625 {offsets = [0, 0], sizes = [8, 128], strides = [1, 1]} : vector<8x384xf32> to vector<8x128xf32>
    %653 = arith.addf %651, %652 : vector<8x128xf32>
    %654 = arith.negf %653 : vector<8x128xf32>
    %655 = math.exp %654 : vector<8x128xf32>
    %cst_155 = arith.constant 1.000000e+00 : f32
    %656 = vector.broadcast %cst_155 : f32 to vector<8x128xf32>
    %657 = arith.addf %656, %655 : vector<8x128xf32>
    %658 = arith.divf %656, %657 : vector<8x128xf32>
    %659 = vector.extract_strided_slice %627 {offsets = [0, 128], sizes = [8, 128], strides = [1, 1]} : vector<8x384xf32> to vector<8x128xf32>
    %660 = vector.extract_strided_slice %625 {offsets = [0, 128], sizes = [8, 128], strides = [1, 1]} : vector<8x384xf32> to vector<8x128xf32>
    %661 = arith.addf %659, %660 : vector<8x128xf32>
    %662 = arith.negf %661 : vector<8x128xf32>
    %663 = math.exp %662 : vector<8x128xf32>
    %cst_156 = arith.constant 1.000000e+00 : f32
    %664 = vector.broadcast %cst_156 : f32 to vector<8x128xf32>
    %665 = arith.addf %664, %663 : vector<8x128xf32>
    %666 = arith.divf %664, %665 : vector<8x128xf32>
    %667 = vector.extract_strided_slice %627 {offsets = [0, 256], sizes = [8, 128], strides = [1, 1]} : vector<8x384xf32> to vector<8x128xf32>
    %668 = vector.extract_strided_slice %625 {offsets = [0, 256], sizes = [8, 128], strides = [1, 1]} : vector<8x384xf32> to vector<8x128xf32>
    %669 = vector.broadcast %22 : vector<1x128xf32> to vector<8x128xf32>
    %670 = arith.addf %668, %669 : vector<8x128xf32>
    %671 = arith.mulf %658, %670 : vector<8x128xf32>
    %672 = arith.addf %667, %671 : vector<8x128xf32>
    %673 = math.tanh %672 : vector<8x128xf32>
    %cst_157 = arith.constant 1.000000e+00 : f32
    %674 = vector.broadcast %cst_157 : f32 to vector<8x128xf32>
    %675 = arith.subf %674, %643 : vector<8x128xf32>
    %676 = arith.mulf %675, %650 : vector<8x128xf32>
    %677 = arith.mulf %643, %605 : vector<8x128xf32>
    %678 = arith.addf %676, %677 : vector<8x128xf32>
    %cst_158 = arith.constant 1.000000e+00 : f32
    %679 = vector.broadcast %cst_158 : f32 to vector<8x128xf32>
    %680 = arith.subf %679, %666 : vector<8x128xf32>
    %681 = arith.mulf %680, %673 : vector<8x128xf32>
    %682 = arith.mulf %666, %608 : vector<8x128xf32>
    %683 = arith.addf %681, %682 : vector<8x128xf32>
    %684 = vector.broadcast %620 : i32 to vector<8x1xi32>
    %685 = arith.cmpi sgt, %23, %684 : vector<8x1xi32>
    %686 = vector.broadcast %623 : i32 to vector<8x1xi32>
    %687 = arith.cmpi sgt, %23, %686 : vector<8x1xi32>
    %688 = vector.shape_cast %685 : vector<8x1xi1> to vector<8x1xi1>
    %689 = vector.broadcast %688 : vector<8x1xi1> to vector<8x128xi1>
    %690 = arith.select %689, %678, %605 : vector<8x128xi1>, vector<8x128xf32>
    %691 = vector.shape_cast %687 : vector<8x1xi1> to vector<8x1xi1>
    %692 = vector.broadcast %691 : vector<8x1xi1> to vector<8x128xi1>
    %693 = arith.select %692, %683, %608 : vector<8x128xi1>, vector<8x128xf32>
    %cst_159 = arith.constant 0.000000e+00 : f32
    %694 = vector.shape_cast %685 : vector<8x1xi1> to vector<8x1xi1>
    %695 = vector.broadcast %694 : vector<8x1xi1> to vector<8x128xi1>
    %696 = vector.broadcast %cst_159 : f32 to vector<8x128xf32>
    %697 = arith.select %695, %678, %696 : vector<8x128xi1>, vector<8x128xf32>
    %c56_160 = arith.constant 56 : index
    %c0_161 = arith.constant 0 : index
    %698 = vector.load %arg12[%c56_160, %c0_161] : memref<64x128xf32, #tpu.memory_space<vmem>>, vector<8x128xf32>
    tpu.vector_store %arg12[%c56_160, %c0_161], %697 {strides = array<i32>} : memref<64x128xf32, #tpu.memory_space<vmem>>, vector<8x128xf32>,
    %cst_162 = arith.constant 0.000000e+00 : f32
    %699 = vector.shape_cast %687 : vector<8x1xi1> to vector<8x1xi1>
    %700 = vector.broadcast %699 : vector<8x1xi1> to vector<8x128xi1>
    %701 = vector.broadcast %cst_162 : f32 to vector<8x128xf32>
    %702 = arith.select %700, %683, %701 : vector<8x128xi1>, vector<8x128xf32>
    %c0_163 = arith.constant 0 : index
    %c0_164 = arith.constant 0 : index
    %703 = vector.load %arg13[%c0_163, %c0_164] : memref<64x128xf32, #tpu.memory_space<vmem>>, vector<8x128xf32>
    tpu.vector_store %arg13[%c0_163, %c0_164], %702 {strides = array<i32>} : memref<64x128xf32, #tpu.memory_space<vmem>>, vector<8x128xf32>,
    %c0_165 = arith.constant 0 : index
    %c0_166 = arith.constant 0 : index
    %c0_167 = arith.constant 0 : index
    %704 = vector.load %arg15[%c0_165, %c0_166, %c0_167] : memref<2x8x128xf32, #tpu.memory_space<vmem>>, vector<1x8x128xf32>
    %705 = vector.shape_cast %704 : vector<1x8x128xf32> to vector<8x128xf32>
    %706 = vector.shape_cast %690 : vector<8x128xf32> to vector<1x8x128xf32>
    tpu.vector_store %arg15[%c0_165, %c0_166, %c0_167], %706 {strides = array<i32>} : memref<2x8x128xf32, #tpu.memory_space<vmem>>, vector<1x8x128xf32>,
    %c1_168 = arith.constant 1 : index
    %c0_169 = arith.constant 0 : index
    %c0_170 = arith.constant 0 : index
    %707 = vector.load %arg15[%c1_168, %c0_169, %c0_170] : memref<2x8x128xf32, #tpu.memory_space<vmem>>, vector<1x8x128xf32>
    %708 = vector.shape_cast %707 : vector<1x8x128xf32> to vector<8x128xf32>
    %709 = vector.shape_cast %693 : vector<8x128xf32> to vector<1x8x128xf32>
    tpu.vector_store %arg15[%c1_168, %c0_169, %c0_170], %709 {strides = array<i32>} : memref<2x8x128xf32, #tpu.memory_space<vmem>>, vector<1x8x128xf32>,
    %c1_i32_171 = arith.constant 1 : i32
    %710 = arith.cmpi eq, %arg0, %c1_i32_171 : i32
    %711 = arith.extui %710 : i1 to i32
    %c0_i32_172 = arith.constant 0 : i32
    %712 = arith.cmpi ne, %711, %c0_i32_172 : i32
    scf.if %712 {
      %c0_173 = arith.constant 0 : index
      %c0_174 = arith.constant 0 : index
      %c0_175 = arith.constant 0 : index
      %713 = vector.load %arg15[%c0_173, %c0_174, %c0_175] : memref<2x8x128xf32, #tpu.memory_space<vmem>>, vector<2x8x128xf32>
      %c0_176 = arith.constant 0 : index
      %c0_177 = arith.constant 0 : index
      %c0_178 = arith.constant 0 : index
      %714 = vector.load %arg14[%c0_176, %c0_177, %c0_178] : memref<2x8x128xf32, #tpu.memory_space<vmem>>, vector<2x8x128xf32>
      tpu.vector_store %arg14[%c0_176, %c0_177, %c0_178], %713 {strides = array<i32>} : memref<2x8x128xf32, #tpu.memory_space<vmem>>, vector<2x8x128xf32>,
    } else {
    }
    return
  }
  func.func @transform_0(%arg0: i32) -> (i32, i32) {
    %c0_i32 = arith.constant 0 : i32
    %c0_i32_0 = arith.constant 0 : i32
    return %arg0, %c0_i32 : i32, i32
  }
  func.func @transform_1(%arg0: i32) -> (i32, i32) {
    %c1_i32 = arith.constant 1 : i32
    %0 = arith.subi %c1_i32, %arg0 : i32
    %c0_i32 = arith.constant 0 : i32
    %c0_i32_0 = arith.constant 0 : i32
    return %0, %c0_i32 : i32, i32
  }
  func.func @transform_2(%arg0: i32) -> (i32, i32) {
    %c0_i32 = arith.constant 0 : i32
    %c0_i32_0 = arith.constant 0 : i32
    %c0_i32_1 = arith.constant 0 : i32
    return %c0_i32, %c0_i32_0 : i32, i32
  }
  func.func @transform_3(%arg0: i32) -> (i32, i32) {
    %c0_i32 = arith.constant 0 : i32
    %c0_i32_0 = arith.constant 0 : i32
    %c0_i32_1 = arith.constant 0 : i32
    return %c0_i32, %c0_i32_0 : i32, i32
  }
  func.func @transform_4(%arg0: i32) -> (i32, i32) {
    %c0_i32 = arith.constant 0 : i32
    %c0_i32_0 = arith.constant 0 : i32
    %c0_i32_1 = arith.constant 0 : i32
    return %c0_i32, %c0_i32_0 : i32, i32
  }
  func.func @transform_5(%arg0: i32) -> (i32, i32) {
    %c0_i32 = arith.constant 0 : i32
    %c0_i32_0 = arith.constant 0 : i32
    %c0_i32_1 = arith.constant 0 : i32
    return %c0_i32, %c0_i32_0 : i32, i32
  }
  func.func @transform_6(%arg0: i32) -> (i32, i32) {
    %c0_i32 = arith.constant 0 : i32
    %c0_i32_0 = arith.constant 0 : i32
    %c0_i32_1 = arith.constant 0 : i32
    return %c0_i32, %c0_i32_0 : i32, i32
  }
  func.func @transform_7(%arg0: i32) -> (i32, i32) {
    %c0_i32 = arith.constant 0 : i32
    %c0_i32_0 = arith.constant 0 : i32
    %c0_i32_1 = arith.constant 0 : i32
    return %c0_i32, %c0_i32_0 : i32, i32
  }
  func.func @transform_8(%arg0: i32) -> (i32, i32) {
    %c0_i32 = arith.constant 0 : i32
    %c0_i32_0 = arith.constant 0 : i32
    %c0_i32_1 = arith.constant 0 : i32
    return %c0_i32, %c0_i32_0 : i32, i32
  }
  func.func @transform_9(%arg0: i32) -> (i32, i32) {
    %c0_i32 = arith.constant 0 : i32
    %c0_i32_0 = arith.constant 0 : i32
    %c0_i32_1 = arith.constant 0 : i32
    return %c0_i32, %c0_i32_0 : i32, i32
  }
  func.func @transform_10(%arg0: i32) -> (i32, i32) {
    %c0_i32 = arith.constant 0 : i32
    %c0_i32_0 = arith.constant 0 : i32
    %c0_i32_1 = arith.constant 0 : i32
    return %c0_i32, %c0_i32_0 : i32, i32
  }
  func.func @transform_11(%arg0: i32) -> (i32, i32) {
    %c0_i32 = arith.constant 0 : i32
    %c0_i32_0 = arith.constant 0 : i32
    return %arg0, %c0_i32 : i32, i32
  }
  func.func @transform_12(%arg0: i32) -> (i32, i32) {
    %c1_i32 = arith.constant 1 : i32
    %0 = arith.subi %c1_i32, %arg0 : i32
    %c0_i32 = arith.constant 0 : i32
    %c0_i32_0 = arith.constant 0 : i32
    return %0, %c0_i32 : i32, i32
  }
  func.func @transform_13(%arg0: i32) -> (i32, i32, i32) {
    %c0_i32 = arith.constant 0 : i32
    %c0_i32_0 = arith.constant 0 : i32
    %c0_i32_1 = arith.constant 0 : i32
    %c0_i32_2 = arith.constant 0 : i32
    return %c0_i32, %c0_i32_0, %c0_i32_1 : i32, i32, i32
  }
}

</mosaic_0001>

<bundles_post_ra>
// kernel: tpu_custom_call.1
= control target key start
LH: loop header
LB: loop body
LE: loop exit
PB: predicated region body
PF: predicated region fallthrough
CT: control target
= control target key end

     0   :  { %s8684_s0 = inlined_call_operand.hbm [shape: f32[128,128], index: 0, kind: input, shape index: {}]   ;;  %s8685_s1 = inlined_call_operand.hbm [shape: f32[128,128], index: 1, kind: input, shape index: {}]   ;;  %s8686_s2 = inlined_call_operand.hbm [shape: f32[128,384], index: 2, kind: input, shape index: {}]   ;;  %s8687_s3 = inlined_call_operand.hbm [shape: f32[128,384], index: 3, kind: input, shape index: {}]   ;;  %s8688_s4 = inlined_call_operand.hbm [shape: f32[128,384], index: 4, kind: input, shape index: {}]   ;;  %s8689_s5 = inlined_call_operand.hbm [shape: f32[128,384], index: 5, kind: input, shape index: {}]   ;;  %s8690_s6 = inlined_call_operand.vmem [shape: f32[1,384], index: 6, kind: input, shape index: {}]   ;;  %s8691_s7 = inlined_call_operand.vmem [shape: f32[1,384], index: 7, kind: input, shape index: {}]   ;;  %s8692_s8 = inlined_call_operand.vmem [shape: f32[1,128], index: 8, kind: input, shape index: {}]   ;;  %s8693_s9 = inlined_call_operand.vmem [shape: f32[1,128], index: 9, kind: input, shape index: {}]   ;;  %s8694_s10 = inlined_call_operand.vmem [shape: s32[8,1], index: 10, kind: input, shape index: {}]   ;;  %s8695_s11 = inlined_call_operand.hbm [shape: f32[128,128], index: 11, kind: output, shape index: {0}]   ;;  %s8696_s12 = inlined_call_operand.hbm [shape: f32[128,128], index: 12, kind: output, shape index: {1}]   ;;  %s8697_s13 = inlined_call_operand.hbm [shape: f32[2,8,128], index: 13, kind: output, shape index: {2}]  }
   0x1   :  { %8754 = sst [smem:[#allocation54_spill]] %s8684_s0 }
   0x2   :  { %8755 = sst [smem:[#allocation55_spill]] %s8685_s1 }
   0x3   :  { %8756 = sst [smem:[#allocation56_spill]] %s8686_s2 }
   0x4   :  { %8757 = sst [smem:[#allocation57_spill]] %s8687_s3 }
   0x5   :  { %8758 = sst [smem:[#allocation58_spill]] %s8688_s4 }
   0x6   :  { %8759 = sst [smem:[#allocation59_spill]] %s8689_s5 }
   0x7   :  { %8760 = sst [smem:[#allocation60_spill]] %s8690_s6 }
   0x8   :  { %8761 = sst [smem:[#allocation61_spill]] %s8691_s7 }
   0x9   :  { %8762 = sst [smem:[#allocation62_spill]] %s8692_s8 }
   0xa   :  { %8763 = sst [smem:[#allocation63_spill]] %s8693_s9 }
   0xb   :  { %8764 = sst [smem:[#allocation64_spill]] %s8694_s10 }
   0xc   :  { %8765 = sst [smem:[#allocation65_spill]] %s8695_s11 }
   0xd   :  { %8766 = sst [smem:[#allocation66_spill]] %s8696_s12 }
   0xe   :  { %8767 = sst [smem:[#allocation67_spill]] %s8697_s13 }
   0xf   :  { %19 = vsyncpa [#allocation4], 0 }
  0x10   :  { %21 = vsyncpa [#allocation4 + $0x1], 0 }
  0x11   :  { %22 = vsyncpa [#allocation7], 0 }
  0x12   :  { %24 = vsyncpa [#allocation7 + $0x1], 0 }
  0x13   :  { %25 = vsyncpa [#allocation10], 0 }
  0x14   :  { %26 = vsyncpa [#allocation13], 0 }
  0x15   :  { %27 = vsyncpa [#allocation5], 0 }
  0x16   :  { %29 = vsyncpa [#allocation5 + $0x1], 0 }
  0x17   :  { %30 = vsyncpa [#allocation16], 0 }
  0x18   :  { %32 = vsyncpa [#allocation16 + $0x1], 0  ;;  %s7163_s25 = smov 0   ;;  %s7165_s26 = smov 0  }
  0x19   :  { %s7167_s27 = smov 0   ;;  %s7169_s28 = smov 0  }
  0x1a   :  { %s7171_s29 = smov 0   ;;  %s7173_s30 = smov 0  }
  0x1b   :  { %s7175_s14 = smov 0  }
  0x1c LB: > { %s7199_s15 = sadd.s32 4294967295, %s7071_s14   ;;  %p8702_p0 = scmp.ne.s32.totalorder %s7051_s26, %s7047_s25  ;;  %s7071_s14 = sphi %s7175_s14, %s8939_s14   ;;  %s7067_s30 = sphi %s7173_s30, %s8938_s30   ;;  %s7063_s29 = sphi %s7171_s29, %s8937_s29   ;;  %s7059_s28 = sphi %s7169_s28, %s8936_s28   ;;  %s7055_s27 = sphi %s7167_s27, %s8935_s27   ;;  %s7051_s26 = sphi %s7165_s26, %s8934_s26   ;;  %s7047_s25 = sphi %s7163_s25, %s8933_s25  }
  0x1d   : > { %p8703_p1 = scmp.eq.s32.totalorder %s7199_s15, 0  ;;  %p4299_p3 = scmp.ge.s32.totalorder %s7071_s14, 1 }
  0x1e   : > { %p361_p4 = scmp.lt.s32.totalorder %s7071_s14, 3  ;;  %s7073_s18 = smov [#allocation8]  }
  0x1f   : > { %p7212_p5 = por %p8702_p0, %p8703_p1  ;;  %s373_s19 = sshll.u32 %s7073_s18, 4  ;;  %s374_s19 = int_to_ptr.vmem [resolvable:$true] %s373_s19 }
  0x20   : > { %p7217_p7 = pnand %p4299_p3, %p361_p4  ;;  %s7074_s21 = smov [#allocation9]  }
  0x21   : > { %s8768_s16 = scalar_select %p7212_p5, 1, 0 }
  0x22   : > { %s8770_s17 = scalar_select %p7217_p7, 1, 0 }
  0x23   : > { %8769 = sst [smem:[#allocation26_spill]] %s8768_s16  ;;  %p6456_p8 = pneg %p7217_p7 }
  0x24   : > { %s386_s22 = sshll.u32 %s7074_s21, 4  ;;  %s8772_s2 = sld [smem:[#allocation56_spill]]  ;;  %s7230_s22 = int_to_ptr.vmem [resolvable:$true] %s386_s22 }
  0x25   : > { %p7226_p10 = pnand %p6456_p8, %p8703_p1 }
  0x27   : > { %p7240_p12 = pneg %p7226_p10 }
  0x2a   : > { %s6731_s13 = scalar_lea.hbm %s8772_s2, 6144 }
  0x2b   : > { %p6732_p11 = scmp.ne.s32.totalorder %s8772_s2, %s6731_s13  ;;  %p6738_p4 = scmp.lt.u32.totalorder %s6731_s13, %s8772_s2 }
  0x2d   : > { %p6734_p13 = pnand %p7240_p12, %p6732_p11 }
  0x2f   : > { %p6735_p3 = pneg %p6734_p13 }
  0x31   : > { %p6740_p8 = pnand %p6738_p4, %p6735_p3 }
  0x33   : > { %6743 = shalt.err (!%p6740_p8)
}
  0x34   : > { %s6744_s23 = scalar_lea.vmem %s374_s19, 6144  ;;  %p6752_p1 = scmp.lt.s32.totalorder %s374_s19, %s374_s19 }
  0x35   : > { %p6745_p9 = scmp.ne.s32.totalorder %s374_s19, %s6744_s23  ;;  %p6753_p2 = scmp.lt.s32.totalorder %s6744_s23, %s6744_s23 }
  0x37   : > { %p6747_p6 = pnand %p6745_p9, %p7240_p12  ;;  %p6754_p5 = por %p6753_p2, %p6752_p1 }
  0x39   : > { %p6748_p0 = pneg %p6747_p6 }
  0x3b   : > { %p6755_p7 = pnand %p6754_p5, %p6748_p0 }
  0x3d   : > { %6758 = shalt.err (!%p6755_p7)
}
  0x3e   : > { %s7075_s11 = smov 384   ;;  %s7076_s24 = smov 24  }
  0x3f   : > { %6459 = dma.hbm_to_vmem [thread:$0]  (!%p7226_p10), %s8772_s2, 6144, %s374_s19, [#allocation7], %s7075_s11, %s7075_s11, %s7076_s24  }
  0x40   : > { %s8774_s3 = sld [smem:[#allocation57_spill]] }
  0x46   : > { %s6759_s8 = scalar_lea.hbm %s8774_s3, 6144 }
  0x47   : > { %p6760_p0 = scmp.ne.s32.totalorder %s8774_s3, %s6759_s8  ;;  %p6766_p5 = scmp.lt.u32.totalorder %s6759_s8, %s8774_s3 }
  0x49   : > { %p6762_p1 = pnand %p6760_p0, %p7240_p12 }
  0x4b   : > { %p6763_p2 = pneg %p6762_p1 }
  0x4d   : > { %p6768_p6 = pnand %p6766_p5, %p6763_p2 }
  0x4f   : > { %6771 = shalt.err (!%p6768_p6)
}
  0x50   : > { %s6772_s19 = scalar_lea.vmem %s7230_s22, 6144  ;;  %p6780_p13 = scmp.lt.s32.totalorder %s7230_s22, %s7230_s22 }
  0x51   : > { %p6773_p7 = scmp.ne.s32.totalorder %s7230_s22, %s6772_s19  ;;  %p6781_p3 = scmp.lt.s32.totalorder %s6772_s19, %s6772_s19 }
  0x53   : > { %p6775_p9 = pnand %p6773_p7, %p7240_p12  ;;  %p6782_p4 = por %p6781_p3, %p6780_p13 }
  0x55   : > { %p6776_p11 = pneg %p6775_p9 }
  0x57   : > { %p6783_p8 = pnand %p6782_p4, %p6776_p11 }
  0x59   : > { %6786 = shalt.err (!%p6783_p8)
}
  0x5a   : > { %6462 = dma.hbm_to_vmem [thread:$0]  (!%p7226_p10), %s8774_s3, 6144, %s7230_s22, [#allocation10], %s7075_s11, %s7075_s11, %s7076_s24  }
  0x5b   : > { %s7077_s8 = smov [#allocation11]   ;;  %s7078_s9 = smov [#allocation12]  }
  0x5c   : > { %s399_s10 = sshll.u32 %s7077_s8, 4  ;;  %s412_s13 = sshll.u32 %s7078_s9, 4  ;;  %s400_s10 = int_to_ptr.vmem [resolvable:$true] %s399_s10  ;;  %s413_s13 = int_to_ptr.vmem [resolvable:$true] %s412_s13 }
  0x5d   : > { %s8775_s4 = sld [smem:[#allocation58_spill]] }
  0x63   : > { %s6787_s23 = scalar_lea.hbm %s8775_s4, 6144 }
  0x64   : > { %p6788_p0 = scmp.ne.s32.totalorder %s8775_s4, %s6787_s23  ;;  %p6794_p5 = scmp.lt.u32.totalorder %s6787_s23, %s8775_s4 }
  0x66   : > { %p6790_p1 = pnand %p6788_p0, %p7240_p12 }
  0x68   : > { %p6791_p2 = pneg %p6790_p1 }
  0x6a   : > { %p6796_p6 = pnand %p6794_p5, %p6791_p2 }
  0x6c   : > { %6799 = shalt.err (!%p6796_p6)
}
  0x6d   : > { %s6800_s22 = scalar_lea.vmem %s400_s10, 6144  ;;  %p6808_p13 = scmp.lt.s32.totalorder %s400_s10, %s400_s10 }
  0x6e   : > { %p6801_p7 = scmp.ne.s32.totalorder %s400_s10, %s6800_s22  ;;  %p6809_p3 = scmp.lt.s32.totalorder %s6800_s22, %s6800_s22 }
  0x70   : > { %p6803_p9 = pnand %p6801_p7, %p7240_p12  ;;  %p6810_p4 = por %p6809_p3, %p6808_p13 }
  0x72   : > { %p6804_p11 = pneg %p6803_p9 }
  0x74   : > { %p6811_p8 = pnand %p6810_p4, %p6804_p11 }
  0x76   : > { %6814 = shalt.err (!%p6811_p8)
}
  0x77   : > { %6465 = dma.hbm_to_vmem [thread:$0]  (!%p7226_p10), %s8775_s4, 6144, %s400_s10, [#allocation10], %s7075_s11, %s7075_s11, %s7076_s24  }
  0x78   : > { %s8776_s5 = sld [smem:[#allocation59_spill]] }
  0x7e   : > { %s6815_s9 = scalar_lea.hbm %s8776_s5, 6144 }
  0x7f   : > { %p6816_p0 = scmp.ne.s32.totalorder %s8776_s5, %s6815_s9  ;;  %p6822_p5 = scmp.lt.u32.totalorder %s6815_s9, %s8776_s5 }
  0x81   : > { %p6818_p1 = pnand %p6816_p0, %p7240_p12 }
  0x83   : > { %p6819_p2 = pneg %p6818_p1 }
  0x85   : > { %p6824_p6 = pnand %p6822_p5, %p6819_p2 }
  0x87   : > { %6827 = shalt.err (!%p6824_p6)
}
  0x88   : > { %s6828_s6 = scalar_lea.vmem %s413_s13, 6144  ;;  %p6836_p13 = scmp.lt.s32.totalorder %s413_s13, %s413_s13 }
  0x89   : > { %p6829_p7 = scmp.ne.s32.totalorder %s413_s13, %s6828_s6  ;;  %p6837_p3 = scmp.lt.s32.totalorder %s6828_s6, %s6828_s6 }
  0x8b   : > { %p6831_p9 = pnand %p6829_p7, %p7240_p12  ;;  %p6838_p4 = por %p6837_p3, %p6836_p13 }
  0x8d   : > { %p6832_p11 = pneg %p6831_p9 }
  0x8f   : > { %p6839_p8 = pnand %p6838_p4, %p6832_p11 }
  0x91   : > { %6842 = shalt.err (!%p6839_p8)
}
  0x92   : > { %6468 = dma.hbm_to_vmem [thread:$0]  (!%p7226_p10), %s8776_s5, 6144, %s413_s13, [#allocation13], %s7075_s11, %s7075_s11, %s7076_s24  }
  0x93   : > { %s8712_s12 = sadd.s32 4294967294, %s7071_s14   ;;  %s45_s20 = sadd.s32 1, %s7067_s30 }
  0x94   : > { %p52_p12 = scmp.ne.s32.totalorder %s7067_s30, %s7063_s29  ;;  %p8710_p0 = scmp.eq.s32.totalorder %s7071_s14, 0 }
  0x95   : > { %p58_p1 = scmp.ne.s32.totalorder %s7063_s29, %s7059_s28  ;;  %p8777_p2 = scmp.eq.s32.totalorder %s7199_s15, 1 }
  0x96   : > { %p305_p6 = scmp.eq.s32.totalorder %s8712_s12, 1  ;;  %p54_p7 = por %p8710_p0, %p52_p12 }
  0x97   : > { %p7336_p5 = por %p8777_p2, %p52_p12  ;;  %p8779_p9 = scmp.eq.s32.totalorder %s7199_s15, 0 }
  0x98   : > { %p7350_p10 = por %p305_p6, %p58_p1  ;;  %p8782_p13 = scmp.ne.s32.totalorder %s7051_s26, %s7047_s25 }
  0x99   : > { %s8778_s2 = scalar_select %p7336_p5, 1, 0 }
  0x9a   : > { %p7346_p11 = por %p8779_p9, %p58_p1  ;;  %p7357_p3 = por %p305_p6, %p8782_p13 }
  0x9b   : > { %s8781_s11 = scalar_select %p7350_p10, 1, 0 }
  0x9c   : > { %s8783_s24 = scalar_select %p7357_p3, 1, 0 }
  0x9d   : > { %p8709_p4 = scmp.lt.s32.totalorder %s7071_s14, 2  ;;  %s441_s13 = sand.u32 1, %s7067_s30  }
  0x9e   : > { %s4305_s7 = sshll.u32 %s441_s13, 6  ;;  %s4368_s8 = sshll.u32 %s7071_s14, 10 }
  0x9f   : > { %s8784_s0 = sld [smem:[#allocation54_spill]]  ;;  %s445_s23 = scalar_lea.vmem [#allocation3], %s4305_s7 }
  0xa0   : > { %s452_s19 = sshll.u32 %s445_s23, 4  ;;  %p7373_p8 = pnand %p8709_p4, %p54_p7  ;;  %s7369_s19 = int_to_ptr.vmem [resolvable:$true] %s452_s19 }
  0xa1   : > { %s7377_s6 = scalar_lea.sflag [#allocation4], %s441_s13 }
  0xa2   : > { %p6845_p1 = pneg %p7373_p8 }
  0xa5   : > { %s7367_s21 = scalar_lea.hbm %s8784_s0, %s4368_s8  ;;  %s6848_s8 = scalar_lea.hbm %s8784_s0, 2048 }
  0xa6   : > { %s6843_s10 = scalar_lea.hbm %s7367_s21, 1024  ;;  %p6849_p7 = scmp.lt.u32.totalorder %s7367_s21, %s8784_s0 }
  0xa7   : > { %p6844_p12 = scmp.ne.s32.totalorder %s7367_s21, %s6843_s10  ;;  %p6850_p9 = scmp.lt.u32.totalorder %s6848_s8, %s6843_s10 }
  0xa8   : > { %p6852_p4 = scmp.lt.u32.totalorder %s6843_s10, %s7367_s21 }
  0xa9   : > { %p6846_p2 = pnand %p6845_p1, %p6844_p12  ;;  %p6851_p13 = por %p6850_p9, %p6849_p7 }
  0xab   : > { %p6847_p6 = pneg %p6846_p2  ;;  %p6853_p0 = por %p6852_p4, %p6851_p13 }
  0xad   : > { %p6854_p3 = pnand %p6853_p0, %p6847_p6 }
  0xaf   : > { %6857 = shalt.err (!%p6854_p3)
}
  0xb0   : > { %s6858_s13 = scalar_lea.vmem %s7369_s19, 1024  ;;  %s7079_s23 = smov [#allocation3]  }
  0xb1   : > { %p6859_p12 = scmp.ne.s32.totalorder %s7369_s19, %s6858_s13  ;;  %s6863_s22 = sshll.u32 %s7079_s23, 4  ;;  %s6864_s22 = int_to_ptr.vmem [resolvable:$false] %s6863_s22 }
  0xb2   : > { %s6865_s7 = scalar_lea.vmem %s6864_s22, 2048  ;;  %p6866_p5 = scmp.lt.s32.totalorder %s7369_s19, %s6864_s22 }
  0xb3   : > { %p6861_p2 = pnand %p6859_p12, %p6845_p1  ;;  %p6867_p7 = scmp.lt.s32.totalorder %s6865_s7, %s6858_s13 }
  0xb5   : > { %p6862_p10 = pneg %p6861_p2  ;;  %p6868_p9 = por %p6867_p7, %p6866_p5 }
  0xb7   : > { %p6869_p4 = pnand %p6868_p9, %p6862_p10 }
  0xb9   : > { %6872 = shalt.err (!%p6869_p4)
}
  0xba   : > { %s8713_s10 = smov 128   ;;  %s7081_s8 = smov 8  }
  0xbb   : > { %6472 = dma.hbm_to_vmem [thread:$0]  (!%p7373_p8), %s7367_s21, 1024, %s7369_s19, %s7377_s6, %s8713_s10, %s8713_s10, %s7081_s8  }
  0xbc   : > { %s7409_s9 = sadd.s32 1, %s7071_s14   ;;  %s68_s13 = ssub.s32 1, %s7071_s14 }
  0xbd   : > { %s42_s18 = ssub.s32 %s7071_s14, %s7409_s9  ;;  %s69_s23 = ssub.s32 1, %s7409_s9 }
  0xbe   : > { %p43_p0 = scmp.eq.s32.totalorder %s42_s18, 0  ;;  %s70_s22 = ssub.s32 %s68_s13, %s69_s23 }
  0xbf   : > { %s73_s7 = sadd.s32 1, %s7055_s27  ;;  %p71_p5 = scmp.eq.s32.totalorder %s70_s22, 0 }
  0xc0   : > { %s7419_s12 = scalar_select %p43_p0, %s7067_s30, %s45_s20  }
  0xc1   : > { %p80_p10 = scmp.ne.s32.totalorder %s7055_s27, %s7051_s26  ;;  %s462_s25 = sand.u32 1, %s7071_s14  }
  0xc2   : > { %s464_s0 = sand.u32 1, %s7055_s27   ;;  %p8786_p3 = scmp.eq.s32.totalorder %s7071_s14, 0 }
  0xc3   : > { %s7426_s3 = scalar_select %p71_p5, %s7055_s27, %s73_s7  }
  0xc4   : > { %p82_p8 = por %p80_p10, %p8786_p3  ;;  %p8787_p1 = scmp.eq.s32.totalorder %s7199_s15, 1 }
  0xc5   : > { %s4308_s19 = sshll.u32 %s464_s0, 6  ;;  %s4369_s6 = sshll.u32 %s68_s13, 10 }
  0xc6   : > { %p7432_p6 = por %p8787_p1, %p80_p10  ;;  %s8789_s1 = sld [smem:[#allocation55_spill]] }
  0xc7   : > { %s466_s22 = scalar_lea.vmem [#allocation6], %s4308_s19  ;;  %p8790_p13 = scmp.lt.s32.totalorder %s7071_s14, 2 }
  0xc8   : > { %s8788_s21 = scalar_select %p7432_p6, 1, 0 }
  0xc9   : > { %s474_s7 = sshll.u32 %s466_s22, 4  ;;  %p7445_p12 = pnand %p8790_p13, %p82_p8  ;;  %s7441_s7 = int_to_ptr.vmem [resolvable:$true] %s474_s7 }
  0xca   : > { %s7449_s0 = scalar_lea.sflag [#allocation7], %s462_s25 }
  0xcb   : > { %p6875_p7 = pneg %p7445_p12 }
  0xcc   : > { %s7439_s20 = scalar_lea.hbm %s8789_s1, %s4369_s6  ;;  %s6878_s18 = scalar_lea.hbm %s8789_s1, 2048 }
  0xcd   : > { %s6873_s13 = scalar_lea.hbm %s7439_s20, 1024  ;;  %p6879_p0 = scmp.lt.u32.totalorder %s7439_s20, %s8789_s1 }
  0xce   : > { %p6874_p2 = scmp.ne.s32.totalorder %s7439_s20, %s6873_s13  ;;  %p6880_p5 = scmp.lt.u32.totalorder %s6878_s18, %s6873_s13 }
  0xcf   : > { %p6882_p3 = scmp.lt.u32.totalorder %s6873_s13, %s7439_s20 }
  0xd0   : > { %p6876_p9 = pnand %p6875_p7, %p6874_p2  ;;  %p6881_p10 = por %p6880_p5, %p6879_p0 }
  0xd2   : > { %p6877_p4 = pneg %p6876_p9  ;;  %p6883_p8 = por %p6882_p3, %p6881_p10 }
  0xd4   : > { %p6884_p1 = pnand %p6883_p8, %p6877_p4 }
  0xd6   : > { %6887 = shalt.err (!%p6884_p1)
}
  0xd7   : > { %s6888_s25 = scalar_lea.vmem %s7441_s7, 1024  ;;  %s7082_s19 = smov [#allocation6]  }
  0xd8   : > { %p6889_p13 = scmp.ne.s32.totalorder %s7441_s7, %s6888_s25  ;;  %s6893_s6 = sshll.u32 %s7082_s19, 4  ;;  %s6894_s6 = int_to_ptr.vmem [resolvable:$false] %s6893_s6 }
  0xd9   : > { %s6895_s23 = scalar_lea.vmem %s6894_s6, 2048  ;;  %p6896_p6 = scmp.lt.s32.totalorder %s7441_s7, %s6894_s6 }
  0xda   : > { %p6891_p2 = pnand %p6889_p13, %p6875_p7  ;;  %p6897_p0 = scmp.lt.s32.totalorder %s6895_s23, %s6888_s25 }
  0xdc   : > { %p6892_p9 = pneg %p6891_p2  ;;  %p6898_p5 = por %p6897_p0, %p6896_p6 }
  0xde   : > { %p6899_p10 = pnand %p6898_p5, %p6892_p9 }
  0xe0   : > { %6902 = shalt.err (!%p6899_p10)
}
  0xe1   : > { %s8792_s13 = smov 128   ;;  %p8793_p7 = scmp.ne.s32.totalorder %s8770_s17, 0 }
  0xe2   : > { %6475 = dma.hbm_to_vmem [thread:$0]  (!%p7445_p12), %s7439_s20, 1024, %s7441_s7, %s7449_s0, %s8792_s13, %s8792_s13, %s7081_s8  }
  0xe3   : > { %486 = sbr.rel (%p8793_p7) target bundleno = 2575 (0xa0f), region = 64 }
  0xea   : > { %s7483_s18 = sand.u32 1, %s7063_s29  }
  0xeb   : > { %s4312_s22 = sshll.u32 %s7483_s18, 6  ;;  %s489_s25 = scalar_lea.sflag [#allocation4], %s7483_s18 }
  0xec   : > { %s7487_s19 = scalar_lea.vmem [#allocation3], %s4312_s22 }
  0xed   : > { %7014 = dma.done.wait (%p7346_p11), %s489_s25, 1024  }
  0xee   : > { %7016 = vsyncadd (%p7346_p11), %s489_s25, 4294966272  ;;  %s8794_s17 = sld [smem:[#allocation26_spill]]  ;;  %s497_s10 = sand.u32 1, %s7199_s15  }
  0xef   : > { %s499_s8 = sand.u32 1, %s7051_s26   ;;  %s498_s7 = scalar_lea.sflag [#allocation7], %s497_s10 }
  0xf0   : > { %s4313_s20 = sshll.u32 %s499_s8, 6 }
  0xf1   : > { %s7497_s0 = scalar_lea.vmem [#allocation6], %s4313_s20 }
  0xf4   : > { %p8795_p6 = scmp.ne.s32.totalorder %s8794_s17, 0 }
  0xf6   : > { %7018 = dma.done.wait (%p8795_p6), %s498_s7, 1024  }
  0xf7   : > { %7020 = vsyncadd (%p8795_p6), %s498_s7, 4294966272  ;;  %p8796_p12 = scmp.eq.s32.totalorder %s7199_s15, 0 }
  0xf9   : > { %7022 = dma.done.wait (%p8796_p12), [#allocation7], 6144   ;;  %p8797_p11 = pmov %p8796_p12 }
  0xfb   : > { %7024 = vsyncadd (%p8797_p11), [#allocation7], 4294961152  ;;  %p8798_p4 = pmov %p8797_p11 }
  0xfd   : > { %7026 = dma.done.wait (%p8798_p4), [#allocation10], 12288   ;;  %p8799_p3 = pmov %p8798_p4 }
  0xff   : > { %7028 = vsyncadd (%p8799_p3), [#allocation10], 4294955008  ;;  %p8800_p8 = pmov %p8799_p3 }
 0x100   : > { %p8801_p1 = pmov %p8799_p3 }
 0x101   : > { %7030 = dma.done.wait (%p8800_p8), [#allocation13], 6144  }
 0x102   : > { %7032 = vsyncadd (%p8801_p1), [#allocation13], 4294961152  ;;  %s7515_s16 = scalar_lea.vmem [#allocation14], %s4312_s22  ;;  %s7517_s6 = scalar_lea.vmem [#allocation15], %s4313_s20 }
 0x103   : > { %p8802_p13 = scmp.ne.s32.totalorder %s7199_s15, 0 }
 0x104   : > { %v7083_v0 = vmov (!%p8802_p13), 0.0  }
 0x105   : > { %579 = sbr.rel (%p8802_p13) target bundleno = 268 (0x10c), region = 92  ;;  %580 = vst [vmem:[#allocation2] sm:$0xff] (!%p8802_p13), %v7083_v0  ;;  %581 = vst [vmem:[#allocation2 + $0x8] sm:$0xff] (!%p8802_p13), %v7083_v0 }
 0x10c PF: > { %v594_v1 = vld [vmem:[#allocation8 + $0x8] sm:$0xff]  ;;  %v597_v2 = vld [vmem:[#allocation8 + $0x20] sm:$0xff]  ;;  %v596_v5 = vld [vmem:[#allocation8 + $0x18] sm:$0xff]  ;;  %v8715_v8 = vmov 0.0   ;;  %v8719_v45 = vmov 0   ;;  %s7553_s23 = sshll.u32 %s7199_s15, 3 }
 0x10d   : > { %v593_v3 = vld [vmem:[#allocation8] sm:$0xff]  ;;  %v5340_v4 = vpack.c.bf16 %v597_v2, %v594_v1  ;;  %v600_v6 = vld [vmem:[#allocation8 + $0x38] sm:$0xff]  ;;  %v603_v7 = vld [vmem:[#allocation8 + $0x50] sm:$0xff]  ;;  %722 = vmatprep.mubr.f32.mxu0 %v8715_v8  ;;  %6567 = vset.pattern.permute.xlu0 %v8719_v45  ;;  %s8803_s25 = sld [smem:[#allocation64_spill]]  ;;  %s1976_s20 = sadd.s32 2, %s7553_s23  ;;  %vm7087_vm2 = vmmov 0  }
 0x10e   : > { %v5342_v9 = vpack.c.bf16 %v596_v5, %v593_v3  ;;  %v5344_v10 = vpack.c.bf16 %v603_v7, %v600_v6  ;;  %v599_v11 = vld [vmem:[#allocation8 + $0x30] sm:$0xff]  ;;  %v602_v12 = vld [vmem:[#allocation8 + $0x48] sm:$0xff]  ;;  %v609_v14 = vld [vmem:[#allocation8 + $0x80] sm:$0xff]  ;;  %6568 = vset.pattern.permute.xlu1 %v8719_v45  ;;  %s2324_s7 = sadd.s32 3, %s7553_s23  ;;  %s3020_s13 = sadd.s32 5, %s7553_s23 }
 0x10f   : > { %v606_v13 = vld [vmem:[#allocation8 + $0x68] sm:$0xff]  ;;  %5341 = vmatprep.subr.bf16.mxu0 %v5340_v4  ;;  %v5346_v15 = vpack.c.bf16 %v602_v12, %v599_v11  ;;  %v605_v17 = vld [vmem:[#allocation8 + $0x60] sm:$0xff]  ;;  %v608_v18 = vld [vmem:[#allocation8 + $0x78] sm:$0xff]  ;;  %s3368_s22 = sadd.s32 6, %s7553_s23  ;;  %p4357_p2 = scmp.ne.s32.totalorder %s7199_s15, 1 }
 0x110   : > { %5343 = vmatpush1.bf16.msra.mxu0 %v5342_v9  ;;  %v5348_v16 = vpack.c.bf16 %v609_v14, %v606_v13  ;;  %v612_v19 = vld [vmem:[#allocation8 + $0x98] sm:$0xff]  ;;  %v615_v20 = vld [vmem:[#allocation8 + $0xb0] sm:$0xff]  ;;  %v5350_v21 = vpack.c.bf16 %v608_v18, %v605_v17  ;;  %v614_v24 = vld [vmem:[#allocation8 + $0xa8] sm:$0xff] }
 0x111   : > { %5345 = vmatprep.subr.bf16.mxu0 %v5344_v10  ;;  %v611_v22 = vld [vmem:[#allocation8 + $0x90] sm:$0xff]  ;;  %v5352_v23 = vpack.c.bf16 %v615_v20, %v612_v19  ;;  %v598_v26 = vld [vmem:[#allocation8 + $0x28] sm:$0xff]  ;;  %v621_v28 = vld [vmem:[#allocation8 + $0xe0] sm:$0xff] }
 0x112   : > { %v595_v25 = vld [vmem:[#allocation8 + $0x10] sm:$0xff]  ;;  %v618_v27 = vld [vmem:[#allocation8 + $0xc8] sm:$0xff]  ;;  %v601_v30 = vld [vmem:[#allocation8 + $0x40] sm:$0xff]  ;;  %v5354_v32 = vpack.c.bf16 %v614_v24, %v611_v22 }
 0x113   : > { %v5372_v29 = vpack.c.bf16 %v598_v26, %v595_v25  ;;  %v604_v31 = vld [vmem:[#allocation8 + $0x58] sm:$0xff]  ;;  %v617_v33 = vld [vmem:[#allocation8 + $0xc0] sm:$0xff]  ;;  %v5356_v36 = vpack.c.bf16 %v621_v28, %v618_v27  ;;  %v607_v38 = vld [vmem:[#allocation8 + $0x70] sm:$0xff] }
 0x114   : > { %5347 = vmatpush1.bf16.msra.mxu0 %v5346_v15  ;;  %v620_v34 = vld [vmem:[#allocation8 + $0xd8] sm:$0xff]  ;;  %v5376_v35 = vpack.c.bf16 %v604_v31, %v601_v30  ;;  %v7523_v37 = vld [vmem:[%s7487_s19] sm:$0xff]  ;;  %v610_v39 = vld [vmem:[#allocation8 + $0x88] sm:$0xff] }
 0x115   : > { %5349 = vmatprep.subr.bf16.mxu0 %v5348_v16  ;;  %5373 = vmatprep.subr.bf16.mxu1 %v5372_v29  ;;  %v624_v40 = vld [vmem:[#allocation8 + $0xf8] sm:$0xff]  ;;  %v627_v41 = vld [vmem:[#allocation8 + $0x110] sm:$0xff]  ;;  %v5380_v42 = vpack.c.bf16 %v610_v39, %v607_v38  ;;  %v613_v43 = vld [vmem:[#allocation8 + $0xa0] sm:$0xff]  ;;  %v5358_v46 = vpack.c.bf16 %v620_v34, %v617_v33 }
 0x116   : > { %5375 = vmatpush3.bf16.msra.mxu1 %v5372_v29  ;;  %4724 = vmatprep.mubr.f32.mxu1 %v7523_v37  ;;  %v616_v44 = vld [vmem:[#allocation8 + $0xb8] sm:$0xff]  ;;  %v5360_v47 = vpack.c.bf16 %v627_v41, %v624_v40  ;;  %v623_v48 = vld [vmem:[#allocation8 + $0xf0] sm:$0xff]  ;;  %v626_v49 = vld [vmem:[#allocation8 + $0x108] sm:$0xff] }
 0x117   : > { %5377 = vmatprep.subr.bf16.mxu1 %v5376_v35  ;;  %v630_v50 = vld [vmem:[#allocation8 + $0x128] sm:$0xff]  ;;  %v633_v51 = vld [vmem:[#allocation8 + $0x140] sm:$0xff]  ;;  %v5384_v52 = vpack.c.bf16 %v616_v44, %v613_v43  ;;  %v619_v53 = vld [vmem:[#allocation8 + $0xd0] sm:$0xff]  ;;  %v5362_v55 = vpack.c.bf16 %v626_v49, %v623_v48 }
 0x118   : > { %5351 = vmatpush1.bf16.msra.mxu0 %v5350_v21  ;;  %v622_v54 = vld [vmem:[#allocation8 + $0xe8] sm:$0xff]  ;;  %v5364_v56 = vpack.c.bf16 %v633_v51, %v630_v50  ;;  %v629_v57 = vld [vmem:[#allocation8 + $0x120] sm:$0xff]  ;;  %v632_v58 = vld [vmem:[#allocation8 + $0x138] sm:$0xff] }
 0x119   : > { %5353 = vmatprep.subr.bf16.mxu0 %v5352_v23  ;;  %v636_v59 = vld [vmem:[#allocation8 + $0x158] sm:$0xff]  ;;  %v639_v60 = vld [vmem:[#allocation8 + $0x170] sm:$0xff]  ;;  %v5388_v61 = vpack.c.bf16 %v622_v54, %v619_v53  ;;  %v625_v62 = vld [vmem:[#allocation8 + $0x100] sm:$0xff]  ;;  %v5366_v0 = vpack.c.bf16 %v632_v58, %v629_v57 }
 0x11a   : > { %5379 = vmatpush3.bf16.msra.mxu1 %v5376_v35  ;;  %v628_v63 = vld [vmem:[#allocation8 + $0x118] sm:$0xff]  ;;  %v5368_v1 = vpack.c.bf16 %v639_v60, %v636_v59  ;;  %v635_v2 = vld [vmem:[#allocation8 + $0x150] sm:$0xff]  ;;  %v638_v3 = vld [vmem:[#allocation8 + $0x168] sm:$0xff] }
 0x11b   : > { %5381 = vmatprep.subr.bf16.mxu1 %v5380_v42  ;;  %v885_v4 = vld [vmem:[#allocation9 + $0x8] sm:$0xff]  ;;  %v888_v5 = vld [vmem:[#allocation9 + $0x20] sm:$0xff]  ;;  %v5392_v6 = vpack.c.bf16 %v628_v63, %v625_v62  ;;  %v631_v7 = vld [vmem:[#allocation8 + $0x130] sm:$0xff]  ;;  %v5370_v10 = vpack.c.bf16 %v638_v3, %v635_v2 }
 0x11c   : > { %5355 = vmatpush1.bf16.msra.mxu0 %v5354_v32  ;;  %v634_v9 = vld [vmem:[#allocation8 + $0x148] sm:$0xff]  ;;  %v5404_v11 = vpack.c.bf16 %v888_v5, %v885_v4  ;;  %v884_v12 = vld [vmem:[#allocation9] sm:$0xff]  ;;  %v887_v13 = vld [vmem:[#allocation9 + $0x18] sm:$0xff] }
 0x11d   : > { %5357 = vmatprep.subr.bf16.mxu0 %v5356_v36  ;;  %v891_v14 = vld [vmem:[#allocation9 + $0x38] sm:$0xff]  ;;  %v894_v15 = vld [vmem:[#allocation9 + $0x50] sm:$0xff]  ;;  %v5396_v16 = vpack.c.bf16 %v634_v9, %v631_v7  ;;  %v637_v17 = vld [vmem:[#allocation8 + $0x160] sm:$0xff]  ;;  %v5406_v19 = vpack.c.bf16 %v887_v13, %v884_v12 }
 0x11e   : > { %5383 = vmatpush3.bf16.msra.mxu1 %v5380_v42  ;;  %v640_v18 = vld [vmem:[#allocation8 + $0x178] sm:$0xff]  ;;  %v5408_v20 = vpack.c.bf16 %v894_v15, %v891_v14  ;;  %v890_v21 = vld [vmem:[#allocation9 + $0x30] sm:$0xff]  ;;  %v893_v22 = vld [vmem:[#allocation9 + $0x48] sm:$0xff] }
 0x11f   : > { %5385 = vmatprep.subr.bf16.mxu1 %v5384_v52  ;;  %v897_v23 = vld [vmem:[#allocation9 + $0x68] sm:$0xff]  ;;  %v900_v24 = vld [vmem:[#allocation9 + $0x80] sm:$0xff]  ;;  %v5400_v25 = vpack.c.bf16 %v640_v18, %v637_v17  ;;  %v886_v26 = vld [vmem:[#allocation9 + $0x10] sm:$0xff]  ;;  %v5410_v29 = vpack.c.bf16 %v893_v22, %v890_v21 }
 0x120   : > { %5359 = vmatpush1.bf16.msra.mxu0 %v5358_v46  ;;  %v889_v27 = vld [vmem:[#allocation9 + $0x28] sm:$0xff]  ;;  %v5412_v30 = vpack.c.bf16 %v900_v24, %v897_v23  ;;  %v896_v31 = vld [vmem:[#allocation9 + $0x60] sm:$0xff]  ;;  %v899_v32 = vld [vmem:[#allocation9 + $0x78] sm:$0xff] }
 0x121   : > { %5361 = vmatprep.subr.bf16.mxu0 %v5360_v47  ;;  %v586_v28 = vld [vmem:[%s7487_s19 + $0x8] sm:$0xff]  ;;  %v903_v33 = vld [vmem:[#allocation9 + $0x98] sm:$0xff]  ;;  %v906_v34 = vld [vmem:[#allocation9 + $0xb0] sm:$0xff]  ;;  %v5436_v35 = vpack.c.bf16 %v889_v27, %v886_v26 }
 0x122   : > { %5387 = vmatpush3.bf16.msra.mxu1 %v5384_v52  ;;  %v587_v36 = vld [vmem:[%s7487_s19 + $0x10] sm:$0xff]  ;;  %v892_v38 = vld [vmem:[#allocation9 + $0x40] sm:$0xff]  ;;  %v895_v39 = vld [vmem:[#allocation9 + $0x58] sm:$0xff]  ;;  %v5416_v40 = vpack.c.bf16 %v906_v34, %v903_v33 }
 0x123   : > { %5389 = vmatprep.subr.bf16.mxu1 %v5388_v61  ;;  %v902_v41 = vld [vmem:[#allocation9 + $0x90] sm:$0xff]  ;;  %v905_v42 = vld [vmem:[#allocation9 + $0xa8] sm:$0xff]  ;;  %v912_v44 = vld [vmem:[#allocation9 + $0xe0] sm:$0xff]  ;;  %v5440_v46 = vpack.c.bf16 %v895_v39, %v892_v38 }
 0x124   : > { %5363 = vmatpush1.bf16.msra.mxu0 %v5362_v55  ;;  %v909_v43 = vld [vmem:[#allocation9 + $0xc8] sm:$0xff]  ;;  %v588_v47 = vld [vmem:[%s7487_s19 + $0x18] sm:$0xff]  ;;  %v5418_v48 = vpack.c.bf16 %v905_v42, %v902_v41  ;;  %v898_v49 = vld [vmem:[#allocation9 + $0x70] sm:$0xff] }
 0x125   : > { %5365 = vmatprep.subr.bf16.mxu0 %v5364_v56  ;;  %v901_v50 = vld [vmem:[#allocation9 + $0x88] sm:$0xff]  ;;  %v5420_v51 = vpack.c.bf16 %v912_v44, %v909_v43  ;;  %v908_v52 = vld [vmem:[#allocation9 + $0xc0] sm:$0xff]  ;;  %v911_v53 = vld [vmem:[#allocation9 + $0xd8] sm:$0xff] }
 0x126   : > { %5391 = vmatpush3.bf16.msra.mxu1 %v5388_v61  ;;  %v915_v54 = vld [vmem:[#allocation9 + $0xf8] sm:$0xff]  ;;  %v918_v55 = vld [vmem:[#allocation9 + $0x110] sm:$0xff]  ;;  %v5444_v56 = vpack.c.bf16 %v901_v50, %v898_v49  ;;  %v589_v57 = vld [vmem:[%s7487_s19 + $0x20] sm:$0xff]  ;;  %v5422_v58 = vpack.c.bf16 %v911_v53, %v908_v52 }
 0x127   : > { %5393 = vmatprep.subr.bf16.mxu1 %v5392_v6  ;;  %v904_v59 = vld [vmem:[#allocation9 + $0xa0] sm:$0xff]  ;;  %v907_v60 = vld [vmem:[#allocation9 + $0xb8] sm:$0xff]  ;;  %v5424_v61 = vpack.c.bf16 %v918_v55, %v915_v54  ;;  %v914_v62 = vld [vmem:[#allocation9 + $0xf0] sm:$0xff] }
 0x128   : > { %5367 = vmatpush1.bf16.msra.mxu0 %v5366_v0  ;;  %v917_v63 = vld [vmem:[#allocation9 + $0x108] sm:$0xff]  ;;  %v5448_v2 = vpack.c.bf16 %v907_v60, %v904_v59  ;;  %v910_v5 = vld [vmem:[#allocation9 + $0xd0] sm:$0xff]  ;;  %v927_v12 = vld [vmem:[#allocation9 + $0x158] sm:$0xff] }
 0x129   : > { %5369 = vmatprep.subr.bf16.mxu0 %v5368_v1  ;;  %v921_v0 = vld [vmem:[#allocation9 + $0x128] sm:$0xff]  ;;  %v924_v1 = vld [vmem:[#allocation9 + $0x140] sm:$0xff]  ;;  %v5426_v4 = vpack.c.bf16 %v917_v63, %v914_v62  ;;  %v591_v7 = vld [vmem:[%s7487_s19 + $0x30] sm:$0xff] }
 0x12a   : > { %5395 = vmatpush3.bf16.msra.mxu1 %v5392_v6  ;;  %v590_v3 = vld [vmem:[%s7487_s19 + $0x28] sm:$0xff]  ;;  %v5428_v9 = vpack.c.bf16 %v924_v1, %v921_v0  ;;  %v930_v13 = vld [vmem:[#allocation9 + $0x170] sm:$0xff]  ;;  %v916_v17 = vld [vmem:[#allocation9 + $0x100] sm:$0xff]  ;;  %v8717_v1 = vmov 0.0|0.0  }
 0x12b   : > { %5397 = vmatprep.subr.bf16.mxu1 %v5396_v16  ;;  %v913_v6 = vld [vmem:[#allocation9 + $0xe8] sm:$0xff]  ;;  %v919_v18 = vld [vmem:[#allocation9 + $0x118] sm:$0xff]  ;;  %v876_v22 = vld [vmem:[%s7497_s0] sm:$0xff] }
 0x12c   : > { %5371 = vmatpush1.bf16.msra.mxu0 %v5370_v10  ;;  %v920_v10 = vld [vmem:[#allocation9 + $0x120] sm:$0xff]  ;;  %v5452_v14 = vpack.c.bf16 %v913_v6, %v910_v5  ;;  %v929_v21 = vld [vmem:[#allocation9 + $0x168] sm:$0xff]  ;;  %v922_v27 = vld [vmem:[#allocation9 + $0x130] sm:$0xff] }
 0x12d   : > { %5405 = vmatprep.subr.bf16.mxu0 %v5404_v11  ;;  %v923_v11 = vld [vmem:[#allocation9 + $0x138] sm:$0xff]  ;;  %v1168_v23 = vld [vmem:[#allocation11 + $0x8] sm:$0xff]  ;;  %v1171_v24 = vld [vmem:[#allocation11 + $0x20] sm:$0xff] }
 0x12e   : > { %5399 = vmatpush3.bf16.msra.mxu1 %v5396_v16  ;;  %v5430_v15 = vpack.c.bf16 %v923_v11, %v920_v10  ;;  %v592_v16 = vld [vmem:[%s7487_s19 + $0x38] sm:$0xff]  ;;  %v1177_v33 = vld [vmem:[#allocation11 + $0x50] sm:$0xff]  ;;  %v1180_v41 = vld [vmem:[#allocation11 + $0x68] sm:$0xff]  ;;  %s1267_s19 = ssub.s32 1, %s7199_s15 }
 0x12f   : > { %723 = vmatmul.mubr.f32.vlgmr.msra.gmra.mrb[0].mxu0 %v7523_v37  ;;  %5401 = vmatprep.subr.bf16.mxu1 %v5400_v25  ;;  %v5414_v37 = vpack.c.bf16 %v899_v32, %v896_v31  ;;  %v1170_v31 = vld [vmem:[#allocation11 + $0x18] sm:$0xff]  ;;  %v1173_v39 = vld [vmem:[#allocation11 + $0x30] sm:$0xff]  ;;  %v1183_v42 = vld [vmem:[#allocation11 + $0x80] sm:$0xff]  ;;  %s7596_s17 = sshll.u32 %s1267_s19, 3 }
 0x130   : > { %5407 = vmatpush1.bf16.msra.mxu0 %v5406_v19  ;;  %728 = vmatprep.mubr.f32.mxu0 %v8715_v8  ;;  %v5432_v19 = vpack.c.bf16 %v930_v13, %v927_v12  ;;  %v1174_v32 = vld [vmem:[#allocation11 + $0x38] sm:$0xff]  ;;  %v877_v44 = vld [vmem:[%s7497_s0 + $0x8] sm:$0xff]  ;;  %v1179_v49 = vld [vmem:[#allocation11 + $0x60] sm:$0xff]  ;;  %s1269_s8 = sadd.s32 7, %s7596_s17 }
 0x131   : > { %5409 = vmatprep.subr.bf16.mxu0 %v5408_v20  ;;  %v926_v20 = vld [vmem:[#allocation9 + $0x150] sm:$0xff]  ;;  %v7550_v38 = vpack.c.bf16 %v1177_v33, %v1174_v32  ;;  %v1182_v50 = vld [vmem:[#allocation11 + $0x78] sm:$0xff]  ;;  %v1172_v55 = vld [vmem:[#allocation11 + $0x28] sm:$0xff] }
 0x132   : > { %5403 = vmatpush3.bf16.msra.mxu1 %v5400_v25  ;;  %v5456_v25 = vpack.c.bf16 %v919_v18, %v916_v17  ;;  %v5434_v26 = vpack.c.bf16 %v929_v21, %v926_v20  ;;  %v1189_v52 = vld [vmem:[#allocation11 + $0xb0] sm:$0xff]  ;;  %v1192_v62 = vld [vmem:[#allocation11 + $0xc8] sm:$0xff]  ;;  %v1195_v63 = vld [vmem:[#allocation11 + $0xe0] sm:$0xff] }
 0x133   : > { %729 = vmatmul.mubr.f32.gmra.mrb[2].mxu0 %v586_v28  ;;  %5437 = vmatprep.subr.bf16.mxu1 %v5436_v35  ;;  %v7567_v53 = vld [vmem:[%s8803_s25] sm:$0xff]  ;;  %v7589_v6 = vpack.c.bf16 %v1195_v63, %v1192_v62  ;;  %v1198_v10 = vld [vmem:[#allocation11 + $0xf8] sm:$0xff]  ;;  %v1204_v20 = vld [vmem:[#allocation11 + $0x128] sm:$0xff]  ;;  %s3716_s25 = sadd.s32 7, %s7553_s23 }
 0x134   : > { %5411 = vmatpush1.bf16.msra.mxu0 %v5410_v29  ;;  %734 = vmatprep.mubr.f32.mxu0 %v8715_v8  ;;  %v7544_v29 = vpack.c.bf16 %v1171_v24, %v1168_v23  ;;  %v1169_v54 = vld [vmem:[#allocation11 + $0x10] sm:$0xff]  ;;  %v1207_v21 = vld [vmem:[#allocation11 + $0x140] sm:$0xff]  ;;  %v1190_v24 = vld [vmem:[#allocation11 + $0xb8] sm:$0xff] }
 0x135   : > { %5413 = vmatprep.subr.bf16.mxu0 %v5412_v30  ;;  %4725 = vmatmul.mubr.f32.vlgmr.msra.gmra.mrb[0].mxu1 %v586_v28  ;;  %v925_v28 = vld [vmem:[#allocation9 + $0x148] sm:$0xff]  ;;  %v1167_v30 = vld [vmem:[#allocation11] sm:$0xff]  ;;  %v1185_v60 = vld [vmem:[#allocation11 + $0x90] sm:$0xff]  ;;  %v7579_v0 = vpack.c.bf16 %v1172_v55, %v1169_v54 }
 0x136   : > { %5439 = vmatpush3.bf16.msra.mxu1 %v5436_v35  ;;  %4727 = vmatprep.mubr.f32.mxu1 %v587_v36  ;;  %v5460_v34 = vpack.c.bf16 %v925_v28, %v922_v27  ;;  %v7547_v35 = vpack.c.bf16 %v1170_v31, %v1167_v30  ;;  %v1201_v11 = vld [vmem:[#allocation11 + $0x110] sm:$0xff]  ;;  %v1187_v23 = vld [vmem:[#allocation11 + $0xa0] sm:$0xff]  ;;  %v1610_v27 = vstv %s1269_s8  ;;  %v7619_v30 = vpack.c.bf16 %v1207_v21, %v1204_v20  ;;  %v1206_v32 = vld [vmem:[#allocation11 + $0x138] sm:$0xff]  ;;  %s3021_s8 = sadd.s32 2, %s7596_s17 }
 0x137   : > { %735 = vmatmul.mubr.f32.gmra.mrb[4].mxu0 %v587_v36  ;;  %5441 = vmatprep.subr.bf16.mxu1 %v5440_v46  ;;  %v928_v36 = vld [vmem:[#allocation9 + $0x160] sm:$0xff]  ;;  %v1181_v13 = vld [vmem:[#allocation11 + $0x70] sm:$0xff]  ;;  %v7605_v17 = vpack.c.bf16 %v1201_v11, %v1198_v10  ;;  %v1210_v33 = vld [vmem:[#allocation11 + $0x158] sm:$0xff]  ;;  %vm1611_vm1 = vcmp.gt.s32.totalorder %v7567_v53, %v1610_v27 }
 0x138   : > { %5415 = vmatpush1.bf16.msra.mxu0 %v5414_v37  ;;  %740 = vmatprep.mubr.f32.mxu0 %v8715_v8  ;;  %v931_v37 = vld [vmem:[#allocation9 + $0x178] sm:$0xff]  ;;  %v1197_v18 = vld [vmem:[#allocation11 + $0xf0] sm:$0xff]  ;;  %8806 = vst [vmem:[#allocation29_spill] sm:$0xff] %v7619_v30  ;;  %v1203_v31 = vld [vmem:[#allocation11 + $0x120] sm:$0xff] }
 0x139   : > { %5417 = vmatprep.subr.bf16.mxu0 %v5416_v40  ;;  %4728 = vmatmul.mubr.f32.gmra.mrb[2].mxu1 %v588_v47  ;;  %v1176_v40 = vld [vmem:[#allocation11 + $0x48] sm:$0xff]  ;;  %v5464_v43 = vpack.c.bf16 %v931_v37, %v928_v36  ;;  %8804 = vst [vmem:[#allocation27_spill] sm:$0xff] %v7605_v17  ;;  %v882_v28 = vld [vmem:[%s7497_s0 + $0x30] sm:$0xff]  ;;  %v7623_v36 = vpack.c.bf16 %v1190_v24, %v1187_v23  ;;  %v1199_v54 = vld [vmem:[#allocation11 + $0x100] sm:$0xff] }
 0x13a   : > { %5443 = vmatpush3.bf16.msra.mxu1 %v5440_v46  ;;  %4730 = vmatprep.mubr.f32.mxu1 %v589_v57  ;;  %v7558_v46 = vpack.c.bf16 %v1176_v40, %v1173_v39  ;;  %v1193_v37 = vld [vmem:[#allocation11 + $0xd0] sm:$0xff]  ;;  %v1196_v39 = vld [vmem:[#allocation11 + $0xe8] sm:$0xff]  ;;  %v7629_v40 = vpack.c.bf16 %v1206_v32, %v1203_v31  ;;  %v1202_v55 = vld [vmem:[#allocation11 + $0x118] sm:$0xff] }
 0x13b   : > { %741 = vmatmul.mubr.f32.gmra.mrb[6].mxu0 %v588_v47  ;;  %5445 = vmatprep.subr.bf16.mxu1 %v5444_v56  ;;  %v1608_v47 = vstv %s7553_s23  ;;  %v1218_v62 = vld [vmem:[#allocation12 + $0x18] sm:$0xff]  ;;  %v7662_v10 = vld [vmem:[#allocation2] sm:$0xff]  ;;  %v1231_v20 = vld [vmem:[#allocation12 + $0x80] sm:$0xff] }
 0x13c   : > { %5419 = vmatpush1.bf16.msra.mxu0 %v5418_v48  ;;  %746 = vmatprep.mubr.f32.mxu0 %v8715_v8  ;;  %v7562_v48 = vpack.c.bf16 %v1183_v42, %v1180_v41  ;;  %vm1609_vm0 = vcmp.gt.s32.totalorder %v7567_v53, %v1608_v47  ;;  %8807 = vst [vmem:[#allocation30_spill] sm:$0xff] %v7629_v40  ;;  %v883_v41 = vld [vmem:[%s7497_s0 + $0x38] sm:$0xff]  ;;  %v2304_v42 = vstv %s1976_s20  ;;  %v1212_v47 = vld [vmem:[#allocation11 + $0x168] sm:$0xff]  ;;  %v1211_v24 = vld [vmem:[#allocation11 + $0x160] sm:$0xff]  ;;  %s3369_s20 = sadd.s32 1, %s7596_s17 }
 0x13d   : > { %5421 = vmatprep.subr.bf16.mxu0 %v5420_v51  ;;  %4731 = vmatmul.mubr.f32.gmra.mrb[4].mxu1 %v590_v3  ;;  %v1186_v51 = vld [vmem:[#allocation11 + $0x98] sm:$0xff]  ;;  %vm2305_vm3 = vcmp.gt.s32.totalorder %v7567_v53, %v2304_v42  ;;  %v1227_v31 = vld [vmem:[#allocation12 + $0x60] sm:$0xff]  ;;  %v1217_v42 = vld [vmem:[#allocation12 + $0x10] sm:$0xff] }
 0x13e   : > { %5447 = vmatpush3.bf16.msra.mxu1 %v5444_v56  ;;  %4733 = vmatprep.mubr.f32.mxu1 %v591_v7  ;;  %v878_v56 = vld [vmem:[%s7497_s0 + $0x10] sm:$0xff]  ;;  %v7577_v59 = vpack.c.bf16 %v1189_v52, %v1186_v51  ;;  %v7637_v51 = vpack.c.bf16 %v1196_v39, %v1193_v37  ;;  %v1618_v52 = vsel %vm1611_vm1, 1, %v8719_v45  ;;  %v1222_v63 = vld [vmem:[#allocation12 + $0x38] sm:$0xff] }
 0x13f   : > { %747 = vmatmul.mubr.f32.gmra.mrb[8].mxu0 %v589_v57  ;;  %5449 = vmatprep.subr.bf16.mxu1 %v5448_v2  ;;  %v7573_v57 = vpack.c.bf16 %v1182_v50, %v1179_v49  ;;  %v1216_v49 = vld [vmem:[#allocation12 + $0x8] sm:$0xff]  ;;  %v1219_v50 = vld [vmem:[#allocation12 + $0x20] sm:$0xff]  ;;  %v1230_v32 = vld [vmem:[#allocation12 + $0x78] sm:$0xff] }
 0x140   : > { %5423 = vmatpush1.bf16.msra.mxu0 %v5422_v58  ;;  %752 = vmatprep.mubr.f32.mxu0 %v8715_v8  ;;  %v1612_v58 = vsel %vm1609_vm0, 1, %v8719_v45 }
 0x141   : > { %5425 = vmatprep.subr.bf16.mxu0 %v5424_v61  ;;  %4734 = vmatmul.mubr.f32.gmra.mrb[6].mxu1 %v592_v16  ;;  %v1188_v61 = vld [vmem:[#allocation11 + $0xa8] sm:$0xff] }
 0x142   : > { %5451 = vmatpush3.bf16.msra.mxu1 %v5448_v2  ;;  %4768 = vmatprep.mubr.f32.mxu1 %v876_v22  ;;  %v1175_v2 = vld [vmem:[#allocation11 + $0x40] sm:$0xff]  ;;  %v7586_v5 = vpack.c.bf16 %v1188_v61, %v1185_v60  ;;  %v7651_v60 = vpack.c.bf16 %v1219_v50, %v1216_v49  ;;  %v1233_v50 = vld [vmem:[#allocation12 + $0x90] sm:$0xff] }
 0x143   : > { %753 = vmatmul.mubr.f32.gmra.mrb[10].mxu0 %v590_v3  ;;  %5453 = vmatprep.subr.bf16.mxu1 %v5452_v14  ;;  %v1178_v3 = vld [vmem:[#allocation11 + $0x58] sm:$0xff]  ;;  %v1215_v61 = vld [vmem:[#allocation12] sm:$0xff] }
 0x144   : > { %5427 = vmatpush1.bf16.msra.mxu0 %v5426_v4  ;;  %758 = vmatprep.mubr.f32.mxu0 %v8715_v8  ;;  %v879_v4 = vld [vmem:[%s7497_s0 + $0x18] sm:$0xff]  ;;  %v7592_v12 = vpack.c.bf16 %v1178_v3, %v1175_v2  ;;  %8810 = vst [vmem:[#allocation33_spill] sm:$0xff] %v7651_v60  ;;  %v1225_v2 = vld [vmem:[#allocation12 + $0x50] sm:$0xff]  ;;  %v7655_v3 = vpack.c.bf16 %v1202_v55, %v1199_v54  ;;  %v1240_v54 = vld [vmem:[#allocation12 + $0xc8] sm:$0xff] }
 0x145   : > { %5429 = vmatprep.subr.bf16.mxu0 %v5428_v9  ;;  %1614 = vperm.xlu0 %6567, %v1612_v58   ;;  %v1194_v9 = vld [vmem:[#allocation11 + $0xd8] sm:$0xff]  ;;  %v2652_v58 = vstv %s2324_s7  ;;  %v7664_v11 = vpack.c.bf16 %v1218_v62, %v1215_v61  ;;  %v1243_v55 = vld [vmem:[#allocation12 + $0xe0] sm:$0xff]  ;;  %v3696_v61 = vstv %s3368_s22  ;;  %s8814_s7 = sld [smem:[#allocation60_spill]]  ;;  %s1977_s22 = sadd.s32 5, %s7596_s17 }
 0x146   : > { %5455 = vmatpush3.bf16.msra.mxu1 %v5452_v14  ;;  %v1184_v14 = vld [vmem:[#allocation11 + $0x88] sm:$0xff]  ;;  %8811 = vst [vmem:[#allocation34_spill] sm:$0xff] %v7655_v3  ;;  %vm2653_vm4 = vcmp.gt.s32.totalorder %v7567_v53, %v2652_v58  ;;  %v1223_v62 = vld [vmem:[#allocation12 + $0x40] sm:$0xff]  ;;  %vm3697_vm7 = vcmp.gt.s32.totalorder %v7567_v53, %v3696_v61 }
 0x147   : > { %759 = vmatmul.mubr.f32.gmra.mrb[12].mxu0 %v591_v7  ;;  %5457 = vmatprep.subr.bf16.mxu1 %v5456_v25  ;;  %v1191_v7 = vld [vmem:[#allocation11 + $0xc0] sm:$0xff]  ;;  %v2656_v23 = vsel %vm2653_vm4, 1, %v8719_v45 }
 0x148   : > { %5431 = vmatpush1.bf16.msra.mxu0 %v5430_v15  ;;  %764 = vmatprep.mubr.f32.mxu0 %v8715_v8  ;;  %v880_v15 = vld [vmem:[%s7497_s0 + $0x20] sm:$0xff] }
 0x149   : > { %5433 = vmatprep.subr.bf16.mxu0 %v5432_v19  ;;  %v1200_v19 = vld [vmem:[#allocation11 + $0x108] sm:$0xff]  ;;  %1620 = vperm.xlu0 %6567, %v1618_v52   ;;  %v1251_v61 = vld [vmem:[#allocation12 + $0x120] sm:$0xff] }
 0x14a   : > { %5459 = vmatpush3.bf16.msra.mxu1 %v5456_v25  ;;  %v881_v25 = vld [vmem:[%s7497_s0 + $0x28] sm:$0xff]  ;;  %s2672_s0 = sadd.s32 4, %s7553_s23 }
 0x14b   : > { %765 = vmatmul.mubr.f32.gmra.mrb[14].mxu0 %v592_v16  ;;  %5461 = vmatprep.subr.bf16.mxu1 %v5460_v34  ;;  %v7602_v16 = vpack.c.bf16 %v1194_v9, %v1191_v7  ;;  %v1205_v7 = vld [vmem:[#allocation11 + $0x130] sm:$0xff]  ;;  %v1208_v9 = vld [vmem:[#allocation11 + $0x148] sm:$0xff] }
 0x14c   : > { %5435 = vmatpush1.bf16.msra.mxu0 %v5434_v26  ;;  %1013 = vmatprep.mubr.f32.mxu0 %v8715_v8  ;;  %v7615_v26 = vpack.c.bf16 %v1200_v19, %v1197_v18  ;;  %v1224_v18 = vld [vmem:[#allocation12 + $0x48] sm:$0xff]  ;;  %v7670_v21 = vpack.c.bf16 %v1208_v9, %v1205_v7  ;;  %v7707_v7 = vpack.c.bf16 %v1243_v55, %v1240_v54  ;;  %v1239_v9 = vld [vmem:[#allocation12 + $0xc0] sm:$0xff] }
 0x14d   : > { %5469 = vmatprep.subr.bf16.mxu0 %v7544_v29  ;;  %v1228_v19 = vld [vmem:[#allocation12 + $0x68] sm:$0xff] }
 0x14e   : > { %5463 = vmatpush3.bf16.msra.mxu1 %v5460_v34  ;;  %8805 = vst [vmem:[#allocation28_spill] sm:$0xff] %v7615_v26  ;;  %v1213_v34 = vld [vmem:[#allocation11 + $0x170] sm:$0xff]  ;;  %8812 = vst [vmem:[#allocation35_spill] sm:$0xff] %v7670_v21  ;;  %v1236_v52 = vld [vmem:[#allocation12 + $0xa8] sm:$0xff] }
 0x14f   : > { %1014 = vmatmul.mubr.f32.vlgmr.msra.gmra.mrb[16].mxu0 %v876_v22  ;;  %5465 = vmatprep.subr.bf16.mxu1 %v5464_v43  ;;  %v7609_v22 = vpack.c.bf16 %v1184_v14, %v1181_v13  ;;  %v3000_v13 = vstv %s2672_s0  ;;  %v7667_v14 = vpack.c.bf16 %v1225_v2, %v1222_v63  ;;  %v1226_v63 = vld [vmem:[#allocation12 + $0x58] sm:$0xff]  ;;  %v7703_v2 = vpack.c.bf16 %v1236_v52, %v1233_v50  ;;  %s1628_s0 = sadd.s32 1, %s7553_s23  ;;  %s2325_s23 = sadd.s32 4, %s7596_s17 }
 0x150   : > { %5471 = vmatpush1.bf16.msra.mxu0 %v7547_v35  ;;  %1019 = vmatprep.mubr.f32.mxu0 %v8715_v8  ;;  %vm3001_vm5 = vcmp.gt.s32.totalorder %v7567_v53, %v3000_v13  ;;  %v1242_v13 = vld [vmem:[#allocation12 + $0xd8] sm:$0xff] }
 0x151   : > { %5473 = vmatprep.subr.bf16.mxu0 %v7550_v38  ;;  %v3004_v39 = vsel %vm3001_vm5, 1, %v8719_v45  ;;  %v1238_v50 = vld [vmem:[#allocation12 + $0xb8] sm:$0xff] }
 0x152   : > { %5467 = vmatpush3.bf16.msra.mxu1 %v5464_v43  ;;  %v7633_v43 = vpack.c.bf16 %v1213_v34, %v1210_v33  ;;  %v1234_v33 = vld [vmem:[#allocation12 + $0x98] sm:$0xff]  ;;  %v1237_v34 = vld [vmem:[#allocation12 + $0xb0] sm:$0xff] }
 0x153   : > { %1020 = vmatmul.mubr.f32.gmra.mrb[18].mxu0 %v877_v44  ;;  %5500 = vmatprep.subr.bf16.mxu1 %v8717_v1  ;;  %v7694_v49 = vpack.c.bf16 %v1237_v34, %v1234_v33  ;;  %v1245_v33 = vld [vmem:[#allocation12 + $0xf0] sm:$0xff]  ;;  %v1248_v34 = vld [vmem:[#allocation12 + $0x108] sm:$0xff] }
 0x154   : > { %5475 = vmatpush1.bf16.msra.mxu0 %v7558_v46  ;;  %1025 = vmatprep.mubr.f32.mxu0 %v8715_v8  ;;  %8808 = vst [vmem:[#allocation31_spill] sm:$0xff] %v7633_v43  ;;  %v7730_v52 = vpack.c.bf16 %v1248_v34, %v1245_v33  ;;  %v1247_v33 = vld [vmem:[#allocation12 + $0x100] sm:$0xff]  ;;  %v1250_v34 = vld [vmem:[#allocation12 + $0x118] sm:$0xff] }
 0x155   : > { %5477 = vmatprep.subr.bf16.mxu0 %v7562_v48  ;;  %4769 = vmatmul.mubr.f32.vlgmr.msra.gmra.mrb[8].mxu1 %v877_v44  ;;  %v1209_v44 = vld [vmem:[#allocation11 + $0x150] sm:$0xff] }
 0x156   : > { %5502 = vmatpush3.bf16.msra.mxu1 %v7579_v0  ;;  %4771 = vmatprep.mubr.f32.mxu1 %v878_v56 }
 0x157   : > { %1026 = vmatmul.mubr.f32.gmra.mrb[20].mxu0 %v878_v56  ;;  %5503 = vmatprep.subr.bf16.mxu1 %v8717_v1  ;;  %v7648_v56 = vpack.c.bf16 %v1212_v47, %v1209_v44  ;;  %v1220_v44 = vld [vmem:[#allocation12 + $0x28] sm:$0xff]  ;;  %v7691_v47 = vpack.c.bf16 %v1230_v32, %v1227_v31  ;;  %v3700_v31 = vsel %vm3697_vm7, 1, %v8719_v45 }
 0x158   : > { %5479 = vmatpush1.bf16.msra.mxu0 %v7573_v57  ;;  %1031 = vmatprep.mubr.f32.mxu0 %v8715_v8  ;;  %v7698_v58 = vpack.c.bf16 %v1220_v44, %v1217_v42  ;;  %v1235_v44 = vld [vmem:[#allocation12 + $0xa0] sm:$0xff] }
 0x159   : > { %5481 = vmatprep.subr.bf16.mxu0 %v7577_v59  ;;  %4772 = vmatmul.mubr.f32.gmra.mrb[10].mxu1 %v879_v4  ;;  %8809 = vst [vmem:[#allocation32_spill] sm:$0xff] %v7648_v56 }
 0x15a   : > { %5505 = vmatpush3.bf16.msra.mxu1 %v7592_v12  ;;  %4774 = vmatprep.mubr.f32.mxu1 %v880_v15 }
 0x15b   : > { %1032 = vmatmul.mubr.f32.gmra.mrb[22].mxu0 %v879_v4  ;;  %5506 = vmatprep.subr.bf16.mxu1 %v8717_v1  ;;  %v2308_v4 = vsel %vm2305_vm3, 1, %v8719_v45 }
 0x15c   : > { %5483 = vmatpush1.bf16.msra.mxu0 %v7586_v5  ;;  %1037 = vmatprep.mubr.f32.mxu0 %v8715_v8 }
 0x15d   : > { %5485 = vmatprep.subr.bf16.mxu0 %v7589_v6  ;;  %4775 = vmatmul.mubr.f32.gmra.mrb[12].mxu1 %v881_v25 }
 0x15e   : > { %5508 = vmatpush3.bf16.msra.mxu1 %v7609_v22  ;;  %4777 = vmatprep.mubr.f32.mxu1 %v882_v28 }
 0x15f   : > { %1038 = vmatmul.mubr.f32.gmra.mrb[24].mxu0 %v880_v15  ;;  %5509 = vmatprep.subr.bf16.mxu1 %v8717_v1  ;;  %v1221_v15 = vld [vmem:[#allocation12 + $0x30] sm:$0xff] }
 0x160   : > { %5487 = vmatpush1.bf16.msra.mxu0 %v7602_v16  ;;  %1043 = vmatprep.mubr.f32.mxu0 %v8715_v8  ;;  %v7678_v27 = vpack.c.bf16 %v1224_v18, %v1221_v15  ;;  %v1246_v15 = vld [vmem:[#allocation12 + $0xf8] sm:$0xff]  ;;  %v1249_v18 = vld [vmem:[#allocation12 + $0x110] sm:$0xff] }
 0x161   : > { %5489 = vmatprep.subr.bf16.mxu0 %v7605_v17  ;;  %4778 = vmatmul.mubr.f32.gmra.mrb[14].mxu1 %v883_v41  ;;  %v7722_v32 = vpack.c.bf16 %v1249_v18, %v1246_v15  ;;  %v1244_v15 = vld [vmem:[#allocation12 + $0xe8] sm:$0xff] }
 0x162   : > { %5511 = vmatpush3.bf16.msra.mxu1 %v7623_v36  ;;  %4812 = vmatprep.mubr.msk.f32.mxu1 %vm7087_vm2, %v8715_v8 }
 0x163   : > { %1044 = vmatmul.mubr.f32.gmra.mrb[26].mxu0 %v881_v25  ;;  %5512 = vmatprep.subr.bf16.mxu1 %v8717_v1  ;;  %v1214_v25 = vld [vmem:[#allocation11 + $0x178] sm:$0xff] }
 0x164   : > { %5491 = vmatpush1.bf16.msra.mxu0 %v7615_v26  ;;  %1049 = vmatprep.mubr.f32.mxu0 %v8715_v8  ;;  %v7685_v37 = vpack.c.bf16 %v1214_v25, %v1211_v24  ;;  %v1232_v24 = vld [vmem:[#allocation12 + $0x88] sm:$0xff]  ;;  %v7718_v25 = vpack.c.bf16 %v1242_v13, %v1239_v9  ;;  %v7737_v9 = vpack.c.bf16 %v1238_v50, %v1235_v44  ;;  %v1241_v13 = vld [vmem:[#allocation12 + $0xd0] sm:$0xff] }
 0x165   : > { %5493 = vmatprep.subr.bf16.mxu0 %v7619_v30  ;;  %2310 = vperm.xlu0 %6567, %v2308_v4   ;;  %v1253_v44 = vld [vmem:[#allocation12 + $0x130] sm:$0xff]  ;;  %v1256_v50 = vld [vmem:[#allocation12 + $0x148] sm:$0xff] }
 0x166   : > { %5514 = vmatpush3.bf16.msra.mxu1 %v7637_v51  ;;  %8813 = vst [vmem:[#allocation36_spill] sm:$0xff] %v7685_v37 }
 0x167   : > { %1050 = vmatmul.mubr.f32.gmra.mrb[28].mxu0 %v882_v28  ;;  %5515 = vmatprep.subr.bf16.mxu1 %v8717_v1  ;;  %v7682_v28 = vpack.c.bf16 %v1231_v20, %v1228_v19  ;;  %v7712_v19 = vpack.c.bf16 %v1226_v63, %v1223_v62  ;;  %v4043_v20 = vstv %s3716_s25  ;;  %v1254_v62 = vld [vmem:[#allocation12 + $0x138] sm:$0xff]  ;;  %s2673_s25 = sadd.s32 3, %s7596_s17 }
 0x168   : > { %5495 = vmatpush1.bf16.msra.mxu0 %v7629_v40  ;;  %1055 = vmatprep.mubr.f32.mxu0 %v8715_v8  ;;  %vm4044_vm8 = vcmp.gt.s32.totalorder %v7567_v53, %v4043_v20  ;;  %v1258_v63 = vld [vmem:[#allocation12 + $0x158] sm:$0xff]  ;;  %v7741_v18 = vpack.c.bf16 %v1254_v62, %v1251_v61  ;;  %v7763_v61 = vpack.c.bf16 %v1256_v50, %v1253_v44  ;;  %v1259_v62 = vld [vmem:[#allocation12 + $0x160] sm:$0xff] }
 0x169   : > { %5497 = vmatprep.subr.bf16.mxu0 %v7633_v43  ;;  %2658 = vperm.xlu0 %6567, %v2656_v23   ;;  %v1229_v23 = vld [vmem:[#allocation12 + $0x70] sm:$0xff]  ;;  %v4047_v54 = vsel %vm4044_vm8, 1, %v8719_v45 }
 0x16a   : > { %5517 = vmatpush3.bf16.msra.mxu1 %v7655_v3  ;;  %v7726_v42 = vpack.c.bf16 %v1232_v24, %v1229_v23  ;;  %v1257_v23 = vld [vmem:[#allocation12 + $0x150] sm:$0xff]  ;;  %v1260_v24 = vld [vmem:[#allocation12 + $0x168] sm:$0xff] }
 0x16b   : > { %1056 = vmatmul.mubr.f32.gmra.mrb[30].mxu0 %v883_v41  ;;  %5518 = vmatprep.subr.bf16.mxu1 %v8717_v1  ;;  %v3348_v41 = vstv %s3020_s13  ;;  %s1629_s13 = sadd.s32 6, %s7596_s17 }
 0x16c   : > { %5499 = vmatpush1.bf16.msra.mxu0 %v7648_v56  ;;  %1334 = vmatprep.mubr.f32.mxu0 %v8715_v8  ;;  %vm3349_vm6 = vcmp.gt.s32.totalorder %v7567_v53, %v3348_v41  ;;  %v1255_v41 = vld [vmem:[#allocation12 + $0x140] sm:$0xff] }
 0x16d   : > { %5525 = vmatprep.subr.bf16.mxu0 %v7651_v60  ;;  %3006 = vperm.xlu0 %6567, %v3004_v39   ;;  %v3352_v4 = vsel %vm3349_vm6, 1, %v8719_v45  ;;  %v1252_v39 = vld [vmem:[#allocation12 + $0x128] sm:$0xff]  ;;  %v1956_v45 = vstv %s1628_s0 }
 0x16e   : > { %5520 = vmatpush3.bf16.msra.mxu1 %v7670_v21  ;;  %v7734_v55 = vpack.c.bf16 %v1255_v41, %v1252_v39  ;;  %v7751_v39 = vpack.c.bf16 %v1260_v24, %v1257_v23  ;;  %v7755_v41 = vpack.c.bf16 %v1250_v34, %v1247_v33  ;;  %v7815_v24 = vld [vmem:[%s8814_s7] sm:$0x7]  ;;  %vm1957_vm9 = vcmp.gt.s32.totalorder %v7567_v53, %v1956_v45 }
 0x16f   : > { %1335 = vmatmul.mubr.f32.vlgmr.msra.gmra.mrb[0].mxu0 %v7662_v10  ;;  %5521 = vmatprep.subr.bf16.mxu1 %v8717_v1 }
 0x170   : > { %5527 = vmatpush1.bf16.msra.mxu0 %v7664_v11  ;;  %1475 = vmatprep.mubr.f32.mxu0 %v8715_v8 }
 0x171   : > { %5529 = vmatprep.subr.bf16.mxu0 %v7667_v14  ;;  %3354 = vperm.xlu0 %6567, %v3352_v4   ;;  %v1261_v4 = vld [vmem:[#allocation12 + $0x170] sm:$0xff] }
 0x172   : > { %5523 = vmatpush3.bf16.msra.mxu1 %v7685_v37  ;;  %v7744_v20 = vpack.c.bf16 %v1261_v4, %v1258_v63  ;;  %v1262_v63 = vld [vmem:[#allocation12 + $0x178] sm:$0xff] }
 0x173   : > { %5556 = vmatprep.subr.bf16.mxu1 %v8717_v1  ;;  %v7771_v4 = vpack.c.bf16 %v1262_v63, %v1259_v62 }
 0x174   : > { %5531 = vmatpush1.bf16.msra.mxu0 %v7678_v27 }
 0x175   : > { %5533 = vmatprep.subr.bf16.mxu0 %v7682_v28  ;;  %4813 = vmatmul.mubr.f32.vlgmr.msra.gmra.mrb[16].mxu1 %v7662_v10 }
 0x176   : > { %5558 = vmatpush3.bf16.msra.mxu1 %v7698_v58  ;;  %4847 = vmatprep.mubr.msk.f32.mxu1 %vm7087_vm2, %v8715_v8 }
 0x177   : > { %5559 = vmatprep.subr.bf16.mxu1 %v8717_v1  ;;  %3702 = vperm.xlu0 %6567, %v3700_v31   ;;  %v7747_v31 = vpack.c.bf16 %v1244_v15, %v1241_v13  ;;  %v643_v13 = vlaneseq }
 0x178   : > { %5535 = vmatpush1.bf16.msra.mxu0 %v7691_v47 }
 0x179   : > { %5537 = vmatprep.subr.bf16.mxu0 %v7694_v49  ;;  %v7809_v15 = vshrl.u32 %v643_v13, 7 }
 0x17a   : > { %5561 = vmatpush3.bf16.msra.mxu1 %v7712_v19 }
 0x17b   : > { %5562 = vmatprep.subr.bf16.mxu1 %v8717_v1  ;;  %4049 = vperm.xlu0 %6567, %v4047_v54   ;;  %v7759_v54 = vld [vmem:[#allocation2 + $0x8] sm:$0xff]  ;;  %v653_v23 = vsub.s32 2, %v7809_v15 }
 0x17c   : > { %5539 = vmatpush1.bf16.msra.mxu0 %v7703_v2 }
 0x17d   : > { %5541 = vmatprep.subr.bf16.mxu0 %v7707_v7  ;;  %v7818_v33 = vrot.slane %v7815_v24, %v653_v23 }
 0x17e   : > { %5564 = vmatpush3.bf16.msra.mxu1 %v7726_v42 }
 0x17f   : > { %5565 = vmatprep.subr.bf16.mxu1 %v8717_v1 }
 0x180   : > { %5543 = vmatpush1.bf16.msra.mxu0 %v7718_v25 }
 0x181   : > { %5545 = vmatprep.subr.bf16.mxu0 %v7722_v32 }
 0x182   : > { %5567 = vmatpush3.bf16.msra.mxu1 %v7737_v9 }
 0x183   : > { %5568 = vmatprep.subr.bf16.mxu1 %v8717_v1 }
 0x184   : > { %5547 = vmatpush1.bf16.msra.mxu0 %v7730_v52 }
 0x185   : > { %5549 = vmatprep.subr.bf16.mxu0 %v7734_v55 }
 0x186   : > { %5570 = vmatpush3.bf16.msra.mxu1 %v7747_v31 }
 0x187   : > { %5571 = vmatprep.subr.bf16.mxu1 %v8717_v1 }
 0x188   : > { %5551 = vmatpush1.bf16.msra.mxu0 %v7741_v18 }
 0x189   : > { %5553 = vmatprep.subr.bf16.mxu0 %v7744_v20 }
 0x18a   : > { %5573 = vmatpush3.bf16.msra.mxu1 %v7755_v41 }
 0x18b   : > { %5574 = vmatprep.subr.bf16.mxu1 %v8717_v1 }
 0x18c   : > { %5555 = vmatpush1.bf16.msra.mxu0 %v7751_v39 }
 0x18d   : > { %5581 = vmatprep.subr.bf16.mxu0 %v7544_v29 }
 0x18e   : > { %5576 = vmatpush3.bf16.msra.mxu1 %v7763_v61 }
 0x18f   : > { %1476 = vmatmul.mubr.f32.vlgmr.msra.gmra.mrb[30].mxu0 %v7759_v54  ;;  %5577 = vmatprep.subr.bf16.mxu1 %v8717_v1 }
 0x190   : > { %5583 = vmatpush1.bf16.msra.mxu0 %v7547_v35  ;;  %1694 = vmatprep.mubr.f32.mxu0 %v8715_v8 }
 0x191   : > { %5585 = vmatprep.subr.bf16.mxu0 %v7550_v38 }
 0x192   : > { %5579 = vmatpush3.bf16.msra.mxu1 %v7771_v4 }
 0x193   : > { %5612 = vmatprep.subr.bf16.mxu1 %v8717_v1 }
 0x194   : > { %5587 = vmatpush1.bf16.msra.mxu0 %v7558_v46 }
 0x195   : > { %5589 = vmatprep.subr.bf16.mxu0 %v7562_v48  ;;  %4848 = vmatmul.mubr.f32.vlgmr.msra.gmra.mrb[18].mxu1 %v7759_v54 }
 0x196   : > { %5614 = vmatpush3.bf16.msra.mxu1 %v7579_v0  ;;  %4882 = vmatprep.mubr.msk.f32.mxu1 %vm7087_vm2, %v8715_v8 }
 0x197   : > { %5615 = vmatprep.subr.bf16.mxu1 %v8717_v1 }
 0x198   : > { %5591 = vmatpush1.bf16.msra.mxu0 %v7573_v57 }
 0x199   : > { %5593 = vmatprep.subr.bf16.mxu0 %v7577_v59 }
 0x19a   : > { %5617 = vmatpush3.bf16.msra.mxu1 %v7592_v12 }
 0x19b   : > { %5618 = vmatprep.subr.bf16.mxu1 %v8717_v1 }
 0x19c   : > { %5595 = vmatpush1.bf16.msra.mxu0 %v7586_v5 }
 0x19d   : > { %5597 = vmatprep.subr.bf16.mxu0 %v7589_v6 }
 0x19e   : > { %5620 = vmatpush3.bf16.msra.mxu1 %v7609_v22 }
 0x19f   : > { %5621 = vmatprep.subr.bf16.mxu1 %v8717_v1 }
 0x1a0   : > { %5599 = vmatpush1.bf16.msra.mxu0 %v7602_v16 }
 0x1a1   : > { %5601 = vmatprep.subr.bf16.mxu0 %v7605_v17 }
 0x1a2   : > { %5623 = vmatpush3.bf16.msra.mxu1 %v7623_v36 }
 0x1a3   : > { %5624 = vmatprep.subr.bf16.mxu1 %v8717_v1 }
 0x1a4   : > { %5603 = vmatpush1.bf16.msra.mxu0 %v7615_v26 }
 0x1a5   : > { %5605 = vmatprep.subr.bf16.mxu0 %v7619_v30 }
 0x1a6   : > { %5626 = vmatpush3.bf16.msra.mxu1 %v7637_v51 }
 0x1a7   : > { %5627 = vmatprep.subr.bf16.mxu1 %v8717_v1 }
 0x1a8   : > { %5607 = vmatpush1.bf16.msra.mxu0 %v7629_v40 }
 0x1a9   : > { %5609 = vmatprep.subr.bf16.mxu0 %v7633_v43 }
 0x1aa   : > { %5629 = vmatpush3.bf16.msra.mxu1 %v7655_v3 }
 0x1ab   : > { %5630 = vmatprep.subr.bf16.mxu1 %v8717_v1 }
 0x1ac   : > { %5611 = vmatpush1.bf16.msra.mxu0 %v7648_v56 }
 0x1ad   : > { %5637 = vmatprep.subr.bf16.mxu0 %v7651_v60  ;;  %v1958_v60 = vstv %s1629_s13  ;;  %s8823_s13 = sld [smem:[#allocation61_spill]] }
 0x1ae   : > { %5632 = vmatpush3.bf16.msra.mxu1 %v7670_v21  ;;  %vm1959_vm10 = vcmp.gt.s32.totalorder %v7567_v53, %v1958_v60  ;;  %v2654_v60 = vstv %s2325_s23  ;;  %s8833_s23 = sld [smem:[#allocation62_spill]] }
 0x1af   : > { %5633 = vmatprep.subr.bf16.mxu1 %v8717_v1  ;;  %vm2655_vm12 = vcmp.gt.s32.totalorder %v7567_v53, %v2654_v60 }
 0x1b2   : > { %5635 = vmatpush3.bf16.msra.mxu1 %v7685_v37 }
 0x1b3   : > { %5668 = vmatprep.subr.bf16.mxu1 %v8717_v1 }
 0x208   : > { %v4726_v34 = vpop.f32.mrb[0].mxu1 }
 0x209   : > { %v7821_v44 = vadd.f32 %v4726_v34, %v7818_v33  ;;  %v7823_v50 = vpop.f32.mrb[1].mxu1 }
 0x20b   : > { %8815 = vst [vmem:[#allocation37_spill] sm:$0xff] %v7821_v44 }
 0x20c   : > { %v4729_v62 = vpop.f32.mrb[2].mxu1 }
 0x20d   : > { %v7826_v63 = vadd.f32 %v4729_v62, %v7818_v33  ;;  %v847_v13 = vpop.f32.mrb[3].mxu1 }
 0x20e   : > { %v7829_v8 = vadd.f32 %v847_v13, %v7818_v33  ;;  %v8820_v13 = vmov 0  }
 0x20f   : > { %8816 = vst [vmem:[#allocation38_spill] sm:$0xff] %v7826_v63  ;;  %v1960_v63 = vsel %vm1957_vm9, 1, %v8820_v13  ;;  %v1966_v56 = vsel %vm1959_vm10, 1, %v8820_v13 }
 0x210   : > { %8817 = vst [vmem:[#allocation39_spill] sm:$0xff] %v7829_v8  ;;  %v4732_v1 = vpop.f32.mrb[4].mxu1  ;;  %v2306_v8 = vstv %s1977_s22  ;;  %1962 = vperm.xlu1 %6568, %v1960_v63   ;;  %v3002_v63 = vstv %s2673_s25 }
 0x211   : > { %v7835_v34 = vadd.f32 %v4732_v1, %v7818_v33  ;;  %v857_v44 = vpop.f32.mrb[5].mxu1  ;;  %vm2307_vm11 = vcmp.gt.s32.totalorder %v7567_v53, %v2306_v8  ;;  %vm3003_vm13 = vcmp.gt.s32.totalorder %v7567_v53, %v3002_v63  ;;  %v4045_v63 = vstv %s7596_s17 }
 0x212   : > { %v7840_v62 = vadd.f32 %v857_v44, %v7818_v33  ;;  %v2314_v44 = vsel %vm2307_vm11, 1, %v8820_v13  ;;  %v3010_v8 = vsel %vm3003_vm13, 1, %v8820_v13  ;;  %vm4046_vm0 = vcmp.gt.s32.totalorder %v7567_v53, %v4045_v63 }
 0x213   : > { %8818 = vst [vmem:[#allocation40_spill] sm:$0xff] %v7835_v34 }
 0x214   : > { %8819 = vst [vmem:[#allocation41_spill] sm:$0xff] %v7840_v62  ;;  %v4735_v37 = vpop.f32.mrb[6].mxu1  ;;  %1968 = vperm.xlu1 %6568, %v1966_v56   ;;  %v932_v56 = vld [vmem:[%s8823_s13] sm:$0x7] }
 0x215   : > { %v7846_v1 = vadd.f32 %v4735_v37, %v7818_v33  ;;  %v867_v34 = vpop.f32.mrb[7].mxu1  ;;  %v2662_v37 = vsel %vm2655_vm12, 1, %v8820_v13 }
 0x216   : > { %v7850_v45 = vadd.f32 %v867_v34, %v7818_v33  ;;  %v3698_v34 = vstv %s3369_s20  ;;  %s8837_s20 = sld [smem:[#allocation63_spill]] }
 0x217   : > { %8821 = vst [vmem:[#allocation42_spill] sm:$0xff] %v7846_v1  ;;  %v3350_v1 = vstv %s3021_s8  ;;  %vm3699_vm15 = vcmp.gt.s32.totalorder %v7567_v53, %v3698_v34 }
 0x218   : > { %8822 = vst [vmem:[#allocation43_spill] sm:$0xff] %v7850_v45  ;;  %2316 = vperm.xlu1 %6568, %v2314_v44   ;;  %vm3351_vm14 = vcmp.gt.s32.totalorder %v7567_v53, %v3350_v1  ;;  %v7865_v44 = vrot.slane %v932_v56, %v653_v23  ;;  %v3706_v45 = vsel %vm3699_vm15, 1, %v8820_v13  ;;  %v4053_v23 = vsel %vm4046_vm0, 1, %v8820_v13 }
 0x219   : > { %v3358_v60 = vsel %vm3351_vm14, 1, %v8820_v13 }
 0x21c   : > { %2664 = vperm.xlu1 %6568, %v2662_v37  }
 0x220   : > { %3012 = vperm.xlu1 %6568, %v3010_v8  }
 0x224   : > { %3360 = vperm.xlu1 %6568, %v3358_v60  }
 0x228   : > { %v4770_v37 = vpop.f32.mrb[8].mxu1  ;;  %3708 = vperm.xlu1 %6568, %v3706_v45  }
 0x229   : > { %v7871_v62 = vadd.f32 %v4770_v37, %v7865_v44  ;;  %v1128_v1 = vpop.f32.mrb[9].mxu1 }
 0x22a   : > { %v7875_v43 = vadd.f32 %v1128_v1, %v7865_v44 }
 0x22b   : > { %8824 = vst [vmem:[#allocation44_spill] sm:$0xff] %v7871_v62 }
 0x22c   : > { %8825 = vst [vmem:[#allocation45_spill] sm:$0xff] %v7875_v43  ;;  %v4773_v8 = vpop.f32.mrb[10].mxu1  ;;  %4055 = vperm.xlu1 %6568, %v4053_v23  }
 0x22d   : > { %v7879_v34 = vadd.f32 %v4773_v8, %v7865_v44  ;;  %v1138_v60 = vpop.f32.mrb[11].mxu1  ;;  %v645_v8 = vsub.s32 0, %v7809_v15 }
 0x22e   : > { %v7882_v21 = vadd.f32 %v1138_v60, %v7865_v44  ;;  %v649_v60 = vsub.s32 1, %v7809_v15 }
 0x22f   : > { %8826 = vst [vmem:[#allocation46_spill] sm:$0xff] %v7879_v34  ;;  %v7898_v23 = vrot.slane %v7815_v24, %v645_v8 }
 0x230   : > { %8827 = vst [vmem:[#allocation47_spill] sm:$0xff] %v7882_v21  ;;  %v4776_v37 = vpop.f32.mrb[12].mxu1 }
 0x231   : > { %v7885_v62 = vadd.f32 %v4776_v37, %v7865_v44  ;;  %v1148_v53 = vpop.f32.mrb[13].mxu1  ;;  %8831 = vst [vmem:[#allocation51_spill] sm:$0xff] %v7898_v23  ;;  %v7901_v37 = vrot.slane %v7815_v24, %v649_v60  ;;  %v7908_v24 = vld [vmem:[%s8833_s23] ss:$0 sm:$0xff] }
 0x232   : > { %v7888_v63 = vadd.f32 %v1148_v53, %v7865_v44  ;;  %8834 = vst [vmem:[#allocation53_spill] sm:$0xff] %v7908_v24 }
 0x233   : > { %8828 = vst [vmem:[#allocation48_spill] sm:$0xff] %v7885_v62  ;;  %8832 = vst [vmem:[#allocation52_spill] sm:$0xff] %v7901_v37 }
 0x234   : > { %8829 = vst [vmem:[#allocation49_spill] sm:$0xff] %v7888_v63  ;;  %v7890_v45 = vpop.f32.mrb[14].mxu1 }
 0x235   : > { %v1158_v1 = vpop.f32.mrb[15].mxu1 }
 0x236   : > { %v7893_v13 = vadd.f32 %v1158_v1, %v7865_v44 }
 0x238   : > { %8830 = vst [vmem:[#allocation50_spill] sm:$0xff] %v7893_v13 }
 0x242   : > { %v1336_v43 = vpop.f32.mrb[0].mxu0 }
 0x243   : > { %v6364_v53 = vadd.f32 %v1336_v43, %v7898_v23  ;;  %v1338_v21 = vpop.f32.mrb[1].mxu0 }
 0x244   : > { %v6365_v63 = vadd.f32 %v1338_v21, %v7901_v37  ;;  %v838_v21 = vadd.f32 %v7823_v50, %v7818_v33 }
 0x245   : > { %v4323_v34 = vmul.f32 -1.442695, %v6364_v53 }
 0x246   : > { %v4324_v1 = vmul.f32 -1.442695, %v6365_v63  ;;  %v7913_v63 = vrot.slane %v932_v56, %v645_v8 }
 0x247   : > { %6569 = vpow2.f32 %v4323_v34 }
 0x248   : > { %v1407_v62 = vpop.f32.mrb[16].mxu1  ;;  %6571 = vpow2.f32 %v4324_v1  ;;  %v7915_v1 = vrot.slane %v932_v56, %v649_v60 }
 0x249   : > { %v4814_v13 = vpop.f32.mrb[17].mxu1  ;;  %v1572_v43 = vadd.f32 %v7908_v24, %v1407_v62 }
 0x251   : > { %v6570_v40 = vpop.eup %6569 }
 0x252   : > { %v1556_v15 = vadd.f32 1.0, %v6570_v40  ;;  %v6572_v30 = vpop.eup %6571 }
 0x253   : > { %v1563_v3 = vadd.f32 1.0, %v6572_v30 }
 0x254   : > { %6573 = vrcp.f32 %v1556_v15 }
 0x255   : > { %6575 = vrcp.f32 %v1563_v3 }
 0x25e   : > { %v6574_v53 = vpop.eup %6573 }
 0x25f   : > { %v1573_v34 = vmul.f32 %v6574_v53, %v1572_v43  ;;  %v6576_v62 = vpop.eup %6575  ;;  %v1615_v43 = vpop.permute.xlu0 %1614 }
 0x260   : > { %v1600_v33 = vsub.f32 1.0, %v6576_v62  ;;  %v1602_v56 = vmul.f32 %v6576_v62, %v7662_v10  ;;  %vm1616_vm1 = vcmp.eq.s32.totalorder %v1615_v43, 1 }
 0x261   : > { %v1574_v13 = vadd.f32 %v1573_v34, %v838_v21 }
 0x262   : > { %v1477_v40 = vpop.f32.mrb[30].mxu0 }
 0x263   : > { %6577 = vtanh.f32 %v1574_v13  ;;  %v6394_v15 = vadd.f32 %v1477_v40, %v7913_v63  ;;  %v1479_v37 = vpop.f32.mrb[31].mxu0  ;;  %v7938_v40 = vld [vmem:[%s8837_s20] ss:$0 sm:$0xff] }
 0x264   : > { %v6395_v30 = vadd.f32 %v1479_v37, %v7915_v1  ;;  %v8835_v37 = vmov 0.0|0.0  }
 0x265   : > { %v4326_v23 = vmul.f32 -1.442695, %v6394_v15 }
 0x266   : > { %v4327_v24 = vmul.f32 -1.442695, %v6395_v30 }
 0x267   : > { %6579 = vpow2.f32 %v4326_v23 }
 0x268   : > { %v1548_v3 = vpop.f32.mrb[18].mxu1  ;;  %6581 = vpow2.f32 %v4327_v24  ;;  %v8836_v24 = vmov 0.0  }
 0x269   : > { %v4849_v8 = vpop.f32.mrb[19].mxu1  ;;  %v1596_v30 = vadd.f32 %v7938_v40, %v1548_v3 }
 0x26d   : > { %v6578_v50 = vpop.eup %6577 }
 0x26e   : > { %v1601_v53 = vmul.f32 %v6578_v50, %v1600_v33  ;;  %v1164_v33 = vadd.f32 %v7890_v45, %v7865_v44 }
 0x270   : > { %v1603_v60 = vadd.f32 %v1602_v56, %v1601_v53  ;;  %v1621_v56 = vpop.permute.xlu0 %1620 }
 0x271   : > { %v6580_v21 = vpop.eup %6579  ;;  %vm1622_vm3 = vcmp.eq.s32.totalorder %v1621_v56, 1 }
 0x272   : > { %v1580_v34 = vadd.f32 1.0, %v6580_v21  ;;  %v7921_v13 = vsel %vm1616_vm1, %v1603_v60, %v7662_v10  ;;  %v1624_v23 = vsel %vm1616_vm1, %v1603_v60, 0.0  ;;  %v6582_v10 = vpop.eup %6581 }
 0x273   : > { %1625 = vst [vmem:[%s7515_s16] sm:$0xff] %v1624_v23  ;;  %1695 = vmatmul.mubr.f32.vlgmr.msra.gmra.mrb[2].mxu0 %v7921_v13  ;;  %4883 = vmatmul.mubr.f32.vlgmr.msra.gmra.mrb[20].mxu1 %v7921_v13  ;;  %v1587_v15 = vadd.f32 1.0, %v6582_v10  ;;  %v8839_v23 = vld [vmem:[#allocation29_spill] sm:$0xff]  ;;  %v8840_v10 = vld [vmem:[#allocation30_spill] sm:$0xff] }
 0x274   : > { %6583 = vrcp.f32 %v1580_v34  ;;  %5639 = vmatpush1.bf16.msra.mxu0 %v7664_v11  ;;  %5670 = vmatpush3.bf16.msra.mxu1 %v7698_v58 }
 0x275   : > { %5641 = vmatprep.subr.bf16.mxu0 %v7667_v14  ;;  %5671 = vmatprep.subr.bf16.mxu1 %v8835_v37  ;;  %6585 = vrcp.f32 %v1587_v15  ;;  %v8841_v15 = vld [vmem:[#allocation35_spill] sm:$0xff] }
 0x276   : > { %1835 = vmatprep.mubr.f32.mxu0 %v8836_v24  ;;  %4917 = vmatprep.mubr.msk.f32.mxu1 %vm7087_vm2, %v8836_v24 }
 0x278   : > { %5643 = vmatpush1.bf16.msra.mxu0 %v7678_v27  ;;  %5673 = vmatpush3.bf16.msra.mxu1 %v7712_v19 }
 0x279   : > { %5645 = vmatprep.subr.bf16.mxu0 %v7682_v28  ;;  %5674 = vmatprep.subr.bf16.mxu1 %v8835_v37 }
 0x27c   : > { %5647 = vmatpush1.bf16.msra.mxu0 %v7691_v47  ;;  %5676 = vmatpush3.bf16.msra.mxu1 %v7726_v42 }
 0x27d   : > { %5649 = vmatprep.subr.bf16.mxu0 %v7694_v49  ;;  %5677 = vmatprep.subr.bf16.mxu1 %v8835_v37 }
 0x27e   : > { %v6584_v62 = vpop.eup %6583 }
 0x27f   : > { %v1597_v50 = vmul.f32 %v6584_v62, %v1596_v30  ;;  %v6586_v44 = vpop.eup %6585  ;;  %v8842_v30 = vld [vmem:[#allocation31_spill] sm:$0xff]  ;;  %v8843_v62 = vld [vmem:[#allocation32_spill] sm:$0xff] }
 0x280   : > { %5651 = vmatpush1.bf16.msra.mxu0 %v7703_v2  ;;  %5679 = vmatpush3.bf16.msra.mxu1 %v7737_v9  ;;  %v1604_v45 = vsub.f32 1.0, %v6586_v44  ;;  %v1606_v53 = vmul.f32 %v6586_v44, %v7759_v54 }
 0x281   : > { %v1598_v8 = vadd.f32 %v1597_v50, %v1164_v33  ;;  %5653 = vmatprep.subr.bf16.mxu0 %v7707_v7  ;;  %5680 = vmatprep.subr.bf16.mxu1 %v8835_v37  ;;  %v8844_v33 = vld [vmem:[#allocation36_spill] sm:$0xff]  ;;  %v8845_v50 = vld [vmem:[#allocation33_spill] sm:$0xff] }
 0x283   : > { %6587 = vtanh.f32 %v1598_v8 }
 0x284   : > { %5655 = vmatpush1.bf16.msra.mxu0 %v7718_v25  ;;  %5682 = vmatpush3.bf16.msra.mxu1 %v7747_v31 }
 0x285   : > { %5657 = vmatprep.subr.bf16.mxu0 %v7722_v32  ;;  %5683 = vmatprep.subr.bf16.mxu1 %v8835_v37 }
 0x288   : > { %5659 = vmatpush1.bf16.msra.mxu0 %v7730_v52  ;;  %5685 = vmatpush3.bf16.msra.mxu1 %v7755_v41 }
 0x289   : > { %5661 = vmatprep.subr.bf16.mxu0 %v7734_v55  ;;  %5686 = vmatprep.subr.bf16.mxu1 %v8835_v37 }
 0x28c   : > { %5663 = vmatpush1.bf16.msra.mxu0 %v7741_v18  ;;  %5688 = vmatpush3.bf16.msra.mxu1 %v7763_v61 }
 0x28d   : > { %v6588_v3 = vpop.eup %6587  ;;  %5665 = vmatprep.subr.bf16.mxu0 %v7744_v20  ;;  %5689 = vmatprep.subr.bf16.mxu1 %v8835_v37 }
 0x28e   : > { %v1605_v43 = vmul.f32 %v6588_v3, %v1604_v45  ;;  %v8846_v45 = vld [vmem:[#allocation51_spill] sm:$0xff] }
 0x290   : > { %5667 = vmatpush1.bf16.msra.mxu0 %v7751_v39  ;;  %5691 = vmatpush3.bf16.msra.mxu1 %v7771_v4  ;;  %v1607_v60 = vadd.f32 %v1606_v53, %v1605_v43 }
 0x291   : > { %5693 = vmatprep.subr.bf16.mxu0 %v7544_v29  ;;  %5724 = vmatprep.subr.bf16.mxu1 %v8835_v37 }
 0x292   : > { %v7971_v21 = vsel %vm1622_vm3, %v1607_v60, %v7759_v54  ;;  %v1626_v34 = vsel %vm1622_vm3, %v1607_v60, 0.0  ;;  %v8838_v54 = vld [vmem:[#allocation34_spill] sm:$0xff]  ;;  %v8847_v60 = vld [vmem:[#allocation52_spill] sm:$0xff] }
 0x293   : > { %1627 = vst [vmem:[%s7517_s6 + $0x38] sm:$0xff] %v1626_v34  ;;  %1836 = vmatmul.mubr.f32.vlgmr.msra.gmra.mrb[28].mxu0 %v7971_v21  ;;  %4918 = vmatmul.mubr.f32.vlgmr.msra.gmra.mrb[22].mxu1 %v7971_v21 }
 0x294   : > { %5695 = vmatpush1.bf16.msra.mxu0 %v7547_v35  ;;  %5726 = vmatpush3.bf16.msra.mxu1 %v7579_v0 }
 0x295   : > { %5697 = vmatprep.subr.bf16.mxu0 %v7550_v38  ;;  %5727 = vmatprep.subr.bf16.mxu1 %v8835_v37 }
 0x296   : > { %2042 = vmatprep.mubr.f32.mxu0 %v8836_v24  ;;  %4952 = vmatprep.mubr.msk.f32.mxu1 %vm7087_vm2, %v8836_v24 }
 0x298   : > { %5699 = vmatpush1.bf16.msra.mxu0 %v7558_v46  ;;  %5729 = vmatpush3.bf16.msra.mxu1 %v7592_v12 }
 0x299   : > { %5701 = vmatprep.subr.bf16.mxu0 %v7562_v48  ;;  %5730 = vmatprep.subr.bf16.mxu1 %v8835_v37 }
 0x29c   : > { %5703 = vmatpush1.bf16.msra.mxu0 %v7573_v57  ;;  %5732 = vmatpush3.bf16.msra.mxu1 %v7609_v22 }
 0x29d   : > { %5705 = vmatprep.subr.bf16.mxu0 %v7577_v59  ;;  %5733 = vmatprep.subr.bf16.mxu1 %v8835_v37 }
 0x2a0   : > { %5707 = vmatpush1.bf16.msra.mxu0 %v7586_v5  ;;  %5735 = vmatpush3.bf16.msra.mxu1 %v7623_v36 }
 0x2a1   : > { %5709 = vmatprep.subr.bf16.mxu0 %v7589_v6  ;;  %5736 = vmatprep.subr.bf16.mxu1 %v8835_v37 }
 0x2a4   : > { %5711 = vmatpush1.bf16.msra.mxu0 %v7602_v16  ;;  %5738 = vmatpush3.bf16.msra.mxu1 %v7637_v51 }
 0x2a5   : > { %5713 = vmatprep.subr.bf16.mxu0 %v7605_v17  ;;  %5739 = vmatprep.subr.bf16.mxu1 %v8835_v37  ;;  %v8849_v17 = vld [vmem:[#allocation37_spill] sm:$0xff] }
 0x2a8   : > { %5715 = vmatpush1.bf16.msra.mxu0 %v7615_v26  ;;  %5741 = vmatpush3.bf16.msra.mxu1 %v8838_v54 }
 0x2a9   : > { %5717 = vmatprep.subr.bf16.mxu0 %v8839_v23  ;;  %5742 = vmatprep.subr.bf16.mxu1 %v8835_v37 }
 0x2ac   : > { %5719 = vmatpush1.bf16.msra.mxu0 %v8840_v10  ;;  %5744 = vmatpush3.bf16.msra.mxu1 %v8841_v15 }
 0x2ad   : > { %5721 = vmatprep.subr.bf16.mxu0 %v8842_v30  ;;  %5745 = vmatprep.subr.bf16.mxu1 %v8835_v37 }
 0x2b0   : > { %5723 = vmatpush1.bf16.msra.mxu0 %v8843_v62  ;;  %5747 = vmatpush3.bf16.msra.mxu1 %v8844_v33 }
 0x2b1   : > { %5749 = vmatprep.subr.bf16.mxu0 %v8845_v50  ;;  %5780 = vmatprep.subr.bf16.mxu1 %v8835_v37  ;;  %v8848_v50 = vld [vmem:[#allocation53_spill] sm:$0xff] }
 0x346   : > { %v1696_v8 = vpop.f32.mrb[2].mxu0  ;;  %v1767_v44 = vpop.f32.mrb[20].mxu1 }
 0x347   : > { %v6366_v3 = vadd.f32 %v1696_v8, %v8846_v45  ;;  %v1698_v43 = vpop.f32.mrb[3].mxu0  ;;  %v4884_v53 = vpop.f32.mrb[21].mxu1  ;;  %v1926_v23 = vadd.f32 %v8848_v50, %v1767_v44 }
 0x348   : > { %v6367_v34 = vadd.f32 %v1698_v43, %v8847_v60 }
 0x349   : > { %v4329_v56 = vmul.f32 -1.442695, %v6366_v3 }
 0x34a   : > { %v4330_v30 = vmul.f32 -1.442695, %v6367_v34 }
 0x34b   : > { %6589 = vpow2.f32 %v4329_v56 }
 0x34c   : > { %6591 = vpow2.f32 %v4330_v30 }
 0x355   : > { %v6590_v15 = vpop.eup %6589 }
 0x356   : > { %v1916_v62 = vadd.f32 1.0, %v6590_v15  ;;  %v6592_v33 = vpop.eup %6591 }
 0x357   : > { %v1923_v10 = vadd.f32 1.0, %v6592_v33 }
 0x358   : > { %6593 = vrcp.f32 %v1916_v62 }
 0x359   : > { %6595 = vrcp.f32 %v1923_v10 }
 0x362   : > { %v6594_v54 = vpop.eup %6593 }
 0x363   : > { %v1927_v26 = vmul.f32 %v6594_v54, %v1926_v23  ;;  %v6596_v62 = vpop.eup %6595  ;;  %v1963_v54 = vpop.permute.xlu1 %1962 }
 0x364   : > { %v1948_v44 = vsub.f32 1.0, %v6596_v62  ;;  %vm1964_vm4 = vcmp.eq.s32.totalorder %v1963_v54, 1 }
 0x365   : > { %v1928_v8 = vadd.f32 %v1927_v26, %v8849_v17  ;;  %v1950_v17 = vmul.f32 %v6596_v62, %v7921_v13  ;;  %v8850_v62 = vld [vmem:[#allocation50_spill] sm:$0xff] }
 0x366   : > { %v1837_v45 = vpop.f32.mrb[28].mxu0  ;;  %v1908_v53 = vpop.f32.mrb[22].mxu1 }
 0x367   : > { %6597 = vtanh.f32 %v1928_v8  ;;  %v6392_v3 = vadd.f32 %v1837_v45, %v7913_v63  ;;  %v1839_v43 = vpop.f32.mrb[29].mxu0  ;;  %v4919_v56 = vpop.f32.mrb[23].mxu1 }
 0x368   : > { %v6393_v15 = vadd.f32 %v1839_v43, %v7915_v1  ;;  %v1944_v56 = vadd.f32 %v7938_v40, %v1908_v53 }
 0x369   : > { %v4331_v30 = vmul.f32 -1.442695, %v6392_v3 }
 0x36a   : > { %v4332_v33 = vmul.f32 -1.442695, %v6393_v15 }
 0x36b   : > { %6599 = vpow2.f32 %v4331_v30 }
 0x36c   : > { %6601 = vpow2.f32 %v4332_v33 }
 0x371   : > { %v6598_v34 = vpop.eup %6597 }
 0x372   : > { %v1949_v23 = vmul.f32 %v6598_v34, %v1948_v44 }
 0x374   : > { %v1951_v26 = vadd.f32 %v1950_v17, %v1949_v23  ;;  %v1969_v17 = vpop.permute.xlu1 %1968 }
 0x375   : > { %v6600_v10 = vpop.eup %6599  ;;  %vm1970_vm5 = vcmp.eq.s32.totalorder %v1969_v17, 1 }
 0x376   : > { %v8019_v45 = vsel %vm1964_vm4, %v1951_v26, %v7921_v13  ;;  %v1972_v8 = vsel %vm1964_vm4, %v1951_v26, 0.0  ;;  %v1934_v3 = vadd.f32 1.0, %v6600_v10  ;;  %v6602_v13 = vpop.eup %6601 }
 0x377   : > { %1973 = vst [vmem:[%s7515_s16 + $0x8] sm:$0xff] %v1972_v8  ;;  %2043 = vmatmul.mubr.f32.vlgmr.msra.gmra.mrb[4].mxu0 %v8019_v45  ;;  %4953 = vmatmul.mubr.f32.vlgmr.msra.gmra.mrb[24].mxu1 %v8019_v45  ;;  %v1941_v43 = vadd.f32 1.0, %v6602_v13  ;;  %v8853_v13 = vld [vmem:[#allocation34_spill] sm:$0xff] }
 0x378   : > { %6603 = vrcp.f32 %v1934_v3  ;;  %5751 = vmatpush1.bf16.msra.mxu0 %v7664_v11  ;;  %5782 = vmatpush3.bf16.msra.mxu1 %v7698_v58  ;;  %v8852_v3 = vld [vmem:[#allocation28_spill] sm:$0xff] }
 0x379   : > { %5753 = vmatprep.subr.bf16.mxu0 %v7667_v14  ;;  %5783 = vmatprep.subr.bf16.mxu1 %v8835_v37  ;;  %6605 = vrcp.f32 %v1941_v43  ;;  %v8854_v43 = vld [vmem:[#allocation29_spill] sm:$0xff] }
 0x37a   : > { %2183 = vmatprep.mubr.f32.mxu0 %v8836_v24  ;;  %4987 = vmatprep.mubr.msk.f32.mxu1 %vm7087_vm2, %v8836_v24 }
 0x37c   : > { %5755 = vmatpush1.bf16.msra.mxu0 %v7678_v27  ;;  %5785 = vmatpush3.bf16.msra.mxu1 %v7712_v19 }
 0x37d   : > { %5757 = vmatprep.subr.bf16.mxu0 %v7682_v28  ;;  %5786 = vmatprep.subr.bf16.mxu1 %v8835_v37 }
 0x380   : > { %5759 = vmatpush1.bf16.msra.mxu0 %v7691_v47  ;;  %5788 = vmatpush3.bf16.msra.mxu1 %v7726_v42 }
 0x381   : > { %5761 = vmatprep.subr.bf16.mxu0 %v7694_v49  ;;  %5789 = vmatprep.subr.bf16.mxu1 %v8835_v37 }
 0x382   : > { %v6604_v30 = vpop.eup %6603 }
 0x383   : > { %v1945_v15 = vmul.f32 %v6604_v30, %v1944_v56  ;;  %v6606_v53 = vpop.eup %6605  ;;  %v8855_v56 = vld [vmem:[#allocation30_spill] sm:$0xff]  ;;  %v8856_v30 = vld [vmem:[#allocation35_spill] sm:$0xff] }
 0x384   : > { %5763 = vmatpush1.bf16.msra.mxu0 %v7703_v2  ;;  %5791 = vmatpush3.bf16.msra.mxu1 %v7737_v9  ;;  %v1952_v44 = vsub.f32 1.0, %v6606_v53  ;;  %v1954_v23 = vmul.f32 %v6606_v53, %v7971_v21  ;;  %v8860_v53 = vld [vmem:[#allocation33_spill] sm:$0xff] }
 0x385   : > { %v1946_v33 = vadd.f32 %v1945_v15, %v8850_v62  ;;  %5765 = vmatprep.subr.bf16.mxu0 %v7707_v7  ;;  %5792 = vmatprep.subr.bf16.mxu1 %v8835_v37  ;;  %v8857_v15 = vld [vmem:[#allocation31_spill] sm:$0xff]  ;;  %v8858_v62 = vld [vmem:[#allocation32_spill] sm:$0xff] }
 0x387   : > { %6607 = vtanh.f32 %v1946_v33  ;;  %v8859_v33 = vld [vmem:[#allocation36_spill] sm:$0xff] }
 0x388   : > { %5767 = vmatpush1.bf16.msra.mxu0 %v7718_v25  ;;  %5794 = vmatpush3.bf16.msra.mxu1 %v7747_v31 }
 0x389   : > { %5769 = vmatprep.subr.bf16.mxu0 %v7722_v32  ;;  %5795 = vmatprep.subr.bf16.mxu1 %v8835_v37 }
 0x38c   : > { %5771 = vmatpush1.bf16.msra.mxu0 %v7730_v52  ;;  %5797 = vmatpush3.bf16.msra.mxu1 %v7755_v41 }
 0x38d   : > { %5773 = vmatprep.subr.bf16.mxu0 %v7734_v55  ;;  %5798 = vmatprep.subr.bf16.mxu1 %v8835_v37 }
 0x390   : > { %5775 = vmatpush1.bf16.msra.mxu0 %v7741_v18  ;;  %5800 = vmatpush3.bf16.msra.mxu1 %v7763_v61 }
 0x391   : > { %v6608_v34 = vpop.eup %6607  ;;  %5777 = vmatprep.subr.bf16.mxu0 %v7744_v20  ;;  %5801 = vmatprep.subr.bf16.mxu1 %v8835_v37 }
 0x392   : > { %v1953_v54 = vmul.f32 %v6608_v34, %v1952_v44 }
 0x394   : > { %5779 = vmatpush1.bf16.msra.mxu0 %v7751_v39  ;;  %5803 = vmatpush3.bf16.msra.mxu1 %v7771_v4  ;;  %v1955_v26 = vadd.f32 %v1954_v23, %v1953_v54  ;;  %v8861_v54 = vld [vmem:[#allocation51_spill] sm:$0xff] }
 0x395   : > { %5805 = vmatprep.subr.bf16.mxu0 %v7544_v29  ;;  %5836 = vmatprep.subr.bf16.mxu1 %v8835_v37 }
 0x396   : > { %v8063_v10 = vsel %vm1970_vm5, %v1955_v26, %v7971_v21  ;;  %v1974_v8 = vsel %vm1970_vm5, %v1955_v26, 0.0  ;;  %v8851_v21 = vld [vmem:[#allocation27_spill] sm:$0xff] }
 0x397   : > { %1975 = vst [vmem:[%s7517_s6 + $0x30] sm:$0xff] %v1974_v8  ;;  %2184 = vmatmul.mubr.f32.vlgmr.msra.gmra.mrb[26].mxu0 %v8063_v10  ;;  %4988 = vmatmul.mubr.f32.vlgmr.msra.gmra.mrb[26].mxu1 %v8063_v10 }
 0x398   : > { %5807 = vmatpush1.bf16.msra.mxu0 %v7547_v35  ;;  %5838 = vmatpush3.bf16.msra.mxu1 %v7579_v0 }
 0x399   : > { %5809 = vmatprep.subr.bf16.mxu0 %v7550_v38  ;;  %5839 = vmatprep.subr.bf16.mxu1 %v8835_v37 }
 0x39a   : > { %2390 = vmatprep.mubr.f32.mxu0 %v8836_v24  ;;  %5022 = vmatprep.mubr.msk.f32.mxu1 %vm7087_vm2, %v8836_v24 }
 0x39c   : > { %5811 = vmatpush1.bf16.msra.mxu0 %v7558_v46  ;;  %5841 = vmatpush3.bf16.msra.mxu1 %v7592_v12 }
 0x39d   : > { %5813 = vmatprep.subr.bf16.mxu0 %v7562_v48  ;;  %5842 = vmatprep.subr.bf16.mxu1 %v8835_v37 }
 0x3a0   : > { %5815 = vmatpush1.bf16.msra.mxu0 %v7573_v57  ;;  %5844 = vmatpush3.bf16.msra.mxu1 %v7609_v22 }
 0x3a1   : > { %5817 = vmatprep.subr.bf16.mxu0 %v7577_v59  ;;  %5845 = vmatprep.subr.bf16.mxu1 %v8835_v37 }
 0x3a4   : > { %5819 = vmatpush1.bf16.msra.mxu0 %v7586_v5  ;;  %5847 = vmatpush3.bf16.msra.mxu1 %v7623_v36 }
 0x3a5   : > { %5821 = vmatprep.subr.bf16.mxu0 %v7589_v6  ;;  %5848 = vmatprep.subr.bf16.mxu1 %v8835_v37 }
 0x3a8   : > { %5823 = vmatpush1.bf16.msra.mxu0 %v7602_v16  ;;  %5850 = vmatpush3.bf16.msra.mxu1 %v7637_v51 }
 0x3a9   : > { %5825 = vmatprep.subr.bf16.mxu0 %v8851_v21  ;;  %5851 = vmatprep.subr.bf16.mxu1 %v8835_v37  ;;  %v8862_v21 = vld [vmem:[#allocation39_spill] sm:$0xff] }
 0x3ac   : > { %5827 = vmatpush1.bf16.msra.mxu0 %v8852_v3  ;;  %5853 = vmatpush3.bf16.msra.mxu1 %v8853_v13 }
 0x3ad   : > { %5829 = vmatprep.subr.bf16.mxu0 %v8854_v43  ;;  %5854 = vmatprep.subr.bf16.mxu1 %v8835_v37 }
 0x3b0   : > { %5831 = vmatpush1.bf16.msra.mxu0 %v8855_v56  ;;  %5856 = vmatpush3.bf16.msra.mxu1 %v8856_v30 }
 0x3b1   : > { %5833 = vmatprep.subr.bf16.mxu0 %v8857_v15  ;;  %5857 = vmatprep.subr.bf16.mxu1 %v8835_v37 }
 0x3b4   : > { %5835 = vmatpush1.bf16.msra.mxu0 %v8858_v62  ;;  %5859 = vmatpush3.bf16.msra.mxu1 %v8859_v33 }
 0x3b5   : > { %5861 = vmatprep.subr.bf16.mxu0 %v8860_v53  ;;  %5892 = vmatprep.subr.bf16.mxu1 %v8835_v37 }
 0x44a   : > { %v2044_v44 = vpop.f32.mrb[4].mxu0  ;;  %v2115_v34 = vpop.f32.mrb[24].mxu1 }
 0x44b   : > { %v6368_v23 = vadd.f32 %v2044_v44, %v8861_v54  ;;  %v2046_v17 = vpop.f32.mrb[5].mxu0  ;;  %v4954_v26 = vpop.f32.mrb[25].mxu1  ;;  %v2274_v53 = vadd.f32 %v8848_v50, %v2115_v34 }
 0x44c   : > { %v6369_v30 = vadd.f32 %v2046_v17, %v8847_v60 }
 0x44d   : > { %v4333_v8 = vmul.f32 -1.442695, %v6368_v23 }
 0x44e   : > { %v4334_v15 = vmul.f32 -1.442695, %v6369_v30 }
 0x44f   : > { %6609 = vpow2.f32 %v4333_v8 }
 0x450   : > { %6611 = vpow2.f32 %v4334_v15 }
 0x459   : > { %v6610_v56 = vpop.eup %6609 }
 0x45a   : > { %v2264_v62 = vadd.f32 1.0, %v6610_v56  ;;  %v6612_v33 = vpop.eup %6611 }
 0x45b   : > { %v2271_v43 = vadd.f32 1.0, %v6612_v33 }
 0x45c   : > { %6613 = vrcp.f32 %v2264_v62 }
 0x45d   : > { %6615 = vrcp.f32 %v2271_v43 }
 0x466   : > { %v6614_v13 = vpop.eup %6613 }
 0x467   : > { %v2275_v3 = vmul.f32 %v6614_v13, %v2274_v53  ;;  %v6616_v62 = vpop.eup %6615 }
 0x468   : > { %v2296_v34 = vsub.f32 1.0, %v6616_v62 }
 0x469   : > { %v2276_v44 = vadd.f32 %v2275_v3, %v8862_v21  ;;  %v2298_v21 = vmul.f32 %v6616_v62, %v8019_v45  ;;  %v2311_v3 = vpop.permute.xlu0 %2310  ;;  %v8863_v62 = vld [vmem:[#allocation48_spill] sm:$0xff] }
 0x46a   : > { %v2185_v54 = vpop.f32.mrb[26].mxu0  ;;  %v2256_v26 = vpop.f32.mrb[26].mxu1  ;;  %vm2312_vm6 = vcmp.eq.s32.totalorder %v2311_v3, 1 }
 0x46b   : > { %6617 = vtanh.f32 %v2276_v44  ;;  %v6390_v23 = vadd.f32 %v2185_v54, %v7913_v63  ;;  %v2187_v17 = vpop.f32.mrb[27].mxu0  ;;  %v4989_v30 = vpop.f32.mrb[27].mxu1 }
 0x46c   : > { %v6391_v56 = vadd.f32 %v2187_v17, %v7915_v1  ;;  %v2292_v30 = vadd.f32 %v7938_v40, %v2256_v26  ;;  %v2317_v3 = vpop.permute.xlu1 %2316 }
 0x46d   : > { %v4335_v15 = vmul.f32 -1.442695, %v6390_v23  ;;  %vm2318_vm7 = vcmp.eq.s32.totalorder %v2317_v3, 1 }
 0x46e   : > { %v4336_v33 = vmul.f32 -1.442695, %v6391_v56 }
 0x46f   : > { %6619 = vpow2.f32 %v4335_v15 }
 0x470   : > { %6621 = vpow2.f32 %v4336_v33 }
 0x475   : > { %v6618_v8 = vpop.eup %6617 }
 0x476   : > { %v2297_v13 = vmul.f32 %v6618_v8, %v2296_v34 }
 0x478   : > { %v2299_v43 = vadd.f32 %v2298_v21, %v2297_v13 }
 0x479   : > { %v6620_v53 = vpop.eup %6619 }
 0x47a   : > { %v2282_v54 = vadd.f32 1.0, %v6620_v53  ;;  %v8111_v44 = vsel %vm2312_vm6, %v2299_v43, %v8019_v45  ;;  %v2320_v23 = vsel %vm2312_vm6, %v2299_v43, 0.0  ;;  %v6622_v45 = vpop.eup %6621 }
 0x47b   : > { %2321 = vst [vmem:[%s7515_s16 + $0x10] sm:$0xff] %v2320_v23  ;;  %2391 = vmatmul.mubr.f32.vlgmr.msra.gmra.mrb[6].mxu0 %v8111_v44  ;;  %5023 = vmatmul.mubr.f32.vlgmr.msra.gmra.mrb[28].mxu1 %v8111_v44  ;;  %v2289_v17 = vadd.f32 1.0, %v6622_v45  ;;  %v8865_v23 = vld [vmem:[#allocation28_spill] sm:$0xff]  ;;  %v8866_v45 = vld [vmem:[#allocation34_spill] sm:$0xff] }
 0x47c   : > { %6623 = vrcp.f32 %v2282_v54  ;;  %5863 = vmatpush1.bf16.msra.mxu0 %v7664_v11  ;;  %5894 = vmatpush3.bf16.msra.mxu1 %v7698_v58 }
 0x47d   : > { %5865 = vmatprep.subr.bf16.mxu0 %v7667_v14  ;;  %5895 = vmatprep.subr.bf16.mxu1 %v8835_v37  ;;  %6625 = vrcp.f32 %v2289_v17  ;;  %v8867_v17 = vld [vmem:[#allocation29_spill] sm:$0xff] }
 0x47e   : > { %2531 = vmatprep.mubr.f32.mxu0 %v8836_v24  ;;  %5057 = vmatprep.mubr.msk.f32.mxu1 %vm7087_vm2, %v8836_v24 }
 0x480   : > { %5867 = vmatpush1.bf16.msra.mxu0 %v7678_v27  ;;  %5897 = vmatpush3.bf16.msra.mxu1 %v7712_v19 }
 0x481   : > { %5869 = vmatprep.subr.bf16.mxu0 %v7682_v28  ;;  %5898 = vmatprep.subr.bf16.mxu1 %v8835_v37 }
 0x484   : > { %5871 = vmatpush1.bf16.msra.mxu0 %v7691_v47  ;;  %5900 = vmatpush3.bf16.msra.mxu1 %v7726_v42 }
 0x485   : > { %5873 = vmatprep.subr.bf16.mxu0 %v7694_v49  ;;  %5901 = vmatprep.subr.bf16.mxu1 %v8835_v37 }
 0x486   : > { %v6624_v15 = vpop.eup %6623 }
 0x487   : > { %v2293_v56 = vmul.f32 %v6624_v15, %v2292_v30  ;;  %v6626_v26 = vpop.eup %6625  ;;  %v8868_v30 = vld [vmem:[#allocation30_spill] sm:$0xff]  ;;  %v8869_v15 = vld [vmem:[#allocation35_spill] sm:$0xff] }
 0x488   : > { %5875 = vmatpush1.bf16.msra.mxu0 %v7703_v2  ;;  %5903 = vmatpush3.bf16.msra.mxu1 %v7737_v9  ;;  %v2300_v34 = vsub.f32 1.0, %v6626_v26  ;;  %v2302_v21 = vmul.f32 %v6626_v26, %v8063_v10  ;;  %v8873_v26 = vld [vmem:[#allocation33_spill] sm:$0xff] }
 0x489   : > { %v2294_v33 = vadd.f32 %v2293_v56, %v8863_v62  ;;  %5877 = vmatprep.subr.bf16.mxu0 %v7707_v7  ;;  %5904 = vmatprep.subr.bf16.mxu1 %v8835_v37  ;;  %v8870_v56 = vld [vmem:[#allocation31_spill] sm:$0xff]  ;;  %v8871_v62 = vld [vmem:[#allocation32_spill] sm:$0xff] }
 0x48b   : > { %6627 = vtanh.f32 %v2294_v33  ;;  %v8872_v33 = vld [vmem:[#allocation36_spill] sm:$0xff] }
 0x48c   : > { %5879 = vmatpush1.bf16.msra.mxu0 %v7718_v25  ;;  %5906 = vmatpush3.bf16.msra.mxu1 %v7747_v31 }
 0x48d   : > { %5881 = vmatprep.subr.bf16.mxu0 %v7722_v32  ;;  %5907 = vmatprep.subr.bf16.mxu1 %v8835_v37 }
 0x490   : > { %5883 = vmatpush1.bf16.msra.mxu0 %v7730_v52  ;;  %5909 = vmatpush3.bf16.msra.mxu1 %v7755_v41 }
 0x491   : > { %5885 = vmatprep.subr.bf16.mxu0 %v7734_v55  ;;  %5910 = vmatprep.subr.bf16.mxu1 %v8835_v37 }
 0x494   : > { %5887 = vmatpush1.bf16.msra.mxu0 %v7741_v18  ;;  %5912 = vmatpush3.bf16.msra.mxu1 %v7763_v61 }
 0x495   : > { %v6628_v8 = vpop.eup %6627  ;;  %5889 = vmatprep.subr.bf16.mxu0 %v7744_v20  ;;  %5913 = vmatprep.subr.bf16.mxu1 %v8835_v37 }
 0x496   : > { %v2301_v13 = vmul.f32 %v6628_v8, %v2300_v34 }
 0x498   : > { %5891 = vmatpush1.bf16.msra.mxu0 %v7751_v39  ;;  %5915 = vmatpush3.bf16.msra.mxu1 %v7771_v4  ;;  %v2303_v43 = vadd.f32 %v2302_v21, %v2301_v13  ;;  %v8874_v13 = vld [vmem:[#allocation51_spill] sm:$0xff] }
 0x499   : > { %5917 = vmatprep.subr.bf16.mxu0 %v7544_v29  ;;  %5948 = vmatprep.subr.bf16.mxu1 %v8835_v37 }
 0x49a   : > { %v8155_v53 = vsel %vm2318_vm7, %v2303_v43, %v8063_v10  ;;  %v2322_v54 = vsel %vm2318_vm7, %v2303_v43, 0.0  ;;  %v8864_v10 = vld [vmem:[#allocation27_spill] sm:$0xff] }
 0x49b   : > { %2323 = vst [vmem:[%s7517_s6 + $0x28] sm:$0xff] %v2322_v54  ;;  %2532 = vmatmul.mubr.f32.vlgmr.msra.gmra.mrb[24].mxu0 %v8155_v53  ;;  %5058 = vmatmul.mubr.f32.vlgmr.msra.gmra.mrb[30].mxu1 %v8155_v53 }
 0x49c   : > { %5919 = vmatpush1.bf16.msra.mxu0 %v7547_v35  ;;  %5950 = vmatpush3.bf16.msra.mxu1 %v7579_v0 }
 0x49d   : > { %5921 = vmatprep.subr.bf16.mxu0 %v7550_v38  ;;  %5951 = vmatprep.subr.bf16.mxu1 %v8835_v37 }
 0x49e   : > { %2738 = vmatprep.mubr.f32.mxu0 %v8836_v24  ;;  %5092 = vmatprep.mubr.msk.f32.mxu1 %vm7087_vm2, %v8836_v24 }
 0x4a0   : > { %5923 = vmatpush1.bf16.msra.mxu0 %v7558_v46  ;;  %5953 = vmatpush3.bf16.msra.mxu1 %v7592_v12 }
 0x4a1   : > { %5925 = vmatprep.subr.bf16.mxu0 %v7562_v48  ;;  %5954 = vmatprep.subr.bf16.mxu1 %v8835_v37 }
 0x4a4   : > { %5927 = vmatpush1.bf16.msra.mxu0 %v7573_v57  ;;  %5956 = vmatpush3.bf16.msra.mxu1 %v7609_v22 }
 0x4a5   : > { %5929 = vmatprep.subr.bf16.mxu0 %v7577_v59  ;;  %5957 = vmatprep.subr.bf16.mxu1 %v8835_v37 }
 0x4a8   : > { %5931 = vmatpush1.bf16.msra.mxu0 %v7586_v5  ;;  %5959 = vmatpush3.bf16.msra.mxu1 %v7623_v36 }
 0x4a9   : > { %5933 = vmatprep.subr.bf16.mxu0 %v7589_v6  ;;  %5960 = vmatprep.subr.bf16.mxu1 %v8835_v37 }
 0x4ac   : > { %5935 = vmatpush1.bf16.msra.mxu0 %v7602_v16  ;;  %5962 = vmatpush3.bf16.msra.mxu1 %v7637_v51 }
 0x4ad   : > { %5937 = vmatprep.subr.bf16.mxu0 %v8864_v10  ;;  %5963 = vmatprep.subr.bf16.mxu1 %v8835_v37  ;;  %v8875_v10 = vld [vmem:[#allocation38_spill] sm:$0xff] }
 0x4b0   : > { %5939 = vmatpush1.bf16.msra.mxu0 %v8865_v23  ;;  %5965 = vmatpush3.bf16.msra.mxu1 %v8866_v45 }
 0x4b1   : > { %5941 = vmatprep.subr.bf16.mxu0 %v8867_v17  ;;  %5966 = vmatprep.subr.bf16.mxu1 %v8835_v37 }
 0x4b4   : > { %5943 = vmatpush1.bf16.msra.mxu0 %v8868_v30  ;;  %5968 = vmatpush3.bf16.msra.mxu1 %v8869_v15 }
 0x4b5   : > { %5945 = vmatprep.subr.bf16.mxu0 %v8870_v56  ;;  %5969 = vmatprep.subr.bf16.mxu1 %v8835_v37 }
 0x4b8   : > { %5947 = vmatpush1.bf16.msra.mxu0 %v8871_v62  ;;  %5971 = vmatpush3.bf16.msra.mxu1 %v8872_v33 }
 0x4b9   : > { %5973 = vmatprep.subr.bf16.mxu0 %v8873_v26  ;;  %6004 = vmatprep.subr.bf16.mxu1 %v8835_v37 }
 0x54e   : > { %v2392_v34 = vpop.f32.mrb[6].mxu0  ;;  %v2463_v8 = vpop.f32.mrb[28].mxu1 }
 0x54f   : > { %v6370_v21 = vadd.f32 %v2392_v34, %v8874_v13  ;;  %v2394_v3 = vpop.f32.mrb[7].mxu0  ;;  %v5024_v43 = vpop.f32.mrb[29].mxu1  ;;  %v2622_v26 = vadd.f32 %v8848_v50, %v2463_v8 }
 0x550   : > { %v6371_v15 = vadd.f32 %v2394_v3, %v8847_v60 }
 0x551   : > { %v4337_v54 = vmul.f32 -1.442695, %v6370_v21 }
 0x552   : > { %v4338_v56 = vmul.f32 -1.442695, %v6371_v15 }
 0x553   : > { %6629 = vpow2.f32 %v4337_v54 }
 0x554   : > { %6631 = vpow2.f32 %v4338_v56 }
 0x55d   : > { %v6630_v30 = vpop.eup %6629 }
 0x55e   : > { %v2612_v62 = vadd.f32 1.0, %v6630_v30  ;;  %v6632_v33 = vpop.eup %6631 }
 0x55f   : > { %v2619_v17 = vadd.f32 1.0, %v6632_v33 }
 0x560   : > { %6633 = vrcp.f32 %v2612_v62 }
 0x561   : > { %6635 = vrcp.f32 %v2619_v17 }
 0x56a   : > { %v6634_v45 = vpop.eup %6633 }
 0x56b   : > { %v2623_v23 = vmul.f32 %v6634_v45, %v2622_v26  ;;  %v6636_v62 = vpop.eup %6635 }
 0x56c   : > { %v2644_v50 = vsub.f32 1.0, %v6636_v62 }
 0x56d   : > { %v2624_v34 = vadd.f32 %v2623_v23, %v8875_v10  ;;  %v2646_v10 = vmul.f32 %v6636_v62, %v8111_v44  ;;  %v2659_v23 = vpop.permute.xlu0 %2658 }
 0x56e   : > { %v2533_v13 = vpop.f32.mrb[24].mxu0  ;;  %v2604_v43 = vpop.f32.mrb[30].mxu1  ;;  %vm2660_vm8 = vcmp.eq.s32.totalorder %v2659_v23, 1 }
 0x56f   : > { %6637 = vtanh.f32 %v2624_v34  ;;  %v6388_v21 = vadd.f32 %v2533_v13, %v7913_v63  ;;  %v2535_v3 = vpop.f32.mrb[25].mxu0  ;;  %v5059_v15 = vpop.f32.mrb[31].mxu1 }
 0x570   : > { %v6389_v30 = vadd.f32 %v2535_v3, %v7915_v1  ;;  %v2640_v3 = vadd.f32 %v7938_v40, %v2604_v43 }
 0x571   : > { %v4339_v56 = vmul.f32 -1.442695, %v6388_v21 }
 0x572   : > { %v4340_v33 = vmul.f32 -1.442695, %v6389_v30  ;;  %v8876_v30 = vld [vmem:[#allocation49_spill] sm:$0xff] }
 0x573   : > { %6639 = vpow2.f32 %v4339_v56 }
 0x574   : > { %6641 = vpow2.f32 %v4340_v33 }
 0x579   : > { %v6638_v8 = vpop.eup %6637 }
 0x57a   : > { %v2645_v45 = vmul.f32 %v6638_v8, %v2644_v50 }
 0x57c   : > { %v2647_v17 = vadd.f32 %v2646_v10, %v2645_v45  ;;  %v2665_v45 = vpop.permute.xlu1 %2664 }
 0x57d   : > { %v6640_v26 = vpop.eup %6639  ;;  %vm2666_vm9 = vcmp.eq.s32.totalorder %v2665_v45, 1 }
 0x57e   : > { %v2630_v13 = vadd.f32 1.0, %v6640_v26  ;;  %v8203_v54 = vsel %vm2660_vm8, %v2647_v17, %v8111_v44  ;;  %v2668_v34 = vsel %vm2660_vm8, %v2647_v17, 0.0  ;;  %v6642_v44 = vpop.eup %6641  ;;  %v8878_v26 = vld [vmem:[#allocation28_spill] sm:$0xff] }
 0x57f   : > { %2669 = vst [vmem:[%s7515_s16 + $0x18] sm:$0xff] %v2668_v34  ;;  %2739 = vmatmul.mubr.f32.vlgmr.msra.gmra.mrb[8].mxu0 %v8203_v54  ;;  %5093 = vmatmul.mubr.f32.vlgmr.msra.gmra.mrb[32].mxu1 %v8203_v54  ;;  %v2637_v21 = vadd.f32 1.0, %v6642_v44  ;;  %v8880_v34 = vld [vmem:[#allocation29_spill] sm:$0xff]  ;;  %v8881_v44 = vld [vmem:[#allocation30_spill] sm:$0xff] }
 0x580   : > { %6643 = vrcp.f32 %v2630_v13  ;;  %5975 = vmatpush1.bf16.msra.mxu0 %v7664_v11  ;;  %6006 = vmatpush3.bf16.msra.mxu1 %v7698_v58  ;;  %v8879_v13 = vld [vmem:[#allocation34_spill] sm:$0xff] }
 0x581   : > { %5977 = vmatprep.subr.bf16.mxu0 %v7667_v14  ;;  %6007 = vmatprep.subr.bf16.mxu1 %v8835_v37  ;;  %6645 = vrcp.f32 %v2637_v21  ;;  %v8882_v21 = vld [vmem:[#allocation35_spill] sm:$0xff] }
 0x582   : > { %2879 = vmatprep.mubr.f32.mxu0 %v8836_v24  ;;  %5127 = vmatprep.mubr.msk.f32.mxu1 %vm7087_vm2, %v8836_v24 }
 0x584   : > { %5979 = vmatpush1.bf16.msra.mxu0 %v7678_v27  ;;  %6009 = vmatpush3.bf16.msra.mxu1 %v7712_v19 }
 0x585   : > { %5981 = vmatprep.subr.bf16.mxu0 %v7682_v28  ;;  %6010 = vmatprep.subr.bf16.mxu1 %v8835_v37 }
 0x588   : > { %5983 = vmatpush1.bf16.msra.mxu0 %v7691_v47  ;;  %6012 = vmatpush3.bf16.msra.mxu1 %v7726_v42 }
 0x589   : > { %5985 = vmatprep.subr.bf16.mxu0 %v7694_v49  ;;  %6013 = vmatprep.subr.bf16.mxu1 %v8835_v37 }
 0x58a   : > { %v6644_v15 = vpop.eup %6643 }
 0x58b   : > { %v2641_v56 = vmul.f32 %v6644_v15, %v2640_v3  ;;  %v6646_v40 = vpop.eup %6645  ;;  %v8883_v3 = vld [vmem:[#allocation31_spill] sm:$0xff]  ;;  %v8884_v15 = vld [vmem:[#allocation32_spill] sm:$0xff] }
 0x58c   : > { %5987 = vmatpush1.bf16.msra.mxu0 %v7703_v2  ;;  %6015 = vmatpush3.bf16.msra.mxu1 %v7737_v9  ;;  %v2648_v43 = vsub.f32 1.0, %v6646_v40  ;;  %v2650_v8 = vmul.f32 %v6646_v40, %v8155_v53 }
 0x58d   : > { %v2642_v62 = vadd.f32 %v2641_v56, %v8876_v30  ;;  %5989 = vmatprep.subr.bf16.mxu0 %v7707_v7  ;;  %6016 = vmatprep.subr.bf16.mxu1 %v8835_v37  ;;  %v8885_v56 = vld [vmem:[#allocation36_spill] sm:$0xff]  ;;  %v8886_v30 = vld [vmem:[#allocation33_spill] sm:$0xff] }
 0x58f   : > { %6647 = vtanh.f32 %v2642_v62 }
 0x590   : > { %5991 = vmatpush1.bf16.msra.mxu0 %v7718_v25  ;;  %6018 = vmatpush3.bf16.msra.mxu1 %v7747_v31 }
 0x591   : > { %5993 = vmatprep.subr.bf16.mxu0 %v7722_v32  ;;  %6019 = vmatprep.subr.bf16.mxu1 %v8835_v37 }
 0x594   : > { %5995 = vmatpush1.bf16.msra.mxu0 %v7730_v52  ;;  %6021 = vmatpush3.bf16.msra.mxu1 %v7755_v41 }
 0x595   : > { %5997 = vmatprep.subr.bf16.mxu0 %v7734_v55  ;;  %6022 = vmatprep.subr.bf16.mxu1 %v8835_v37 }
 0x598   : > { %5999 = vmatpush1.bf16.msra.mxu0 %v7741_v18  ;;  %6024 = vmatpush3.bf16.msra.mxu1 %v7763_v61 }
 0x599   : > { %v6648_v33 = vpop.eup %6647  ;;  %6001 = vmatprep.subr.bf16.mxu0 %v7744_v20  ;;  %6025 = vmatprep.subr.bf16.mxu1 %v8835_v37 }
 0x59a   : > { %v2649_v50 = vmul.f32 %v6648_v33, %v2648_v43  ;;  %v8887_v43 = vld [vmem:[#allocation51_spill] sm:$0xff] }
 0x59c   : > { %6003 = vmatpush1.bf16.msra.mxu0 %v7751_v39  ;;  %6027 = vmatpush3.bf16.msra.mxu1 %v7771_v4  ;;  %v2651_v10 = vadd.f32 %v2650_v8, %v2649_v50 }
 0x59d   : > { %6029 = vmatprep.subr.bf16.mxu0 %v7544_v29  ;;  %6060 = vmatprep.subr.bf16.mxu1 %v8835_v37 }
 0x59e   : > { %v8247_v23 = vsel %vm2666_vm9, %v2651_v10, %v8155_v53  ;;  %v2670_v17 = vsel %vm2666_vm9, %v2651_v10, 0.0  ;;  %v8877_v53 = vld [vmem:[#allocation27_spill] sm:$0xff] }
 0x59f   : > { %2671 = vst [vmem:[%s7517_s6 + $0x20] sm:$0xff] %v2670_v17  ;;  %2880 = vmatmul.mubr.f32.vlgmr.msra.gmra.mrb[22].mxu0 %v8247_v23  ;;  %5128 = vmatmul.mubr.f32.vlgmr.msra.gmra.mrb[34].mxu1 %v8247_v23 }
 0x5a0   : > { %6031 = vmatpush1.bf16.msra.mxu0 %v7547_v35  ;;  %6062 = vmatpush3.bf16.msra.mxu1 %v7579_v0 }
 0x5a1   : > { %6033 = vmatprep.subr.bf16.mxu0 %v7550_v38  ;;  %6063 = vmatprep.subr.bf16.mxu1 %v8835_v37 }
 0x5a2   : > { %3086 = vmatprep.mubr.f32.mxu0 %v8836_v24  ;;  %5162 = vmatprep.mubr.msk.f32.mxu1 %vm7087_vm2, %v8836_v24 }
 0x5a4   : > { %6035 = vmatpush1.bf16.msra.mxu0 %v7558_v46  ;;  %6065 = vmatpush3.bf16.msra.mxu1 %v7592_v12 }
 0x5a5   : > { %6037 = vmatprep.subr.bf16.mxu0 %v7562_v48  ;;  %6066 = vmatprep.subr.bf16.mxu1 %v8835_v37 }
 0x5a8   : > { %6039 = vmatpush1.bf16.msra.mxu0 %v7573_v57  ;;  %6068 = vmatpush3.bf16.msra.mxu1 %v7609_v22 }
 0x5a9   : > { %6041 = vmatprep.subr.bf16.mxu0 %v7577_v59  ;;  %6069 = vmatprep.subr.bf16.mxu1 %v8835_v37 }
 0x5ac   : > { %6043 = vmatpush1.bf16.msra.mxu0 %v7586_v5  ;;  %6071 = vmatpush3.bf16.msra.mxu1 %v7623_v36 }
 0x5ad   : > { %6045 = vmatprep.subr.bf16.mxu0 %v7589_v6  ;;  %6072 = vmatprep.subr.bf16.mxu1 %v8835_v37 }
 0x5b0   : > { %6047 = vmatpush1.bf16.msra.mxu0 %v7602_v16  ;;  %6074 = vmatpush3.bf16.msra.mxu1 %v7637_v51 }
 0x5b1   : > { %6049 = vmatprep.subr.bf16.mxu0 %v8877_v53  ;;  %6075 = vmatprep.subr.bf16.mxu1 %v8835_v37 }
 0x5b4   : > { %6051 = vmatpush1.bf16.msra.mxu0 %v8878_v26  ;;  %6077 = vmatpush3.bf16.msra.mxu1 %v8879_v13 }
 0x5b5   : > { %6053 = vmatprep.subr.bf16.mxu0 %v8880_v34  ;;  %6078 = vmatprep.subr.bf16.mxu1 %v8835_v37 }
 0x5b8   : > { %6055 = vmatpush1.bf16.msra.mxu0 %v8881_v44  ;;  %6080 = vmatpush3.bf16.msra.mxu1 %v8882_v21 }
 0x5b9   : > { %6057 = vmatprep.subr.bf16.mxu0 %v8883_v3  ;;  %6081 = vmatprep.subr.bf16.mxu1 %v8835_v37 }
 0x5bc   : > { %6059 = vmatpush1.bf16.msra.mxu0 %v8884_v15  ;;  %6083 = vmatpush3.bf16.msra.mxu1 %v8885_v56 }
 0x5bd   : > { %6085 = vmatprep.subr.bf16.mxu0 %v8886_v30  ;;  %6116 = vmatprep.subr.bf16.mxu1 %v8835_v37  ;;  %v8292_v30 = vld [vmem:[%s8833_s23] ss:$0 sm:$0xff] }
 0x5be   : > { %8888 = vst [vmem:[#allocation53_spill] sm:$0xff] %v8292_v30 }
 0x652   : > { %v2740_v62 = vpop.f32.mrb[8].mxu0  ;;  %v2811_v40 = vpop.f32.mrb[32].mxu1 }
 0x653   : > { %v6372_v33 = vadd.f32 %v2740_v62, %v8887_v43  ;;  %v2742_v50 = vpop.f32.mrb[9].mxu0  ;;  %v5094_v8 = vpop.f32.mrb[33].mxu1  ;;  %v2970_v62 = vadd.f32 %v8292_v30, %v2811_v40 }
 0x654   : > { %v6373_v10 = vadd.f32 %v2742_v50, %v8847_v60 }
 0x655   : > { %v4341_v45 = vmul.f32 -1.442695, %v6372_v33  ;;  %v8889_v33 = vld [vmem:[#allocation41_spill] sm:$0xff] }
 0x656   : > { %v4342_v17 = vmul.f32 -1.442695, %v6373_v10 }
 0x657   : > { %6649 = vpow2.f32 %v4341_v45 }
 0x658   : > { %6651 = vpow2.f32 %v4342_v17 }
 0x661   : > { %v6650_v3 = vpop.eup %6649 }
 0x662   : > { %v2960_v15 = vadd.f32 1.0, %v6650_v3  ;;  %v6652_v56 = vpop.eup %6651 }
 0x663   : > { %v2967_v21 = vadd.f32 1.0, %v6652_v56 }
 0x664   : > { %6653 = vrcp.f32 %v2960_v15 }
 0x665   : > { %6655 = vrcp.f32 %v2967_v21 }
 0x66e   : > { %v6654_v43 = vpop.eup %6653 }
 0x66f   : > { %v2971_v8 = vmul.f32 %v6654_v43, %v2970_v62  ;;  %v6656_v44 = vpop.eup %6655  ;;  %v3007_v62 = vpop.permute.xlu0 %3006 }
 0x670   : > { %v2992_v40 = vsub.f32 1.0, %v6656_v44  ;;  %v2994_v43 = vmul.f32 %v6656_v44, %v8203_v54  ;;  %vm3008_vm10 = vcmp.eq.s32.totalorder %v3007_v62, 1 }
 0x671   : > { %v2972_v50 = vadd.f32 %v2971_v8, %v8889_v33 }
 0x672   : > { %v2881_v45 = vpop.f32.mrb[22].mxu0  ;;  %v2952_v10 = vpop.f32.mrb[34].mxu1 }
 0x673   : > { %6657 = vtanh.f32 %v2972_v50  ;;  %v6386_v3 = vadd.f32 %v2881_v45, %v7913_v63  ;;  %v2883_v15 = vpop.f32.mrb[23].mxu0  ;;  %v5129_v17 = vpop.f32.mrb[35].mxu1 }
 0x674   : > { %v6387_v60 = vadd.f32 %v2883_v15, %v7915_v1  ;;  %v8890_v17 = vld [vmem:[#allocation46_spill] sm:$0xff] }
 0x675   : > { %v4343_v56 = vmul.f32 -1.442695, %v6386_v3 }
 0x676   : > { %v4344_v34 = vmul.f32 -1.442695, %v6387_v60 }
 0x677   : > { %6659 = vpow2.f32 %v4343_v56 }
 0x678   : > { %6661 = vpow2.f32 %v4344_v34  ;;  %v8321_v34 = vld [vmem:[%s8837_s20] ss:$0 sm:$0xff] }
 0x679   : > { %v2988_v44 = vadd.f32 %v8321_v34, %v2952_v10 }
 0x67d   : > { %v6658_v30 = vpop.eup %6657 }
 0x67e   : > { %v2993_v21 = vmul.f32 %v6658_v30, %v2992_v40 }
 0x680   : > { %v2995_v8 = vadd.f32 %v2994_v43, %v2993_v21 }
 0x681   : > { %v6660_v33 = vpop.eup %6659 }
 0x682   : > { %v2978_v50 = vadd.f32 1.0, %v6660_v33  ;;  %v8300_v45 = vsel %vm3008_vm10, %v2995_v8, %v8203_v54  ;;  %v3016_v3 = vsel %vm3008_vm10, %v2995_v8, 0.0  ;;  %v6662_v60 = vpop.eup %6661  ;;  %v3013_v8 = vpop.permute.xlu1 %3012 }
 0x683   : > { %3017 = vst [vmem:[%s7515_s16 + $0x20] sm:$0xff] %v3016_v3  ;;  %3087 = vmatmul.mubr.f32.vlgmr.msra.gmra.mrb[10].mxu0 %v8300_v45  ;;  %5163 = vmatmul.mubr.f32.vlgmr.msra.gmra.mrb[36].mxu1 %v8300_v45  ;;  %v2985_v54 = vadd.f32 1.0, %v6662_v60  ;;  %vm3014_vm11 = vcmp.eq.s32.totalorder %v3013_v8, 1  ;;  %v8892_v60 = vld [vmem:[#allocation30_spill] sm:$0xff] }
 0x684   : > { %6663 = vrcp.f32 %v2978_v50  ;;  %6087 = vmatpush1.bf16.msra.mxu0 %v7664_v11  ;;  %6118 = vmatpush3.bf16.msra.mxu1 %v7698_v58 }
 0x685   : > { %6089 = vmatprep.subr.bf16.mxu0 %v7667_v14  ;;  %6119 = vmatprep.subr.bf16.mxu1 %v8835_v37  ;;  %6665 = vrcp.f32 %v2985_v54  ;;  %v8893_v54 = vld [vmem:[#allocation35_spill] sm:$0xff] }
 0x686   : > { %3227 = vmatprep.mubr.f32.mxu0 %v8836_v24  ;;  %5197 = vmatprep.mubr.msk.f32.mxu1 %vm7087_vm2, %v8836_v24 }
 0x688   : > { %6091 = vmatpush1.bf16.msra.mxu0 %v7678_v27  ;;  %6121 = vmatpush3.bf16.msra.mxu1 %v7712_v19 }
 0x689   : > { %6093 = vmatprep.subr.bf16.mxu0 %v7682_v28  ;;  %6122 = vmatprep.subr.bf16.mxu1 %v8835_v37 }
 0x68c   : > { %6095 = vmatpush1.bf16.msra.mxu0 %v7691_v47  ;;  %6124 = vmatpush3.bf16.msra.mxu1 %v7726_v42 }
 0x68d   : > { %6097 = vmatprep.subr.bf16.mxu0 %v7694_v49  ;;  %6125 = vmatprep.subr.bf16.mxu1 %v8835_v37 }
 0x68e   : > { %v6664_v30 = vpop.eup %6663 }
 0x68f   : > { %v2989_v15 = vmul.f32 %v6664_v30, %v2988_v44  ;;  %v6666_v10 = vpop.eup %6665  ;;  %v8894_v44 = vld [vmem:[#allocation31_spill] sm:$0xff]  ;;  %v8895_v30 = vld [vmem:[#allocation32_spill] sm:$0xff] }
 0x690   : > { %6099 = vmatpush1.bf16.msra.mxu0 %v7703_v2  ;;  %6127 = vmatpush3.bf16.msra.mxu1 %v7737_v9  ;;  %v2996_v40 = vsub.f32 1.0, %v6666_v10  ;;  %v2998_v62 = vmul.f32 %v6666_v10, %v8247_v23 }
 0x691   : > { %v2990_v56 = vadd.f32 %v2989_v15, %v8890_v17  ;;  %6101 = vmatprep.subr.bf16.mxu0 %v7707_v7  ;;  %6128 = vmatprep.subr.bf16.mxu1 %v8835_v37  ;;  %v8896_v15 = vld [vmem:[#allocation36_spill] sm:$0xff]  ;;  %v8897_v17 = vld [vmem:[#allocation33_spill] sm:$0xff] }
 0x693   : > { %6667 = vtanh.f32 %v2990_v56 }
 0x694   : > { %6103 = vmatpush1.bf16.msra.mxu0 %v7718_v25  ;;  %6130 = vmatpush3.bf16.msra.mxu1 %v7747_v31 }
 0x695   : > { %6105 = vmatprep.subr.bf16.mxu0 %v7722_v32  ;;  %6131 = vmatprep.subr.bf16.mxu1 %v8835_v37 }
 0x698   : > { %6107 = vmatpush1.bf16.msra.mxu0 %v7730_v52  ;;  %6133 = vmatpush3.bf16.msra.mxu1 %v7755_v41 }
 0x699   : > { %6109 = vmatprep.subr.bf16.mxu0 %v7734_v55  ;;  %6134 = vmatprep.subr.bf16.mxu1 %v8835_v37 }
 0x69c   : > { %6111 = vmatpush1.bf16.msra.mxu0 %v7741_v18  ;;  %6136 = vmatpush3.bf16.msra.mxu1 %v7763_v61 }
 0x69d   : > { %v6668_v21 = vpop.eup %6667  ;;  %6113 = vmatprep.subr.bf16.mxu0 %v7744_v20  ;;  %6137 = vmatprep.subr.bf16.mxu1 %v8835_v37 }
 0x69e   : > { %v2997_v43 = vmul.f32 %v6668_v21, %v2996_v40  ;;  %v8898_v40 = vld [vmem:[#allocation51_spill] sm:$0xff] }
 0x6a0   : > { %6115 = vmatpush1.bf16.msra.mxu0 %v7751_v39  ;;  %6139 = vmatpush3.bf16.msra.mxu1 %v7771_v4  ;;  %v2999_v33 = vadd.f32 %v2998_v62, %v2997_v43 }
 0x6a1   : > { %6141 = vmatprep.subr.bf16.mxu0 %v7544_v29  ;;  %6172 = vmatprep.subr.bf16.mxu1 %v8835_v37 }
 0x6a2   : > { %v8349_v50 = vsel %vm3014_vm11, %v2999_v33, %v8247_v23  ;;  %v3018_v3 = vsel %vm3014_vm11, %v2999_v33, 0.0  ;;  %v8891_v23 = vld [vmem:[#allocation29_spill] sm:$0xff]  ;;  %v8899_v33 = vld [vmem:[#allocation52_spill] sm:$0xff] }
 0x6a3   : > { %3019 = vst [vmem:[%s7517_s6 + $0x18] sm:$0xff] %v3018_v3  ;;  %3228 = vmatmul.mubr.f32.vlgmr.msra.gmra.mrb[20].mxu0 %v8349_v50  ;;  %5198 = vmatmul.mubr.f32.vlgmr.msra.gmra.mrb[38].mxu1 %v8349_v50 }
 0x6a4   : > { %6143 = vmatpush1.bf16.msra.mxu0 %v7547_v35  ;;  %6174 = vmatpush3.bf16.msra.mxu1 %v7579_v0 }
 0x6a5   : > { %6145 = vmatprep.subr.bf16.mxu0 %v7550_v38  ;;  %6175 = vmatprep.subr.bf16.mxu1 %v8835_v37 }
 0x6a6   : > { %3434 = vmatprep.mubr.f32.mxu0 %v8836_v24  ;;  %5232 = vmatprep.mubr.msk.f32.mxu1 %vm7087_vm2, %v8836_v24 }
 0x6a8   : > { %6147 = vmatpush1.bf16.msra.mxu0 %v7558_v46  ;;  %6177 = vmatpush3.bf16.msra.mxu1 %v7592_v12 }
 0x6a9   : > { %6149 = vmatprep.subr.bf16.mxu0 %v7562_v48  ;;  %6178 = vmatprep.subr.bf16.mxu1 %v8835_v37 }
 0x6ac   : > { %6151 = vmatpush1.bf16.msra.mxu0 %v7573_v57  ;;  %6180 = vmatpush3.bf16.msra.mxu1 %v7609_v22 }
 0x6ad   : > { %6153 = vmatprep.subr.bf16.mxu0 %v7577_v59  ;;  %6181 = vmatprep.subr.bf16.mxu1 %v8835_v37 }
 0x6b0   : > { %6155 = vmatpush1.bf16.msra.mxu0 %v7586_v5  ;;  %6183 = vmatpush3.bf16.msra.mxu1 %v7623_v36 }
 0x6b1   : > { %6157 = vmatprep.subr.bf16.mxu0 %v7589_v6  ;;  %6184 = vmatprep.subr.bf16.mxu1 %v8835_v37 }
 0x6b4   : > { %6159 = vmatpush1.bf16.msra.mxu0 %v7602_v16  ;;  %6186 = vmatpush3.bf16.msra.mxu1 %v7637_v51 }
 0x6b5   : > { %6161 = vmatprep.subr.bf16.mxu0 %v8877_v53  ;;  %6187 = vmatprep.subr.bf16.mxu1 %v8835_v37  ;;  %v8901_v53 = vld [vmem:[#allocation40_spill] sm:$0xff] }
 0x6b8   : > { %6163 = vmatpush1.bf16.msra.mxu0 %v8878_v26  ;;  %6189 = vmatpush3.bf16.msra.mxu1 %v8879_v13 }
 0x6b9   : > { %6165 = vmatprep.subr.bf16.mxu0 %v8891_v23  ;;  %6190 = vmatprep.subr.bf16.mxu1 %v8835_v37 }
 0x6bc   : > { %6167 = vmatpush1.bf16.msra.mxu0 %v8892_v60  ;;  %6192 = vmatpush3.bf16.msra.mxu1 %v8893_v54 }
 0x6bd   : > { %6169 = vmatprep.subr.bf16.mxu0 %v8894_v44  ;;  %6193 = vmatprep.subr.bf16.mxu1 %v8835_v37 }
 0x6c0   : > { %6171 = vmatpush1.bf16.msra.mxu0 %v8895_v30  ;;  %6195 = vmatpush3.bf16.msra.mxu1 %v8896_v15 }
 0x6c1   : > { %6197 = vmatprep.subr.bf16.mxu0 %v8897_v17  ;;  %6228 = vmatprep.subr.bf16.mxu1 %v8835_v37  ;;  %v8900_v17 = vld [vmem:[#allocation53_spill] sm:$0xff] }
 0x756   : > { %v3088_v56 = vpop.f32.mrb[10].mxu0  ;;  %v3159_v10 = vpop.f32.mrb[36].mxu1 }
 0x757   : > { %v6374_v21 = vadd.f32 %v3088_v56, %v8898_v40  ;;  %v3090_v43 = vpop.f32.mrb[11].mxu0  ;;  %v5164_v62 = vpop.f32.mrb[37].mxu1  ;;  %v3318_v23 = vadd.f32 %v8900_v17, %v3159_v10 }
 0x758   : > { %v6375_v3 = vadd.f32 %v3090_v43, %v8899_v33 }
 0x759   : > { %v4345_v8 = vmul.f32 -1.442695, %v6374_v21 }
 0x75a   : > { %v4346_v44 = vmul.f32 -1.442695, %v6375_v3 }
 0x75b   : > { %6669 = vpow2.f32 %v4345_v8 }
 0x75c   : > { %6671 = vpow2.f32 %v4346_v44 }
 0x765   : > { %v6670_v54 = vpop.eup %6669 }
 0x766   : > { %v3308_v30 = vadd.f32 1.0, %v6670_v54  ;;  %v6672_v15 = vpop.eup %6671 }
 0x767   : > { %v3315_v60 = vadd.f32 1.0, %v6672_v15 }
 0x768   : > { %6673 = vrcp.f32 %v3308_v30 }
 0x769   : > { %6675 = vrcp.f32 %v3315_v60 }
 0x772   : > { %v6674_v13 = vpop.eup %6673 }
 0x773   : > { %v3319_v26 = vmul.f32 %v6674_v13, %v3318_v23  ;;  %v6676_v30 = vpop.eup %6675 }
 0x774   : > { %v3340_v10 = vsub.f32 1.0, %v6676_v30 }
 0x775   : > { %v3320_v56 = vadd.f32 %v3319_v26, %v8901_v53  ;;  %v3342_v53 = vmul.f32 %v6676_v30, %v8300_v45  ;;  %v3355_v26 = vpop.permute.xlu0 %3354  ;;  %v8902_v30 = vld [vmem:[#allocation47_spill] sm:$0xff] }
 0x776   : > { %v3229_v40 = vpop.f32.mrb[20].mxu0  ;;  %v3300_v62 = vpop.f32.mrb[38].mxu1  ;;  %vm3356_vm12 = vcmp.eq.s32.totalorder %v3355_v26, 1 }
 0x777   : > { %6677 = vtanh.f32 %v3320_v56  ;;  %v6384_v21 = vadd.f32 %v3229_v40, %v7913_v63  ;;  %v3231_v43 = vpop.f32.mrb[21].mxu0  ;;  %v5199_v8 = vpop.f32.mrb[39].mxu1 }
 0x778   : > { %v6385_v54 = vadd.f32 %v3231_v43, %v7915_v1  ;;  %v3336_v8 = vadd.f32 %v8321_v34, %v3300_v62  ;;  %v3361_v26 = vpop.permute.xlu1 %3360 }
 0x779   : > { %v4347_v44 = vmul.f32 -1.442695, %v6384_v21  ;;  %vm3362_vm13 = vcmp.eq.s32.totalorder %v3361_v26, 1 }
 0x77a   : > { %v4348_v15 = vmul.f32 -1.442695, %v6385_v54 }
 0x77b   : > { %6679 = vpow2.f32 %v4347_v44 }
 0x77c   : > { %6681 = vpow2.f32 %v4348_v15 }
 0x781   : > { %v6678_v3 = vpop.eup %6677 }
 0x782   : > { %v3341_v13 = vmul.f32 %v6678_v3, %v3340_v10 }
 0x784   : > { %v3343_v23 = vadd.f32 %v3342_v53, %v3341_v13 }
 0x785   : > { %v6680_v60 = vpop.eup %6679 }
 0x786   : > { %v3326_v40 = vadd.f32 1.0, %v6680_v60  ;;  %v8397_v56 = vsel %vm3356_vm12, %v3343_v23, %v8300_v45  ;;  %v3364_v21 = vsel %vm3356_vm12, %v3343_v23, 0.0  ;;  %v6682_v45 = vpop.eup %6681 }
 0x787   : > { %3365 = vst [vmem:[%s7515_s16 + $0x28] sm:$0xff] %v3364_v21  ;;  %3435 = vmatmul.mubr.f32.vlgmr.msra.gmra.mrb[12].mxu0 %v8397_v56  ;;  %5233 = vmatmul.mubr.f32.vlgmr.msra.gmra.mrb[40].mxu1 %v8397_v56  ;;  %v3333_v43 = vadd.f32 1.0, %v6682_v45 }
 0x788   : > { %6683 = vrcp.f32 %v3326_v40  ;;  %6199 = vmatpush1.bf16.msra.mxu0 %v7664_v11  ;;  %6230 = vmatpush3.bf16.msra.mxu1 %v7698_v58 }
 0x789   : > { %6201 = vmatprep.subr.bf16.mxu0 %v7667_v14  ;;  %6231 = vmatprep.subr.bf16.mxu1 %v8835_v37  ;;  %6685 = vrcp.f32 %v3333_v43 }
 0x78a   : > { %3575 = vmatprep.mubr.f32.mxu0 %v8836_v24  ;;  %5267 = vmatprep.mubr.msk.f32.mxu1 %vm7087_vm2, %v8836_v24 }
 0x78c   : > { %6203 = vmatpush1.bf16.msra.mxu0 %v7678_v27  ;;  %6233 = vmatpush3.bf16.msra.mxu1 %v7712_v19 }
 0x78d   : > { %6205 = vmatprep.subr.bf16.mxu0 %v7682_v28  ;;  %6234 = vmatprep.subr.bf16.mxu1 %v8835_v37 }
 0x790   : > { %6207 = vmatpush1.bf16.msra.mxu0 %v7691_v47  ;;  %6236 = vmatpush3.bf16.msra.mxu1 %v7726_v42 }
 0x791   : > { %6209 = vmatprep.subr.bf16.mxu0 %v7694_v49  ;;  %6237 = vmatprep.subr.bf16.mxu1 %v8835_v37 }
 0x792   : > { %v6684_v44 = vpop.eup %6683 }
 0x793   : > { %v3337_v54 = vmul.f32 %v6684_v44, %v3336_v8  ;;  %v6686_v62 = vpop.eup %6685 }
 0x794   : > { %6211 = vmatpush1.bf16.msra.mxu0 %v7703_v2  ;;  %6239 = vmatpush3.bf16.msra.mxu1 %v7737_v9  ;;  %v3344_v10 = vsub.f32 1.0, %v6686_v62  ;;  %v3346_v53 = vmul.f32 %v6686_v62, %v8349_v50 }
 0x795   : > { %v3338_v15 = vadd.f32 %v3337_v54, %v8902_v30  ;;  %6213 = vmatprep.subr.bf16.mxu0 %v7707_v7  ;;  %6240 = vmatprep.subr.bf16.mxu1 %v8835_v37 }
 0x797   : > { %6687 = vtanh.f32 %v3338_v15 }
 0x798   : > { %6215 = vmatpush1.bf16.msra.mxu0 %v7718_v25  ;;  %6242 = vmatpush3.bf16.msra.mxu1 %v7747_v31 }
 0x799   : > { %6217 = vmatprep.subr.bf16.mxu0 %v7722_v32  ;;  %6243 = vmatprep.subr.bf16.mxu1 %v8835_v37 }
 0x79c   : > { %6219 = vmatpush1.bf16.msra.mxu0 %v7730_v52  ;;  %6245 = vmatpush3.bf16.msra.mxu1 %v7755_v41 }
 0x79d   : > { %6221 = vmatprep.subr.bf16.mxu0 %v7734_v55  ;;  %6246 = vmatprep.subr.bf16.mxu1 %v8835_v37 }
 0x7a0   : > { %6223 = vmatpush1.bf16.msra.mxu0 %v7741_v18  ;;  %6248 = vmatpush3.bf16.msra.mxu1 %v7763_v61 }
 0x7a1   : > { %v6688_v3 = vpop.eup %6687  ;;  %6225 = vmatprep.subr.bf16.mxu0 %v7744_v20  ;;  %6249 = vmatprep.subr.bf16.mxu1 %v8835_v37 }
 0x7a2   : > { %v3345_v13 = vmul.f32 %v6688_v3, %v3344_v10  ;;  %v8914_v3 = vld [vmem:[#allocation43_spill] sm:$0xff] }
 0x7a4   : > { %6227 = vmatpush1.bf16.msra.mxu0 %v7751_v39  ;;  %6251 = vmatpush3.bf16.msra.mxu1 %v7771_v4  ;;  %v3347_v23 = vadd.f32 %v3346_v53, %v3345_v13 }
 0x7a5   : > { %6253 = vmatprep.subr.bf16.mxu0 %v7544_v29  ;;  %6284 = vmatprep.subr.bf16.mxu1 %v8835_v37  ;;  %v8903_v29 = vld [vmem:[#allocation27_spill] sm:$0xff] }
 0x7a6   : > { %v8441_v60 = vsel %vm3362_vm13, %v3347_v23, %v8349_v50  ;;  %v3366_v40 = vsel %vm3362_vm13, %v3347_v23, 0.0 }
 0x7a7   : > { %3367 = vst [vmem:[%s7517_s6 + $0x10] sm:$0xff] %v3366_v40  ;;  %3576 = vmatmul.mubr.f32.vlgmr.msra.gmra.mrb[18].mxu0 %v8441_v60  ;;  %5268 = vmatmul.mubr.f32.vlgmr.msra.gmra.mrb[42].mxu1 %v8441_v60 }
 0x7a8   : > { %6255 = vmatpush1.bf16.msra.mxu0 %v7547_v35  ;;  %6286 = vmatpush3.bf16.msra.mxu1 %v7579_v0  ;;  %v8904_v35 = vld [vmem:[#allocation28_spill] sm:$0xff] }
 0x7a9   : > { %6257 = vmatprep.subr.bf16.mxu0 %v7550_v38  ;;  %6287 = vmatprep.subr.bf16.mxu1 %v8835_v37  ;;  %v8905_v38 = vld [vmem:[#allocation34_spill] sm:$0xff]  ;;  %v8910_v0 = vld [vmem:[#allocation32_spill] sm:$0xff] }
 0x7aa   : > { %3781 = vmatprep.mubr.f32.mxu0 %v8836_v24  ;;  %5302 = vmatprep.mubr.msk.f32.mxu1 %vm7087_vm2, %v8836_v24 }
 0x7ac   : > { %6259 = vmatpush1.bf16.msra.mxu0 %v7558_v46  ;;  %6289 = vmatpush3.bf16.msra.mxu1 %v7592_v12  ;;  %v8906_v46 = vld [vmem:[#allocation29_spill] sm:$0xff] }
 0x7ad   : > { %6261 = vmatprep.subr.bf16.mxu0 %v7562_v48  ;;  %6290 = vmatprep.subr.bf16.mxu1 %v8835_v37  ;;  %v8907_v48 = vld [vmem:[#allocation30_spill] sm:$0xff] }
 0x7b0   : > { %6263 = vmatpush1.bf16.msra.mxu0 %v7573_v57  ;;  %6292 = vmatpush3.bf16.msra.mxu1 %v7609_v22  ;;  %v8908_v57 = vld [vmem:[#allocation35_spill] sm:$0xff] }
 0x7b1   : > { %6265 = vmatprep.subr.bf16.mxu0 %v7577_v59  ;;  %6293 = vmatprep.subr.bf16.mxu1 %v8835_v37  ;;  %v8909_v59 = vld [vmem:[#allocation31_spill] sm:$0xff] }
 0x7b2   : > { %v8913_v22 = vld [vmem:[#allocation51_spill] sm:$0xff] }
 0x7b4   : > { %6267 = vmatpush1.bf16.msra.mxu0 %v7586_v5  ;;  %6295 = vmatpush3.bf16.msra.mxu1 %v7623_v36  ;;  %v8911_v5 = vld [vmem:[#allocation36_spill] sm:$0xff] }
 0x7b5   : > { %6269 = vmatprep.subr.bf16.mxu0 %v7589_v6  ;;  %6296 = vmatprep.subr.bf16.mxu1 %v8835_v37  ;;  %v8912_v6 = vld [vmem:[#allocation33_spill] sm:$0xff] }
 0x7b8   : > { %6271 = vmatpush1.bf16.msra.mxu0 %v7602_v16  ;;  %6298 = vmatpush3.bf16.msra.mxu1 %v7637_v51 }
 0x7b9   : > { %6273 = vmatprep.subr.bf16.mxu0 %v8903_v29  ;;  %6299 = vmatprep.subr.bf16.mxu1 %v8835_v37 }
 0x7bc   : > { %6275 = vmatpush1.bf16.msra.mxu0 %v8904_v35  ;;  %6301 = vmatpush3.bf16.msra.mxu1 %v8905_v38 }
 0x7bd   : > { %6277 = vmatprep.subr.bf16.mxu0 %v8906_v46  ;;  %6302 = vmatprep.subr.bf16.mxu1 %v8835_v37 }
 0x7c0   : > { %6279 = vmatpush1.bf16.msra.mxu0 %v8907_v48  ;;  %6304 = vmatpush3.bf16.msra.mxu1 %v8908_v57 }
 0x7c1   : > { %6281 = vmatprep.subr.bf16.mxu0 %v8909_v59  ;;  %6305 = vmatprep.subr.bf16.mxu1 %v8835_v37 }
 0x7c4   : > { %6283 = vmatpush1.bf16.msra.mxu0 %v8910_v0  ;;  %6307 = vmatpush3.bf16.msra.mxu1 %v8911_v5 }
 0x7c5   : > { %6309 = vmatprep.subr.bf16.mxu0 %v8912_v6  ;;  %6340 = vmatprep.subr.bf16.mxu1 %v8835_v37  ;;  %v3703_v6 = vpop.permute.xlu0 %3702 }
 0x7c6   : > { %vm3704_vm14 = vcmp.eq.s32.totalorder %v3703_v6, 1  ;;  %v8917_v6 = vld [vmem:[#allocation45_spill] sm:$0xff] }
 0x85a   : > { %v3436_v12 = vpop.f32.mrb[12].mxu0  ;;  %v3507_v16 = vpop.f32.mrb[40].mxu1 }
 0x85b   : > { %v6376_v36 = vadd.f32 %v3436_v12, %v8913_v22  ;;  %v3438_v51 = vpop.f32.mrb[13].mxu0  ;;  %v5234_v50 = vpop.f32.mrb[41].mxu1  ;;  %v3666_v15 = vadd.f32 %v8900_v17, %v3507_v16 }
 0x85c   : > { %v6377_v45 = vadd.f32 %v3438_v51, %v8899_v33 }
 0x85d   : > { %v4349_v21 = vmul.f32 -1.442695, %v6376_v36 }
 0x85e   : > { %v4350_v43 = vmul.f32 -1.442695, %v6377_v45 }
 0x85f   : > { %6689 = vpow2.f32 %v4349_v21 }
 0x860   : > { %6691 = vpow2.f32 %v4350_v43 }
 0x869   : > { %v6690_v8 = vpop.eup %6689 }
 0x86a   : > { %v3656_v44 = vadd.f32 1.0, %v6690_v8  ;;  %v6692_v54 = vpop.eup %6691 }
 0x86b   : > { %v3663_v30 = vadd.f32 1.0, %v6692_v54 }
 0x86c   : > { %6693 = vrcp.f32 %v3656_v44  ;;  %v8916_v44 = vld [vmem:[#allocation42_spill] sm:$0xff] }
 0x86d   : > { %6695 = vrcp.f32 %v3663_v30 }
 0x876   : > { %v6694_v62 = vpop.eup %6693 }
 0x877   : > { %v3667_v10 = vmul.f32 %v6694_v62, %v3666_v15  ;;  %v6696_v46 = vpop.eup %6695 }
 0x878   : > { %v3688_v57 = vsub.f32 1.0, %v6696_v46  ;;  %v3690_v5 = vmul.f32 %v6696_v46, %v8397_v56 }
 0x879   : > { %v3668_v13 = vadd.f32 %v3667_v10, %v8914_v3 }
 0x87a   : > { %v3577_v53 = vpop.f32.mrb[18].mxu0  ;;  %v3648_v26 = vpop.f32.mrb[42].mxu1 }
 0x87b   : > { %6697 = vtanh.f32 %v3668_v13  ;;  %v6382_v23 = vadd.f32 %v3577_v53, %v7913_v63  ;;  %v3579_v40 = vpop.f32.mrb[19].mxu0  ;;  %v5269_v29 = vpop.f32.mrb[43].mxu1 }
 0x87c   : > { %v6383_v38 = vadd.f32 %v3579_v40, %v7915_v1 }
 0x87d   : > { %v4351_v35 = vmul.f32 -1.442695, %v6382_v23  ;;  %v4050_v23 = vpop.permute.xlu0 %4049 }
 0x87e   : > { %v4352_v48 = vmul.f32 -1.442695, %v6383_v38  ;;  %vm4051_vm15 = vcmp.eq.s32.totalorder %v4050_v23, 1 }
 0x87f   : > { %6699 = vpow2.f32 %v4351_v35 }
 0x880   : > { %6701 = vpow2.f32 %v4352_v48 }
 0x885   : > { %v6698_v59 = vpop.eup %6697 }
 0x886   : > { %v3689_v0 = vmul.f32 %v6698_v59, %v3688_v57 }
 0x888   : > { %v3691_v12 = vadd.f32 %v3690_v5, %v3689_v0 }
 0x889   : > { %v6700_v16 = vpop.eup %6699 }
 0x88a   : > { %v3674_v36 = vadd.f32 1.0, %v6700_v16  ;;  %v8489_v51 = vsel %vm3704_vm14, %v3691_v12, %v8397_v56  ;;  %v3712_v50 = vsel %vm3704_vm14, %v3691_v12, 0.0  ;;  %v6702_v56 = vpop.eup %6701 }
 0x88b   : > { %3713 = vst [vmem:[%s7515_s16 + $0x30] sm:$0xff] %v3712_v50  ;;  %3782 = vmatmul.mubr.f32.vlgmr.msra.gmra.mrb[14].mxu0 %v8489_v51  ;;  %5303 = vmatmul.mubr.f32.vlgmr.msra.gmra.mrb[44].mxu1 %v8489_v51 }
 0x88c   : > { %6703 = vrcp.f32 %v3674_v36  ;;  %6311 = vmatpush1.bf16.msra.mxu0 %v7664_v11  ;;  %6342 = vmatpush3.bf16.msra.mxu1 %v7698_v58  ;;  %v3681_v11 = vadd.f32 1.0, %v6702_v56 }
 0x88d   : > { %6313 = vmatprep.subr.bf16.mxu0 %v7667_v14  ;;  %6343 = vmatprep.subr.bf16.mxu1 %v8835_v37  ;;  %v3684_v14 = vadd.f32 %v8321_v34, %v3648_v26 }
 0x88e   : > { %3922 = vmatprep.mubr.f32.mxu0 %v8836_v24  ;;  %5337 = vmatprep.mubr.msk.f32.mxu1 %vm7087_vm2, %v8836_v24  ;;  %6705 = vrcp.f32 %v3681_v11 }
 0x890   : > { %6315 = vmatpush1.bf16.msra.mxu0 %v7678_v27  ;;  %6345 = vmatpush3.bf16.msra.mxu1 %v7712_v19  ;;  %v8915_v27 = vld [vmem:[#allocation44_spill] sm:$0xff] }
 0x891   : > { %6317 = vmatprep.subr.bf16.mxu0 %v7682_v28  ;;  %6346 = vmatprep.subr.bf16.mxu1 %v8835_v37 }
 0x894   : > { %6319 = vmatpush1.bf16.msra.mxu0 %v7691_v47  ;;  %6348 = vmatpush3.bf16.msra.mxu1 %v7726_v42 }
 0x895   : > { %6321 = vmatprep.subr.bf16.mxu0 %v7694_v49  ;;  %6349 = vmatprep.subr.bf16.mxu1 %v8835_v37 }
 0x896   : > { %v6704_v58 = vpop.eup %6703 }
 0x897   : > { %v3685_v24 = vmul.f32 %v6704_v58, %v3684_v14 }
 0x898   : > { %6323 = vmatpush1.bf16.msra.mxu0 %v7703_v2  ;;  %6351 = vmatpush3.bf16.msra.mxu1 %v7737_v9  ;;  %v6706_v47 = vpop.eup %6705 }
 0x899   : > { %v3686_v28 = vadd.f32 %v3685_v24, %v8915_v27  ;;  %6325 = vmatprep.subr.bf16.mxu0 %v7707_v7  ;;  %6352 = vmatprep.subr.bf16.mxu1 %v8835_v37  ;;  %v3692_v49 = vsub.f32 1.0, %v6706_v47  ;;  %v3694_v19 = vmul.f32 %v6706_v47, %v8441_v60 }
 0x89b   : > { %6707 = vtanh.f32 %v3686_v28 }
 0x89c   : > { %6327 = vmatpush1.bf16.msra.mxu0 %v7718_v25  ;;  %6354 = vmatpush3.bf16.msra.mxu1 %v7747_v31  ;;  %v3709_v25 = vpop.permute.xlu1 %3708 }
 0x89d   : > { %6329 = vmatprep.subr.bf16.mxu0 %v7722_v32  ;;  %6355 = vmatprep.subr.bf16.mxu1 %v8835_v37  ;;  %vm3710_vm2 = vcmp.eq.s32.totalorder %v3709_v25, 1 }
 0x8a0   : > { %6331 = vmatpush1.bf16.msra.mxu0 %v7730_v52  ;;  %6357 = vmatpush3.bf16.msra.mxu1 %v7755_v41 }
 0x8a1   : > { %6333 = vmatprep.subr.bf16.mxu0 %v7734_v55  ;;  %6358 = vmatprep.subr.bf16.mxu1 %v8835_v37 }
 0x8a4   : > { %6335 = vmatpush1.bf16.msra.mxu0 %v7741_v18  ;;  %6360 = vmatpush3.bf16.msra.mxu1 %v7763_v61 }
 0x8a5   : > { %v6708_v2 = vpop.eup %6707  ;;  %6337 = vmatprep.subr.bf16.mxu0 %v7744_v20  ;;  %6361 = vmatprep.subr.bf16.mxu1 %v8835_v37 }
 0x8a6   : > { %v3693_v7 = vmul.f32 %v6708_v2, %v3692_v49 }
 0x8a8   : > { %6339 = vmatpush1.bf16.msra.mxu0 %v7751_v39  ;;  %6363 = vmatpush3.bf16.msra.mxu1 %v7771_v4  ;;  %v3695_v32 = vadd.f32 %v3694_v19, %v3693_v7 }
 0x8aa   : > { %v8531_v42 = vsel %vm3710_vm2, %v3695_v32, %v8441_v60  ;;  %v3714_v52 = vsel %vm3710_vm2, %v3695_v32, 0.0 }
 0x8ab   : > { %3715 = vst [vmem:[%s7517_s6 + $0x8] sm:$0xff] %v3714_v52  ;;  %3923 = vmatmul.mubr.f32.vlgmr.msra.gmra.mrb[16].mxu0 %v8531_v42  ;;  %5338 = vmatmul.mubr.f32.vlgmr.msra.gmra.mrb[46].mxu1 %v8531_v42 }
 0x95e   : > { %v3783_v55 = vpop.f32.mrb[14].mxu0  ;;  %v3854_v9 = vpop.f32.mrb[44].mxu1 }
 0x95f   : > { %v6378_v18 = vadd.f32 %v3783_v55, %v8913_v22  ;;  %v3785_v20 = vpop.f32.mrb[15].mxu0  ;;  %v5304_v31 = vpop.f32.mrb[45].mxu1  ;;  %v4013_v45 = vadd.f32 %v8900_v17, %v3854_v9 }
 0x960   : > { %v6379_v41 = vadd.f32 %v3785_v20, %v8899_v33 }
 0x961   : > { %v4353_v39 = vmul.f32 -1.442695, %v6378_v18 }
 0x962   : > { %v4354_v61 = vmul.f32 -1.442695, %v6379_v41 }
 0x963   : > { %6709 = vpow2.f32 %v4353_v39 }
 0x964   : > { %6711 = vpow2.f32 %v4354_v61 }
 0x96d   : > { %v6710_v4 = vpop.eup %6709 }
 0x96e   : > { %v4003_v37 = vadd.f32 1.0, %v6710_v4  ;;  %v6712_v60 = vpop.eup %6711 }
 0x96f   : > { %v4010_v21 = vadd.f32 1.0, %v6712_v60 }
 0x970   : > { %6713 = vrcp.f32 %v4003_v37 }
 0x971   : > { %6715 = vrcp.f32 %v4010_v21 }
 0x97a   : > { %v6714_v43 = vpop.eup %6713 }
 0x97b   : > { %v4014_v8 = vmul.f32 %v6714_v43, %v4013_v45  ;;  %v6716_v13 = vpop.eup %6715 }
 0x97c   : > { %v4035_v17 = vsub.f32 1.0, %v6716_v13  ;;  %v4037_v29 = vmul.f32 %v6716_v13, %v8489_v51 }
 0x97d   : > { %v4015_v22 = vadd.f32 %v4014_v8, %v8916_v44 }
 0x97e   : > { %v3924_v54 = vpop.f32.mrb[16].mxu0  ;;  %v3995_v30 = vpop.f32.mrb[46].mxu1 }
 0x97f   : > { %6717 = vtanh.f32 %v4015_v22  ;;  %v6380_v33 = vadd.f32 %v3924_v54, %v7913_v63  ;;  %v3926_v15 = vpop.f32.mrb[17].mxu0  ;;  %v5339_v62 = vpop.f32.mrb[47].mxu1  ;;  %v4031_v59 = vadd.f32 %v8321_v34, %v3995_v30 }
 0x980   : > { %v6381_v3 = vadd.f32 %v3926_v15, %v7915_v1 }
 0x981   : > { %v4355_v10 = vmul.f32 -1.442695, %v6380_v33 }
 0x982   : > { %v4356_v53 = vmul.f32 -1.442695, %v6381_v3 }
 0x983   : > { %6719 = vpow2.f32 %v4355_v10 }
 0x984   : > { %6721 = vpow2.f32 %v4356_v53 }
 0x989   : > { %v6718_v26 = vpop.eup %6717 }
 0x98a   : > { %v4036_v40 = vmul.f32 %v6718_v26, %v4035_v17 }
 0x98c   : > { %v4038_v35 = vadd.f32 %v4037_v29, %v4036_v40 }
 0x98d   : > { %v6720_v38 = vpop.eup %6719 }
 0x98e   : > { %v4052_v63 = vsel %vm4051_vm15, %v4038_v35, %v8489_v51  ;;  %v4059_v46 = vsel %vm4051_vm15, %v4038_v35, 0.0  ;;  %v4021_v48 = vadd.f32 1.0, %v6720_v38  ;;  %v6722_v1 = vpop.eup %6721  ;;  %v4056_v51 = vpop.permute.xlu1 %4055 }
 0x98f   : > { %4060 = vst [vmem:[%s7515_s16 + $0x38] sm:$0xff] %v4059_v46  ;;  %4063 = vst [vmem:[#allocation2] sm:$0xff] %v4052_v63  ;;  %v4028_v57 = vadd.f32 1.0, %v6722_v1  ;;  %vm4057_vm0 = vcmp.eq.s32.totalorder %v4056_v51, 1 }
 0x990   : > { %6723 = vrcp.f32 %v4021_v48 }
 0x991   : > { %6725 = vrcp.f32 %v4028_v57 }
 0x996   : > { %v4069_v34 = vld [vmem:[#allocation2] sm:$0xff] (!%p4357_p2) }
 0x997   : > { %4071 = vst [vmem:[#allocation17] sm:$0xff] (!%p4357_p2), %v4069_v34 }
 0x99a   : > { %v6724_v0 = vpop.eup %6723 }
 0x99b   : > { %v4032_v5 = vmul.f32 %v6724_v0, %v4031_v59  ;;  %v6726_v16 = vpop.eup %6725 }
 0x99c   : > { %v4039_v36 = vsub.f32 1.0, %v6726_v16  ;;  %v4041_v11 = vmul.f32 %v6726_v16, %v8531_v42 }
 0x99d   : > { %v4033_v12 = vadd.f32 %v4032_v5, %v8917_v6 }
 0x99f   : > { %6727 = vtanh.f32 %v4033_v12 }
 0x9a9   : > { %v6728_v50 = vpop.eup %6727  ;;  %4068 = sbr.rel (%p4357_p2) target bundleno = 2488 (0x9b8), region = 96 }
 0x9aa   : > { %v4040_v56 = vmul.f32 %v6728_v50, %v4039_v36 }
 0x9ac   : > { %v4042_v14 = vadd.f32 %v4041_v11, %v4040_v56 }
 0x9ae   : > { %v4058_v58 = vsel %vm4057_vm0, %v4042_v14, %v8531_v42  ;;  %v4061_v24 = vsel %vm4057_vm0, %v4042_v14, 0.0 }
 0x9af   : > { %4062 = vst [vmem:[%s7517_s6] sm:$0xff] %v4061_v24  ;;  %4064 = vst [vmem:[#allocation2 + $0x8] sm:$0xff] %v4058_v58 }
 0x9b6   : > { %v4070_v27 = vld [vmem:[#allocation2 + $0x8] sm:$0xff] }
 0x9b7   : > { %4072 = vst [vmem:[#allocation17 + $0x8] sm:$0xff] %v4070_v27 }
 0x9b8 PF: > { %s4371_s22 = sshll.u32 %s1267_s19, 10  ;;  %s8918_s7 = sld [smem:[#allocation66_spill]] }
 0x9b9   : > { %s4109_s13 = sshll.u32 %s7517_s6, 4  ;;  %s8563_s17 = scalar_lea.sflag [#allocation16], %s497_s10  ;;  %s8559_s13 = int_to_ptr.vmem [resolvable:$true] %s4109_s13 }
 0x9ba   : > { %s6903_s1 = scalar_lea.vmem %s8559_s13, 1024  ;;  %p8919_p0 = scmp.ne.s32.totalorder %s8788_s21, 0 }
 0x9bb   : > { %p6904_p9 = scmp.ne.s32.totalorder %s8559_s13, %s6903_s1  ;;  %s7088_s19 = smov [#allocation15]  }
 0x9bc   : > { %s6907_s4 = sshll.u32 %s7088_s19, 4  ;;  %s6908_s4 = int_to_ptr.vmem [resolvable:$false] %s6907_s4 }
 0x9bd   : > { %p6905_p5 = pnand %p6904_p9, %p8919_p0  ;;  %s6909_s25 = scalar_lea.vmem %s6908_s4, 2048 }
 0x9be   : > { %s8556_s0 = scalar_lea.hbm %s8918_s7, %s4371_s22  ;;  %p6910_p7 = scmp.lt.s32.totalorder %s8559_s13, %s6908_s4 }
 0x9bf   : > { %p6906_p10 = pneg %p6905_p5  ;;  %p6911_p6 = scmp.lt.s32.totalorder %s6909_s25, %s6903_s1 }
 0x9c1   : > { %p6912_p12 = por %p6911_p6, %p6910_p7 }
 0x9c3   : > { %p6913_p11 = pnand %p6912_p12, %p6906_p10 }
 0x9c5   : > { %6916 = shalt.err (!%p6913_p11)
}
 0x9c6   : > { %s6917_s10 = scalar_lea.hbm %s8556_s0, 1024  ;;  %s6921_s8 = scalar_lea.hbm %s8918_s7, 2048 }
 0x9c7   : > { %p6918_p4 = scmp.ne.s32.totalorder %s8556_s0, %s6917_s10  ;;  %p6922_p1 = scmp.lt.u32.totalorder %s8556_s0, %s8918_s7 }
 0x9c8   : > { %p6923_p13 = scmp.lt.u32.totalorder %s6921_s8, %s6917_s10  ;;  %p6925_p9 = scmp.lt.u32.totalorder %s6917_s10, %s8556_s0 }
 0x9c9   : > { %p6919_p3 = pnand %p6918_p4, %p8919_p0 }
 0x9ca   : > { %p6924_p2 = por %p6923_p13, %p6922_p1 }
 0x9cb   : > { %p6920_p8 = pneg %p6919_p3 }
 0x9cc   : > { %p6926_p5 = por %p6925_p9, %p6924_p2 }
 0x9ce   : > { %p6927_p10 = pnand %p6926_p5, %p6920_p8 }
 0x9d0   : > { %6930 = shalt.err (!%p6927_p10)
}
 0x9d1   : > { %s7089_s1 = smov 128   ;;  %s7090_s25 = smov 8  }
 0x9d2   : > { %6449 = dma.vmem_to_hbm [thread:$0]  (%p8919_p0), %s8559_s13, 1024, %s8556_s0, %s8563_s17, %s7089_s1, %s7089_s1, %s7090_s25  }
 0x9d3   : > { %s4370_s6 = sshll.u32 %s7199_s15, 10  ;;  %s4092_s10 = sshll.u32 %s7515_s16, 4  ;;  %s8597_s10 = int_to_ptr.vmem [resolvable:$true] %s4092_s10 }
 0x9d4   : > { %s8920_s19 = sld [smem:[#allocation65_spill]]  ;;  %s4074_s5 = scalar_lea.sflag [#allocation5], %s7483_s18 }
 0x9d5   : > { %s6931_s7 = scalar_lea.vmem %s8597_s10, 1024  ;;  %p8921_p6 = scmp.ne.s32.totalorder %s8778_s2, 0 }
 0x9d6   : > { %p6932_p7 = scmp.ne.s32.totalorder %s8597_s10, %s6931_s7  ;;  %s7091_s21 = smov [#allocation14]  }
 0x9d7   : > { %s6935_s0 = sshll.u32 %s7091_s21, 4  ;;  %s6936_s0 = int_to_ptr.vmem [resolvable:$false] %s6935_s0 }
 0x9d8   : > { %p6933_p12 = pnand %p6932_p7, %p8921_p6  ;;  %s6937_s16 = scalar_lea.vmem %s6936_s0, 2048 }
 0x9d9   : > { %p6938_p0 = scmp.lt.s32.totalorder %s8597_s10, %s6936_s0  ;;  %p6939_p4 = scmp.lt.s32.totalorder %s6937_s16, %s6931_s7 }
 0x9da   : > { %s8595_s4 = scalar_lea.hbm %s8920_s19, %s4370_s6  ;;  %p6934_p11 = pneg %p6933_p12 }
 0x9db   : > { %p6940_p3 = por %p6939_p4, %p6938_p0 }
 0x9dd   : > { %p6941_p8 = pnand %p6940_p3, %p6934_p11 }
 0x9df   : > { %6944 = shalt.err (!%p6941_p8)
}
 0x9e0   : > { %s6945_s13 = scalar_lea.hbm %s8595_s4, 1024  ;;  %s6949_s22 = scalar_lea.hbm %s8920_s19, 2048 }
 0x9e1   : > { %p6946_p1 = scmp.ne.s32.totalorder %s8595_s4, %s6945_s13  ;;  %p6950_p9 = scmp.lt.u32.totalorder %s8595_s4, %s8920_s19 }
 0x9e2   : > { %p6951_p5 = scmp.lt.u32.totalorder %s6949_s22, %s6945_s13  ;;  %p6953_p7 = scmp.lt.u32.totalorder %s6945_s13, %s8595_s4 }
 0x9e3   : > { %p6947_p13 = pnand %p6946_p1, %p8921_p6 }
 0x9e4   : > { %p6952_p10 = por %p6951_p5, %p6950_p9 }
 0x9e5   : > { %p6948_p2 = pneg %p6947_p13 }
 0x9e6   : > { %p6954_p12 = por %p6953_p7, %p6952_p10 }
 0x9e8   : > { %p6955_p11 = pnand %p6954_p12, %p6948_p2 }
 0x9ea   : > { %6958 = shalt.err (!%p6955_p11)
}
 0x9eb   : > { %6448 = dma.vmem_to_hbm [thread:$0]  (%p8921_p6), %s8597_s10, 1024, %s8595_s4, %s4074_s5, %s7089_s1, %s7089_s1, %s7090_s25  }
 0x9ec   : > { %s7092_s7 = smov [#allocation17]   ;;  %p8922_p4 = scmp.eq.s32.totalorder %s7199_s15, 1 }
 0x9ed   : > { %s4122_s0 = sshll.u32 %s7092_s7, 4  ;;  %s4123_s0 = int_to_ptr.vmem [resolvable:$true] %s4122_s0 }
 0x9ee   : > { %s6959_s16 = scalar_lea.vmem %s4123_s0, 256  ;;  %p6966_p1 = scmp.lt.s32.totalorder %s4123_s0, %s4123_s0 }
 0x9ef   : > { %p6960_p0 = scmp.ne.s32.totalorder %s4123_s0, %s6959_s16  ;;  %p6967_p13 = scmp.lt.s32.totalorder %s6959_s16, %s6959_s16 }
 0x9f1   : > { %p6961_p3 = pnand %p6960_p0, %p8922_p4  ;;  %p6968_p2 = por %p6967_p13, %p6966_p1 }
 0x9f3   : > { %p6962_p8 = pneg %p6961_p3 }
 0x9f5   : > { %p6969_p9 = pnand %p6968_p2, %p6962_p8 }
 0x9f7   : > { %6972 = shalt.err (!%p6969_p9)
}
 0x9f8   : > { %s8923_s18 = sld [smem:[#allocation67_spill]]  ;;  %p8924_p5 = pmov %p8922_p4 }
 0x9fe   : > { %s6973_s17 = scalar_lea.hbm %s8923_s18, 256 }
 0x9ff   : > { %p6974_p6 = scmp.ne.s32.totalorder %s8923_s18, %s6973_s17  ;;  %p6979_p12 = scmp.lt.u32.totalorder %s6973_s17, %s8923_s18 }
 0xa01   : > { %p6975_p10 = pnand %p6974_p6, %p8924_p5 }
 0xa03   : > { %p6976_p7 = pneg %p6975_p10 }
 0xa05   : > { %p6981_p11 = pnand %p6979_p12, %p6976_p7 }
 0xa07   : > { %6984 = shalt.err (!%p6981_p11)
}
 0xa08   : > { %p8925_p0 = pmov %p8922_p4 }
 0xa0a   : > { %6451 = dma.vmem_to_hbm [thread:$0]  (%p8925_p0), %s4123_s0, 256, %s8923_s18, [#allocation16], %s7089_s1, %s7089_s1, %s7090_s25  }
 0xa0b   : > { %p8926_p4 = pmov %p8925_p0 }
 0xa0c   : > { %p8927_p3 = pmov %p8925_p0 }
 0xa0d   : > { %7034 = dma.done.wait (%p8926_p4), [#allocation16], 256  }
 0xa0e   : > { %7036 = vsyncadd (%p8927_p3), [#allocation16], 4294967040 }
 0xa0f PF: > { %s4141_s21 = sand.u32 1, %s7059_s28   ;;  %p8928_p8 = scmp.ne.s32.totalorder %s8781_s11, 0 }
 0xa10   : > { %p8929_p1 = scmp.ge.s32.totalorder %s7071_s14, 2  ;;  %s4142_s7 = scalar_lea.sflag [#allocation5], %s4141_s21 }
 0xa12   : > { %p6477_p13 = pnand %p8929_p1, %p8928_p8 }
 0xa14   : > { %7038 = dma.done.wait (!%p6477_p13), %s4142_s7, 1024  }
 0xa15   : > { %7040 = vsyncadd (!%p6477_p13), %s4142_s7, 4294966272  ;;  %s8930_s16 = sadd.s32 4294967294, %s7071_s14   ;;  %p8931_p2 = scmp.ne.s32.totalorder %s8783_s24, 0 }
 0xa16   : > { %s4150_s1 = sand.u32 1, %s8930_s16   ;;  %p8932_p9 = pmov %p8929_p1 }
 0xa17   : > { %s4151_s15 = scalar_lea.sflag [#allocation16], %s4150_s1 }
 0xa18   : > { %p6480_p6 = pnand %p8932_p9, %p8931_p2 }
 0xa1a   : > { %7042 = dma.done.wait (!%p6480_p6), %s4151_s15, 1024  }
 0xa1b   : > { %7044 = vsyncadd (!%p6480_p6), %s4151_s15, 4294966272  ;;  %p35_p5 = scmp.ge.s32.totalorder %s7409_s9, 4   ;;  %s8933_s25 = smov %s7051_s26 }
 0xa1c   : > { %s8934_s26 = smov %s7055_s27  ;;  %s8935_s27 = smov %s7426_s3 }
 0xa1d   : > { %s8936_s28 = smov %s7063_s29  ;;  %s8937_s29 = smov %s7067_s30 }
 0xa1e   : > { %s8938_s30 = smov %s7419_s12  ;;  %s8939_s14 = smov %s7409_s9 }
 0xa1f   :  { %37 = sbr.rel (!%p35_p5) target bundleno = 28 (0x1c), region = 172 }
 0xa26   :  { %4156 = vsyncpa [#allocation4], 1 }
 0xa27   :  { %4158 = vsyncpa [#allocation4 + $0x1], 1 }
 0xa28   :  { %4159 = vsyncpa [#allocation7], 1 }
 0xa29   :  { %4161 = vsyncpa [#allocation7 + $0x1], 1 }
 0xa2a   :  { %4162 = vsyncpa [#allocation10], 1 }
 0xa2b   :  { %4163 = vsyncpa [#allocation13], 1 }
 0xa2c   :  { %4164 = vsyncpa [#allocation5], 1 }
 0xa2d   :  { %4166 = vsyncpa [#allocation5 + $0x1], 1 }
 0xa2e   :  { %4167 = vsyncpa [#allocation16], 1 }
 0xa2f   :  { %4169 = vsyncpa [#allocation16 + $0x1], 1 }

</bundles_post_ra>
